<compile_context>
chip_gen: v7x
topology: tpu7x:2x2x1
jax: 0.10.0
libtpu: 0.0.40
codegen_flags: <defaults>
</compile_context>

<pallas_src>
import numpy as np
import jax
import jax.numpy as jnp
from jax.experimental import pallas as pl
from jax.experimental.pallas import tpu as pltpu


# ----------------------------------------------------------------------------
# Fused pallas_call builder (specialized to layer stack + tap indices + shape)
# ----------------------------------------------------------------------------
def _build_fused_call(layers, layer_indices, N, H, W, Cin, *,
                      num_batch_tiles=None, out_dtype=jnp.float32):
    tap_set = set(int(i) for i in layer_indices)

    if num_batch_tiles is None:
        # One grid step (whole batch folded) amortizes the ~0.35us per-step
        # overhead on the sequential TC (v5e/v6e).  Use 2 parallel tiles only
        # when each tile still folds >= 2 images (v7x: one tile per TC).
        num_batch_tiles = 2 if (N % 2 == 0 and N >= 4) else 1
    assert N % num_batch_tiles == 0
    NB = N // num_batch_tiles

    # ---- host-side plan: per-layer geometry + prebuilt params (done ONCE) ----
    plan = []             # per layer: ('conv', h, w, cin, cout) | ('pool', h, w, c) | ('relu',)
    flat_params = []      # kernel inputs after x: [Wk0, Wk1, Wk2, bias_dense] per conv
    scratch_shapes = []   # one vertically padded lane-dense scratch per conv
    tap_shapes = []       # (h, w, c) AFTER each tapped layer, in layer order
    h, w, c = H, W, Cin
    for i, layer in enumerate(layers):
        kind = layer[0]
        if kind == "conv":
            wt = np.asarray(jax.device_get(layer[1]), np.float32)   # (3,3,cin,cout)
            bs = np.asarray(jax.device_get(layer[2]), np.float32)   # (cout,)
            cin, cout = wt.shape[2], wt.shape[3]
            assert cin == c
            # Block-Toeplitz weights: one (w*cin, w*cout) matrix per ky that
            # implements the 3 kx taps AND the horizontal zero padding.
            wks = []
            for ky in range(3):
                Wk = np.zeros((w * cin, w * cout), np.float32)
                for x in range(w):
                    for kx in range(3):
                        xi = x + kx - 1
                        if 0 <= xi < w:
                            Wk[xi * cin:(xi + 1) * cin,
                               x * cout:(x + 1) * cout] = wt[ky, kx]
                wks.append(jnp.asarray(Wk, jnp.bfloat16))
            bias_d = jnp.asarray(np.tile(bs, w)[None, :], jnp.float32)  # (1, w*cout)
            flat_params += wks + [bias_d]
            scratch_shapes.append(pltpu.VMEM((NB, h + 2, w * cin), jnp.bfloat16))
            plan.append(("conv", h, w, cin, cout))
            c = cout
        elif kind == "relu":
            plan.append(("relu",))
        elif kind == "pool":
            plan.append(("pool", h, w, c))
            h, w = h // 2, w // 2
        else:
            raise ValueError(f"unknown layer kind: {kind}")
        if i in tap_set:
            tap_shapes.append((h, w, c))

    n_params = len(flat_params)
    n_taps = len(tap_shapes)

    def kernel(*refs):
        x_ref = refs[0]
        p_refs = refs[1:1 + n_params]
        o_refs = refs[1 + n_params:1 + n_params + n_taps]
        s_refs = refs[1 + n_params + n_taps:]

        # Lane-dense f32 activation: (NB*h, w*c), channels fastest on lanes.
        cur = x_ref[...].reshape(NB * H, W * Cin)
        pi = si = oi = 0
        for i, layer in enumerate(layers):
            kind = layer[0]
            if kind == "conv":
                _, lh, lw, cin, cout = plan[i]
                xp = s_refs[si]                             # (NB, lh+2, lw*cin) bf16
                wk0, wk1, wk2 = p_refs[pi], p_refs[pi + 1], p_refs[pi + 2]
                bias = p_refs[pi + 3]                       # (1, lw*cout) f32
                # Zero only the 2 vertical halo rows; interior is overwritten.
                zrow = jnp.zeros((NB, 1, lw * cin), jnp.bfloat16)
                xp[:, :1, :] = zrow
                xp[:, lh + 1:lh + 2, :] = zrow
                # One f32->bf16 cast at the MXU operand boundary.
                xp[:, 1:lh + 1, :] = cur.reshape(NB, lh, lw * cin).astype(jnp.bfloat16)
                # 3 lane-dense matmuls (one per ky), f32 accumulation.
                acc = jnp.dot(xp[:, 0:lh, :].reshape(NB * lh, lw * cin), wk0[...],
                              preferred_element_type=jnp.float32)
                acc = acc + jnp.dot(xp[:, 1:lh + 1, :].reshape(NB * lh, lw * cin), wk1[...],
                                    preferred_element_type=jnp.float32)
                acc = acc + jnp.dot(xp[:, 2:lh + 2, :].reshape(NB * lh, lw * cin), wk2[...],
                                    preferred_element_type=jnp.float32)
                cur = acc + bias[...]                       # (NB*lh, lw*cout) f32
                pi += 4
                si += 1
            elif kind == "relu":
                cur = jnp.maximum(cur, 0.0)                 # f32 VPU (v5e-safe)
            elif kind == "pool":
                _, lh, lw, cc = plan[i]
                rows = NB * lh
                t = cur.reshape(rows // 2, 2, lw * cc)
                t = jnp.maximum(t[:, 0, :], t[:, 1, :])     # vertical max
                t = t.reshape(rows // 2, lw // 2, 2 * cc)
                t = jnp.maximum(t[:, :, :cc], t[:, :, cc:]) # horizontal max
                cur = t.reshape(rows // 2, (lw // 2) * cc)
            if i in tap_set:
                hh, ww, cc = tap_shapes[oi]
                # Lane-dense store: last dim ww*cc (=128 here) -> unmasked vst.
                o_refs[oi][...] = cur.reshape(NB, hh, ww * cc).astype(o_refs[oi].dtype)
                oi += 1

    in_specs = [pl.BlockSpec((NB, H, W * Cin), lambda n: (n, 0, 0))]
    for p in flat_params:
        in_specs.append(pl.BlockSpec(p.shape, lambda n: (0, 0)))

    out_shape = tuple(jax.ShapeDtypeStruct((N, hh, ww * cc), out_dtype)
                      for hh, ww, cc in tap_shapes)
    out_specs = tuple(pl.BlockSpec((NB, hh, ww * cc), lambda n: (n, 0, 0))
                      for hh, ww, cc in tap_shapes)

    call = pl.pallas_call(
        kernel,
        out_shape=out_shape,
        grid=(num_batch_tiles,),
        in_specs=in_specs,
        out_specs=out_specs,
        scratch_shapes=scratch_shapes,
        compiler_params=pltpu.CompilerParams(
            dimension_semantics=("parallel",)),
    )
    return call, tuple(flat_params), tap_shapes


# ----------------------------------------------------------------------------
# FeatureExtractor: identical semantics to the PyTorch module
# ----------------------------------------------------------------------------
class FeatureExtractor:
    """Runs the layer stack and returns activations at `layer_indices` (NCHW f32)."""

    def __init__(self, vgg_layers, layer_indices):
        # vgg_layers: list of ('conv', w(3,3,ci,co), b(co,)) / ('relu',) / ('pool',)
        self.vgg = list(vgg_layers)
        self.layer_indices = tuple(int(i) for i in layer_indices)
        self._cache = {}   # (N,C,H,W) -> (jitted forward, prebuilt params)

    def _get_forward(self, shape):
        key = tuple(int(s) for s in shape)
        if key not in self._cache:
            N, C, H, W = key
            call, params, tap_shapes = _build_fused_call(
                self.vgg, self.layer_indices, N, H, W, C)

            def fwd(x_nchw, *ps):
                x = jnp.transpose(x_nchw, (0, 2, 3, 1)).astype(jnp.float32)
                x = x.reshape(N, H, W * C)                   # lane-dense NHWC-flat
                outs = call(x, *ps)
                if not isinstance(outs, (list, tuple)):
                    outs = (outs,)
                feats = []
                for (hh, ww, cc), o in zip(tap_shapes, outs):
                    feats.append(jnp.transpose(o.reshape(N, hh, ww, cc), (0, 3, 1, 2)))
                return tuple(feats)

            self._cache[key] = (jax.jit(fwd), params)
        return self._cache[key]

    def __call__(self, x_nchw):
        fwd, params = self._get_forward(x_nchw.shape)
        return list(fwd(x_nchw, *params))


def _make_vgg_layers(key, cin):
    """Small deterministic VGG-style feature stack."""
    # TODO(synk): real torchvision VGG weights come from a checkpoint; we use
    # deterministic random weights of the right shapes instead.
    def conv_params(k, ci, co):
        kw, kb = jax.random.split(k)
        w = 0.05 * jax.random.normal(kw, (3, 3, ci, co), jnp.float32)
        b = 0.01 * jax.random.normal(kb, (co,), jnp.float32)
        return w, b

    k0, k1, k2 = jax.random.split(key, 3)
    w0, b0 = conv_params(k0, cin, 8)
    w1, b1 = conv_params(k1, 8, 8)
    w2, b2 = conv_params(k2, 8, 16)
    return [
        ("conv", w0, b0),   # 0
        ("relu",),          # 1
        ("conv", w1, b1),   # 2
        ("relu",),          # 3
        ("pool",),          # 4
        ("conv", w2, b2),   # 5
        ("relu",),          # 6
    ]


def _ref_features(x_nchw, layers, layer_indices):
    """Pure-JAX reference (XLA convs) for numerical validation."""
    taps = set(layer_indices)
    cur = jnp.transpose(x_nchw, (0, 2, 3, 1)).astype(jnp.float32)
    feats = []
    for i, layer in enumerate(layers):
        kind = layer[0]
        if kind == "conv":
            w, b = layer[1], layer[2]
            cur = jax.lax.conv_general_dilated(
                cur, w, window_strides=(1, 1), padding="SAME",
                dimension_numbers=("NHWC", "HWIO", "NHWC")) + b
        elif kind == "relu":
            cur = jnp.maximum(cur, 0.0)
        elif kind == "pool":
            cur = jax.lax.reduce_window(
                cur, -jnp.inf, jax.lax.max, (1, 2, 2, 1), (1, 2, 2, 1), "VALID")
        if i in taps:
            feats.append(jnp.transpose(cur, (0, 3, 1, 2)))
    return feats


if __name__ == "__main__":
    key = jax.random.PRNGKey(0)
    k_x, k_w = jax.random.split(key)

    N, C, H, W = 2, 4, 16, 16
    x = jax.random.normal(k_x, (N, C, H, W), jnp.float32)   # NCHW, like PyTorch

    vgg_layers = _make_vgg_layers(k_w, C)
    layer_indices = (1, 3, 6)
    extractor = FeatureExtractor(vgg_layers, layer_indices)

    feats = extractor(x)
    feats = [jax.block_until_ready(f) for f in feats]

    # Second call hits the cached jitted forward (no rebuild / re-trace).
    feats2 = extractor(x)
    feats2 = [jax.block_until_ready(f) for f in feats2]

    # Sanity: shapes + numerics vs pure-JAX reference (bf16 MXU operands).
    expected = [(N, 8, H, W), (N, 8, H, W), (N, 16, H // 2, W // 2)]
    refs = _ref_features(x, vgg_layers, layer_indices)
    assert len(feats) == len(layer_indices)
    for f, f2, r, shp in zip(feats, feats2, refs, expected):
        assert f.shape == shp, (f.shape, shp)
        assert bool(jnp.all(jnp.isfinite(f)))
        assert bool(jnp.all(f == f2))
        err = float(jnp.max(jnp.abs(f - r)))
        assert err < 5e-2, f"max abs err {err}"

    print("KERNEL_OK")
</pallas_src>

<mosaic_0001>
module attributes {stable_mosaic.version = 11 : i64} {
  func.func @kernel(%arg0: i32, %arg1: memref<2x16x64xf32, #tpu.memory_space<vmem>>, %arg2: memref<64x128xbf16, #tpu.memory_space<vmem>>, %arg3: memref<64x128xbf16, #tpu.memory_space<vmem>>, %arg4: memref<64x128xbf16, #tpu.memory_space<vmem>>, %arg5: memref<1x128xf32, #tpu.memory_space<vmem>>, %arg6: memref<128x128xbf16, #tpu.memory_space<vmem>>, %arg7: memref<128x128xbf16, #tpu.memory_space<vmem>>, %arg8: memref<128x128xbf16, #tpu.memory_space<vmem>>, %arg9: memref<1x128xf32, #tpu.memory_space<vmem>>, %arg10: memref<64x128xbf16, #tpu.memory_space<vmem>>, %arg11: memref<64x128xbf16, #tpu.memory_space<vmem>>, %arg12: memref<64x128xbf16, #tpu.memory_space<vmem>>, %arg13: memref<1x128xf32, #tpu.memory_space<vmem>>, %arg14: memref<2x16x128xf32, #tpu.memory_space<vmem>>, %arg15: memref<2x16x128xf32, #tpu.memory_space<vmem>>, %arg16: memref<2x8x128xf32, #tpu.memory_space<vmem>>, %arg17: memref<2x18x64xbf16, #tpu.memory_space<vmem>>, %arg18: memref<2x18x128xbf16, #tpu.memory_space<vmem>>, %arg19: memref<2x10x64xbf16, #tpu.memory_space<vmem>>) attributes {dimension_semantics = [#tpu.dimension_semantics<parallel>], iteration_bounds = array<i64: 1>, scalar_prefetch = 0 : i64, scratch_operands = 3 : i64, tpu.core_type = #tpu.core_type<tc>, window_params = [{transform_indices = @transform_0, window_bounds = array<i64: 2, 16, 64>}, {pipeline_mode = #tpu.pipeline_mode<synchronous>, transform_indices = @transform_1, window_bounds = array<i64: 64, 128>}, {pipeline_mode = #tpu.pipeline_mode<synchronous>, transform_indices = @transform_2, window_bounds = array<i64: 64, 128>}, {pipeline_mode = #tpu.pipeline_mode<synchronous>, transform_indices = @transform_3, window_bounds = array<i64: 64, 128>}, {pipeline_mode = #tpu.pipeline_mode<synchronous>, transform_indices = @transform_4, window_bounds = array<i64: 1, 128>}, {pipeline_mode = #tpu.pipeline_mode<synchronous>, transform_indices = @transform_5, window_bounds = array<i64: 128, 128>}, {pipeline_mode = #tpu.pipeline_mode<synchronous>, transform_indices = @transform_6, window_bounds = array<i64: 128, 128>}, {pipeline_mode = #tpu.pipeline_mode<synchronous>, transform_indices = @transform_7, window_bounds = array<i64: 128, 128>}, {pipeline_mode = #tpu.pipeline_mode<synchronous>, transform_indices = @transform_8, window_bounds = array<i64: 1, 128>}, {pipeline_mode = #tpu.pipeline_mode<synchronous>, transform_indices = @transform_9, window_bounds = array<i64: 64, 128>}, {pipeline_mode = #tpu.pipeline_mode<synchronous>, transform_indices = @transform_10, window_bounds = array<i64: 64, 128>}, {pipeline_mode = #tpu.pipeline_mode<synchronous>, transform_indices = @transform_11, window_bounds = array<i64: 64, 128>}, {pipeline_mode = #tpu.pipeline_mode<synchronous>, transform_indices = @transform_12, window_bounds = array<i64: 1, 128>}, {transform_indices = @transform_13, window_bounds = array<i64: 2, 16, 128>}, {transform_indices = @transform_14, window_bounds = array<i64: 2, 16, 128>}, {transform_indices = @transform_15, window_bounds = array<i64: 2, 8, 128>}]} {
    %c0 = arith.constant 0 : index
    %c0_0 = arith.constant 0 : index
    %c0_1 = arith.constant 0 : index
    %0 = vector.load %arg1[%c0, %c0_0, %c0_1] : memref<2x16x64xf32, #tpu.memory_space<vmem>>, vector<2x16x64xf32>
    %1 = vector.shape_cast %0 : vector<2x16x64xf32> to vector<32x64xf32>
    %cst = arith.constant 0.000000e+00 : bf16
    %2 = vector.broadcast %cst : bf16 to vector<2x1x64xbf16>
    %c0_2 = arith.constant 0 : index
    %c0_3 = arith.constant 0 : index
    %c0_4 = arith.constant 0 : index
    %3 = vector.load %arg17[%c0_2, %c0_3, %c0_4] : memref<2x18x64xbf16, #tpu.memory_space<vmem>>, vector<2x1x64xbf16>
    tpu.vector_store %arg17[%c0_2, %c0_3, %c0_4], %2 {strides = array<i32>} : memref<2x18x64xbf16, #tpu.memory_space<vmem>>, vector<2x1x64xbf16>,
    %c0_5 = arith.constant 0 : index
    %c17 = arith.constant 17 : index
    %c0_6 = arith.constant 0 : index
    %4 = vector.load %arg17[%c0_5, %c17, %c0_6] : memref<2x18x64xbf16, #tpu.memory_space<vmem>>, vector<2x1x64xbf16>
    tpu.vector_store %arg17[%c0_5, %c17, %c0_6], %2 {strides = array<i32>} : memref<2x18x64xbf16, #tpu.memory_space<vmem>>, vector<2x1x64xbf16>,
    %5 = vector.shape_cast %1 : vector<32x64xf32> to vector<2x16x64xf32>
    %6 = arith.truncf %5 : vector<2x16x64xf32> to vector<2x16x64xbf16>
    %c0_7 = arith.constant 0 : index
    %c1 = arith.constant 1 : index
    %c0_8 = arith.constant 0 : index
    %7 = vector.load %arg17[%c0_7, %c1, %c0_8] : memref<2x18x64xbf16, #tpu.memory_space<vmem>>, vector<2x16x64xbf16>
    tpu.vector_store %arg17[%c0_7, %c1, %c0_8], %6 {strides = array<i32>} : memref<2x18x64xbf16, #tpu.memory_space<vmem>>, vector<2x16x64xbf16>,
    %c0_9 = arith.constant 0 : index
    %c0_10 = arith.constant 0 : index
    %c0_11 = arith.constant 0 : index
    %8 = vector.load %arg17[%c0_9, %c0_10, %c0_11] : memref<2x18x64xbf16, #tpu.memory_space<vmem>>, vector<2x16x64xbf16>
    %9 = vector.shape_cast %8 : vector<2x16x64xbf16> to vector<32x64xbf16>
    %c0_12 = arith.constant 0 : index
    %c0_13 = arith.constant 0 : index
    %10 = vector.load %arg2[%c0_12, %c0_13] : memref<64x128xbf16, #tpu.memory_space<vmem>>, vector<64x128xbf16>
    %cst_14 = arith.constant dense<0.000000e+00> : vector<32x128xf32>
    %11 = tpu.matmul %9, %10, %cst_14 {dimension_numbers = #tpu.dot_dimension_numbers<[1], [0], [0], [1], [0, 0, 1, 1], [], []>} : vector<32x64xbf16>, vector<64x128xbf16>, vector<32x128xf32> -> vector<32x128xf32>
    %c0_15 = arith.constant 0 : index
    %c1_16 = arith.constant 1 : index
    %c0_17 = arith.constant 0 : index
    %12 = vector.load %arg17[%c0_15, %c1_16, %c0_17] : memref<2x18x64xbf16, #tpu.memory_space<vmem>>, vector<2x16x64xbf16>
    %13 = vector.shape_cast %12 : vector<2x16x64xbf16> to vector<32x64xbf16>
    %c0_18 = arith.constant 0 : index
    %c0_19 = arith.constant 0 : index
    %14 = vector.load %arg3[%c0_18, %c0_19] : memref<64x128xbf16, #tpu.memory_space<vmem>>, vector<64x128xbf16>
    %cst_20 = arith.constant dense<0.000000e+00> : vector<32x128xf32>
    %15 = tpu.matmul %13, %14, %cst_20 {dimension_numbers = #tpu.dot_dimension_numbers<[1], [0], [0], [1], [0, 0, 1, 1], [], []>} : vector<32x64xbf16>, vector<64x128xbf16>, vector<32x128xf32> -> vector<32x128xf32>
    %16 = arith.addf %11, %15 : vector<32x128xf32>
    %c0_21 = arith.constant 0 : index
    %c2 = arith.constant 2 : index
    %c0_22 = arith.constant 0 : index
    %17 = vector.load %arg17[%c0_21, %c2, %c0_22] : memref<2x18x64xbf16, #tpu.memory_space<vmem>>, vector<2x16x64xbf16>
    %18 = vector.shape_cast %17 : vector<2x16x64xbf16> to vector<32x64xbf16>
    %c0_23 = arith.constant 0 : index
    %c0_24 = arith.constant 0 : index
    %19 = vector.load %arg4[%c0_23, %c0_24] : memref<64x128xbf16, #tpu.memory_space<vmem>>, vector<64x128xbf16>
    %cst_25 = arith.constant dense<0.000000e+00> : vector<32x128xf32>
    %20 = tpu.matmul %18, %19, %cst_25 {dimension_numbers = #tpu.dot_dimension_numbers<[1], [0], [0], [1], [0, 0, 1, 1], [], []>} : vector<32x64xbf16>, vector<64x128xbf16>, vector<32x128xf32> -> vector<32x128xf32>
    %21 = arith.addf %16, %20 : vector<32x128xf32>
    %c0_26 = arith.constant 0 : index
    %c0_27 = arith.constant 0 : index
    %22 = vector.load %arg5[%c0_26, %c0_27] : memref<1x128xf32, #tpu.memory_space<vmem>>, vector<1x128xf32>
    %23 = vector.broadcast %22 : vector<1x128xf32> to vector<32x128xf32>
    %24 = arith.addf %21, %23 : vector<32x128xf32>
    %cst_28 = arith.constant 0.000000e+00 : f32
    %25 = vector.broadcast %cst_28 : f32 to vector<32x128xf32>
    %26 = arith.maximumf %24, %25 : vector<32x128xf32>
    %27 = vector.shape_cast %26 : vector<32x128xf32> to vector<2x16x128xf32>
    %c0_29 = arith.constant 0 : index
    %c0_30 = arith.constant 0 : index
    %c0_31 = arith.constant 0 : index
    %28 = vector.load %arg14[%c0_29, %c0_30, %c0_31] : memref<2x16x128xf32, #tpu.memory_space<vmem>>, vector<2x16x128xf32>
    tpu.vector_store %arg14[%c0_29, %c0_30, %c0_31], %27 {strides = array<i32>} : memref<2x16x128xf32, #tpu.memory_space<vmem>>, vector<2x16x128xf32>,
    %cst_32 = arith.constant 0.000000e+00 : bf16
    %29 = vector.broadcast %cst_32 : bf16 to vector<2x1x128xbf16>
    %c0_33 = arith.constant 0 : index
    %c0_34 = arith.constant 0 : index
    %c0_35 = arith.constant 0 : index
    %30 = vector.load %arg18[%c0_33, %c0_34, %c0_35] : memref<2x18x128xbf16, #tpu.memory_space<vmem>>, vector<2x1x128xbf16>
    tpu.vector_store %arg18[%c0_33, %c0_34, %c0_35], %29 {strides = array<i32>} : memref<2x18x128xbf16, #tpu.memory_space<vmem>>, vector<2x1x128xbf16>,
    %c0_36 = arith.constant 0 : index
    %c17_37 = arith.constant 17 : index
    %c0_38 = arith.constant 0 : index
    %31 = vector.load %arg18[%c0_36, %c17_37, %c0_38] : memref<2x18x128xbf16, #tpu.memory_space<vmem>>, vector<2x1x128xbf16>
    tpu.vector_store %arg18[%c0_36, %c17_37, %c0_38], %29 {strides = array<i32>} : memref<2x18x128xbf16, #tpu.memory_space<vmem>>, vector<2x1x128xbf16>,
    %32 = vector.shape_cast %26 : vector<32x128xf32> to vector<2x16x128xf32>
    %33 = arith.truncf %32 : vector<2x16x128xf32> to vector<2x16x128xbf16>
    %c0_39 = arith.constant 0 : index
    %c1_40 = arith.constant 1 : index
    %c0_41 = arith.constant 0 : index
    %34 = vector.load %arg18[%c0_39, %c1_40, %c0_41] : memref<2x18x128xbf16, #tpu.memory_space<vmem>>, vector<2x16x128xbf16>
    tpu.vector_store %arg18[%c0_39, %c1_40, %c0_41], %33 {strides = array<i32>} : memref<2x18x128xbf16, #tpu.memory_space<vmem>>, vector<2x16x128xbf16>,
    %c0_42 = arith.constant 0 : index
    %c0_43 = arith.constant 0 : index
    %c0_44 = arith.constant 0 : index
    %35 = vector.load %arg18[%c0_42, %c0_43, %c0_44] : memref<2x18x128xbf16, #tpu.memory_space<vmem>>, vector<2x16x128xbf16>
    %36 = vector.shape_cast %35 : vector<2x16x128xbf16> to vector<32x128xbf16>
    %c0_45 = arith.constant 0 : index
    %c0_46 = arith.constant 0 : index
    %37 = vector.load %arg6[%c0_45, %c0_46] : memref<128x128xbf16, #tpu.memory_space<vmem>>, vector<128x128xbf16>
    %cst_47 = arith.constant dense<0.000000e+00> : vector<32x128xf32>
    %38 = tpu.matmul %36, %37, %cst_47 {dimension_numbers = #tpu.dot_dimension_numbers<[1], [0], [0], [1], [0, 0, 1, 1], [], []>} : vector<32x128xbf16>, vector<128x128xbf16>, vector<32x128xf32> -> vector<32x128xf32>
    %c0_48 = arith.constant 0 : index
    %c1_49 = arith.constant 1 : index
    %c0_50 = arith.constant 0 : index
    %39 = vector.load %arg18[%c0_48, %c1_49, %c0_50] : memref<2x18x128xbf16, #tpu.memory_space<vmem>>, vector<2x16x128xbf16>
    %40 = vector.shape_cast %39 : vector<2x16x128xbf16> to vector<32x128xbf16>
    %c0_51 = arith.constant 0 : index
    %c0_52 = arith.constant 0 : index
    %41 = vector.load %arg7[%c0_51, %c0_52] : memref<128x128xbf16, #tpu.memory_space<vmem>>, vector<128x128xbf16>
    %cst_53 = arith.constant dense<0.000000e+00> : vector<32x128xf32>
    %42 = tpu.matmul %40, %41, %cst_53 {dimension_numbers = #tpu.dot_dimension_numbers<[1], [0], [0], [1], [0, 0, 1, 1], [], []>} : vector<32x128xbf16>, vector<128x128xbf16>, vector<32x128xf32> -> vector<32x128xf32>
    %43 = arith.addf %38, %42 : vector<32x128xf32>
    %c0_54 = arith.constant 0 : index
    %c2_55 = arith.constant 2 : index
    %c0_56 = arith.constant 0 : index
    %44 = vector.load %arg18[%c0_54, %c2_55, %c0_56] : memref<2x18x128xbf16, #tpu.memory_space<vmem>>, vector<2x16x128xbf16>
    %45 = vector.shape_cast %44 : vector<2x16x128xbf16> to vector<32x128xbf16>
    %c0_57 = arith.constant 0 : index
    %c0_58 = arith.constant 0 : index
    %46 = vector.load %arg8[%c0_57, %c0_58] : memref<128x128xbf16, #tpu.memory_space<vmem>>, vector<128x128xbf16>
    %cst_59 = arith.constant dense<0.000000e+00> : vector<32x128xf32>
    %47 = tpu.matmul %45, %46, %cst_59 {dimension_numbers = #tpu.dot_dimension_numbers<[1], [0], [0], [1], [0, 0, 1, 1], [], []>} : vector<32x128xbf16>, vector<128x128xbf16>, vector<32x128xf32> -> vector<32x128xf32>
    %48 = arith.addf %43, %47 : vector<32x128xf32>
    %c0_60 = arith.constant 0 : index
    %c0_61 = arith.constant 0 : index
    %49 = vector.load %arg9[%c0_60, %c0_61] : memref<1x128xf32, #tpu.memory_space<vmem>>, vector<1x128xf32>
    %50 = vector.broadcast %49 : vector<1x128xf32> to vector<32x128xf32>
    %51 = arith.addf %48, %50 : vector<32x128xf32>
    %cst_62 = arith.constant 0.000000e+00 : f32
    %52 = vector.broadcast %cst_62 : f32 to vector<32x128xf32>
    %53 = arith.maximumf %51, %52 : vector<32x128xf32>
    %54 = vector.shape_cast %53 : vector<32x128xf32> to vector<2x16x128xf32>
    %c0_63 = arith.constant 0 : index
    %c0_64 = arith.constant 0 : index
    %c0_65 = arith.constant 0 : index
    %55 = vector.load %arg15[%c0_63, %c0_64, %c0_65] : memref<2x16x128xf32, #tpu.memory_space<vmem>>, vector<2x16x128xf32>
    tpu.vector_store %arg15[%c0_63, %c0_64, %c0_65], %54 {strides = array<i32>} : memref<2x16x128xf32, #tpu.memory_space<vmem>>, vector<2x16x128xf32>,
    %56 = vector.shape_cast %53 : vector<32x128xf32> to vector<16x2x128xf32>
    %57 = vector.extract_strided_slice %56 {offsets = [0, 0, 0], sizes = [16, 1, 128], strides = [1, 1, 1]} : vector<16x2x128xf32> to vector<16x1x128xf32>
    %58 = vector.shape_cast %57 : vector<16x1x128xf32> to vector<16x128xf32>
    %59 = vector.extract_strided_slice %56 {offsets = [0, 1, 0], sizes = [16, 1, 128], strides = [1, 1, 1]} : vector<16x2x128xf32> to vector<16x1x128xf32>
    %60 = vector.shape_cast %59 : vector<16x1x128xf32> to vector<16x128xf32>
    %61 = arith.maximumf %58, %60 : vector<16x128xf32>
    %62 = vector.shape_cast %61 : vector<16x128xf32> to vector<16x8x16xf32>
    %63 = vector.extract_strided_slice %62 {offsets = [0, 0, 0], sizes = [16, 8, 8], strides = [1, 1, 1]} : vector<16x8x16xf32> to vector<16x8x8xf32>
    %64 = vector.extract_strided_slice %62 {offsets = [0, 0, 8], sizes = [16, 8, 8], strides = [1, 1, 1]} : vector<16x8x16xf32> to vector<16x8x8xf32>
    %65 = arith.maximumf %63, %64 : vector<16x8x8xf32>
    %66 = vector.shape_cast %65 : vector<16x8x8xf32> to vector<16x64xf32>
    %cst_66 = arith.constant 0.000000e+00 : bf16
    %67 = vector.broadcast %cst_66 : bf16 to vector<2x1x64xbf16>
    %c0_67 = arith.constant 0 : index
    %c0_68 = arith.constant 0 : index
    %c0_69 = arith.constant 0 : index
    %68 = vector.load %arg19[%c0_67, %c0_68, %c0_69] : memref<2x10x64xbf16, #tpu.memory_space<vmem>>, vector<2x1x64xbf16>
    tpu.vector_store %arg19[%c0_67, %c0_68, %c0_69], %67 {strides = array<i32>} : memref<2x10x64xbf16, #tpu.memory_space<vmem>>, vector<2x1x64xbf16>,
    %c0_70 = arith.constant 0 : index
    %c9 = arith.constant 9 : index
    %c0_71 = arith.constant 0 : index
    %69 = vector.load %arg19[%c0_70, %c9, %c0_71] : memref<2x10x64xbf16, #tpu.memory_space<vmem>>, vector<2x1x64xbf16>
    tpu.vector_store %arg19[%c0_70, %c9, %c0_71], %67 {strides = array<i32>} : memref<2x10x64xbf16, #tpu.memory_space<vmem>>, vector<2x1x64xbf16>,
    %70 = vector.shape_cast %66 : vector<16x64xf32> to vector<2x8x64xf32>
    %71 = arith.truncf %70 : vector<2x8x64xf32> to vector<2x8x64xbf16>
    %c0_72 = arith.constant 0 : index
    %c1_73 = arith.constant 1 : index
    %c0_74 = arith.constant 0 : index
    %72 = vector.load %arg19[%c0_72, %c1_73, %c0_74] : memref<2x10x64xbf16, #tpu.memory_space<vmem>>, vector<2x8x64xbf16>
    tpu.vector_store %arg19[%c0_72, %c1_73, %c0_74], %71 {strides = array<i32>} : memref<2x10x64xbf16, #tpu.memory_space<vmem>>, vector<2x8x64xbf16>,
    %c0_75 = arith.constant 0 : index
    %c0_76 = arith.constant 0 : index
    %c0_77 = arith.constant 0 : index
    %73 = vector.load %arg19[%c0_75, %c0_76, %c0_77] : memref<2x10x64xbf16, #tpu.memory_space<vmem>>, vector<2x8x64xbf16>
    %74 = vector.shape_cast %73 : vector<2x8x64xbf16> to vector<16x64xbf16>
    %c0_78 = arith.constant 0 : index
    %c0_79 = arith.constant 0 : index
    %75 = vector.load %arg10[%c0_78, %c0_79] : memref<64x128xbf16, #tpu.memory_space<vmem>>, vector<64x128xbf16>
    %cst_80 = arith.constant dense<0.000000e+00> : vector<16x128xf32>
    %76 = tpu.matmul %74, %75, %cst_80 {dimension_numbers = #tpu.dot_dimension_numbers<[1], [0], [0], [1], [0, 0, 1, 1], [], []>} : vector<16x64xbf16>, vector<64x128xbf16>, vector<16x128xf32> -> vector<16x128xf32>
    %c0_81 = arith.constant 0 : index
    %c1_82 = arith.constant 1 : index
    %c0_83 = arith.constant 0 : index
    %77 = vector.load %arg19[%c0_81, %c1_82, %c0_83] : memref<2x10x64xbf16, #tpu.memory_space<vmem>>, vector<2x8x64xbf16>
    %78 = vector.shape_cast %77 : vector<2x8x64xbf16> to vector<16x64xbf16>
    %c0_84 = arith.constant 0 : index
    %c0_85 = arith.constant 0 : index
    %79 = vector.load %arg11[%c0_84, %c0_85] : memref<64x128xbf16, #tpu.memory_space<vmem>>, vector<64x128xbf16>
    %cst_86 = arith.constant dense<0.000000e+00> : vector<16x128xf32>
    %80 = tpu.matmul %78, %79, %cst_86 {dimension_numbers = #tpu.dot_dimension_numbers<[1], [0], [0], [1], [0, 0, 1, 1], [], []>} : vector<16x64xbf16>, vector<64x128xbf16>, vector<16x128xf32> -> vector<16x128xf32>
    %81 = arith.addf %76, %80 : vector<16x128xf32>
    %c0_87 = arith.constant 0 : index
    %c2_88 = arith.constant 2 : index
    %c0_89 = arith.constant 0 : index
    %82 = vector.load %arg19[%c0_87, %c2_88, %c0_89] : memref<2x10x64xbf16, #tpu.memory_space<vmem>>, vector<2x8x64xbf16>
    %83 = vector.shape_cast %82 : vector<2x8x64xbf16> to vector<16x64xbf16>
    %c0_90 = arith.constant 0 : index
    %c0_91 = arith.constant 0 : index
    %84 = vector.load %arg12[%c0_90, %c0_91] : memref<64x128xbf16, #tpu.memory_space<vmem>>, vector<64x128xbf16>
    %cst_92 = arith.constant dense<0.000000e+00> : vector<16x128xf32>
    %85 = tpu.matmul %83, %84, %cst_92 {dimension_numbers = #tpu.dot_dimension_numbers<[1], [0], [0], [1], [0, 0, 1, 1], [], []>} : vector<16x64xbf16>, vector<64x128xbf16>, vector<16x128xf32> -> vector<16x128xf32>
    %86 = arith.addf %81, %85 : vector<16x128xf32>
    %c0_93 = arith.constant 0 : index
    %c0_94 = arith.constant 0 : index
    %87 = vector.load %arg13[%c0_93, %c0_94] : memref<1x128xf32, #tpu.memory_space<vmem>>, vector<1x128xf32>
    %88 = vector.broadcast %87 : vector<1x128xf32> to vector<16x128xf32>
    %89 = arith.addf %86, %88 : vector<16x128xf32>
    %cst_95 = arith.constant 0.000000e+00 : f32
    %90 = vector.broadcast %cst_95 : f32 to vector<16x128xf32>
    %91 = arith.maximumf %89, %90 : vector<16x128xf32>
    %92 = vector.shape_cast %91 : vector<16x128xf32> to vector<2x8x128xf32>
    %c0_96 = arith.constant 0 : index
    %c0_97 = arith.constant 0 : index
    %c0_98 = arith.constant 0 : index
    %93 = vector.load %arg16[%c0_96, %c0_97, %c0_98] : memref<2x8x128xf32, #tpu.memory_space<vmem>>, vector<2x8x128xf32>
    tpu.vector_store %arg16[%c0_96, %c0_97, %c0_98], %92 {strides = array<i32>} : memref<2x8x128xf32, #tpu.memory_space<vmem>>, vector<2x8x128xf32>,
    return
  }
  func.func @transform_0(%arg0: i32) -> (i32, i32, i32) {
    %c0_i32 = arith.constant 0 : i32
    %c0_i32_0 = arith.constant 0 : i32
    %c0_i32_1 = arith.constant 0 : i32
    return %arg0, %c0_i32, %c0_i32_0 : i32, i32, i32
  }
  func.func @transform_1(%arg0: i32) -> (i32, i32) {
    %c0_i32 = arith.constant 0 : i32
    %c0_i32_0 = arith.constant 0 : i32
    %c0_i32_1 = arith.constant 0 : i32
    return %c0_i32, %c0_i32_0 : i32, i32
  }
  func.func @transform_2(%arg0: i32) -> (i32, i32) {
    %c0_i32 = arith.constant 0 : i32
    %c0_i32_0 = arith.constant 0 : i32
    %c0_i32_1 = arith.constant 0 : i32
    return %c0_i32, %c0_i32_0 : i32, i32
  }
  func.func @transform_3(%arg0: i32) -> (i32, i32) {
    %c0_i32 = arith.constant 0 : i32
    %c0_i32_0 = arith.constant 0 : i32
    %c0_i32_1 = arith.constant 0 : i32
    return %c0_i32, %c0_i32_0 : i32, i32
  }
  func.func @transform_4(%arg0: i32) -> (i32, i32) {
    %c0_i32 = arith.constant 0 : i32
    %c0_i32_0 = arith.constant 0 : i32
    %c0_i32_1 = arith.constant 0 : i32
    return %c0_i32, %c0_i32_0 : i32, i32
  }
  func.func @transform_5(%arg0: i32) -> (i32, i32) {
    %c0_i32 = arith.constant 0 : i32
    %c0_i32_0 = arith.constant 0 : i32
    %c0_i32_1 = arith.constant 0 : i32
    return %c0_i32, %c0_i32_0 : i32, i32
  }
  func.func @transform_6(%arg0: i32) -> (i32, i32) {
    %c0_i32 = arith.constant 0 : i32
    %c0_i32_0 = arith.constant 0 : i32
    %c0_i32_1 = arith.constant 0 : i32
    return %c0_i32, %c0_i32_0 : i32, i32
  }
  func.func @transform_7(%arg0: i32) -> (i32, i32) {
    %c0_i32 = arith.constant 0 : i32
    %c0_i32_0 = arith.constant 0 : i32
    %c0_i32_1 = arith.constant 0 : i32
    return %c0_i32, %c0_i32_0 : i32, i32
  }
  func.func @transform_8(%arg0: i32) -> (i32, i32) {
    %c0_i32 = arith.constant 0 : i32
    %c0_i32_0 = arith.constant 0 : i32
    %c0_i32_1 = arith.constant 0 : i32
    return %c0_i32, %c0_i32_0 : i32, i32
  }
  func.func @transform_9(%arg0: i32) -> (i32, i32) {
    %c0_i32 = arith.constant 0 : i32
    %c0_i32_0 = arith.constant 0 : i32
    %c0_i32_1 = arith.constant 0 : i32
    return %c0_i32, %c0_i32_0 : i32, i32
  }
  func.func @transform_10(%arg0: i32) -> (i32, i32) {
    %c0_i32 = arith.constant 0 : i32
    %c0_i32_0 = arith.constant 0 : i32
    %c0_i32_1 = arith.constant 0 : i32
    return %c0_i32, %c0_i32_0 : i32, i32
  }
  func.func @transform_11(%arg0: i32) -> (i32, i32) {
    %c0_i32 = arith.constant 0 : i32
    %c0_i32_0 = arith.constant 0 : i32
    %c0_i32_1 = arith.constant 0 : i32
    return %c0_i32, %c0_i32_0 : i32, i32
  }
  func.func @transform_12(%arg0: i32) -> (i32, i32) {
    %c0_i32 = arith.constant 0 : i32
    %c0_i32_0 = arith.constant 0 : i32
    %c0_i32_1 = arith.constant 0 : i32
    return %c0_i32, %c0_i32_0 : i32, i32
  }
  func.func @transform_13(%arg0: i32) -> (i32, i32, i32) {
    %c0_i32 = arith.constant 0 : i32
    %c0_i32_0 = arith.constant 0 : i32
    %c0_i32_1 = arith.constant 0 : i32
    return %arg0, %c0_i32, %c0_i32_0 : i32, i32, i32
  }
  func.func @transform_14(%arg0: i32) -> (i32, i32, i32) {
    %c0_i32 = arith.constant 0 : i32
    %c0_i32_0 = arith.constant 0 : i32
    %c0_i32_1 = arith.constant 0 : i32
    return %arg0, %c0_i32, %c0_i32_0 : i32, i32, i32
  }
  func.func @transform_15(%arg0: i32) -> (i32, i32, i32) {
    %c0_i32 = arith.constant 0 : i32
    %c0_i32_0 = arith.constant 0 : i32
    %c0_i32_1 = arith.constant 0 : i32
    return %arg0, %c0_i32, %c0_i32_0 : i32, i32, i32
  }
}

</mosaic_0001>

<bundles_post_ra>
// kernel: fwd.1
= control target key start
LH: loop header
LB: loop body
LE: loop exit
PB: predicated region body
PF: predicated region fallthrough
CT: control target
= control target key end

     0   :  { %vm53_vm0 = vsmask.f32 256  ;;  %vm52_vm1 = vcmask 516096   ;;  %v55_v2 = vld [vmem:[#allocation2] sm:$0x1]  ;;  %v6240_v8 = vmov 0  ;;  %s6178_s2 = inlined_call_operand.vmem [shape: bf16[64,128], index: 2, kind: input, shape index: {}]   ;;  %s6179_s0 = inlined_call_operand.vmem [shape: f32[2,16,64], index: 0, kind: input, shape index: {}]   ;;  %s6180_s1 = inlined_call_operand.vmem [shape: bf16[64,128], index: 1, kind: input, shape index: {}]   ;;  %s6181_s3 = inlined_call_operand.vmem [shape: bf16[64,128], index: 3, kind: input, shape index: {}]   ;;  %s6182_s6 = inlined_call_operand.vmem [shape: bf16[128,128], index: 6, kind: input, shape index: {}]   ;;  %s6183_s5 = inlined_call_operand.vmem [shape: bf16[128,128], index: 5, kind: input, shape index: {}]   ;;  %s6184_s7 = inlined_call_operand.vmem [shape: bf16[128,128], index: 7, kind: input, shape index: {}]   ;;  %s6185_s4 = inlined_call_operand.vmem [shape: f32[1,128], index: 4, kind: input, shape index: {}]   ;;  %s6186_s13 = inlined_call_operand.vmem [shape: f32[2,16,128], index: 13, kind: output, shape index: {0}]   ;;  %s6187_s8 = inlined_call_operand.vmem [shape: f32[1,128], index: 8, kind: input, shape index: {}]   ;;  %s6188_s14 = inlined_call_operand.vmem [shape: f32[2,16,128], index: 14, kind: output, shape index: {1}]   ;;  %s6189_s10 = inlined_call_operand.vmem [shape: bf16[64,128], index: 10, kind: input, shape index: {}]   ;;  %s6190_s9 = inlined_call_operand.vmem [shape: bf16[64,128], index: 9, kind: input, shape index: {}]   ;;  %s6191_s11 = inlined_call_operand.vmem [shape: bf16[64,128], index: 11, kind: input, shape index: {}]   ;;  %s6192_s12 = inlined_call_operand.vmem [shape: f32[1,128], index: 12, kind: input, shape index: {}]   ;;  %s6193_s15 = inlined_call_operand.vmem [shape: f32[2,8,128], index: 15, kind: output, shape index: {2}]  }
   0x1   :  { %v4040_v0 = vld [vmem:[%s6178_s2] sm:$0xff]   ;;  %v4041_v1 = vld [vmem:[%s6178_s2 + $0x8] sm:$0xff]   ;;  %v4042_v3 = vld [vmem:[%s6178_s2 + $0x10] sm:$0xff]   ;;  %vm61_vm2 = vsmask.f32 7938  ;;  %v6243_v16 = vmov 0 }
   0x2   :  { %3841 = vmatprep.subr.bf16.mxu0 %v4040_v0  ;;  %v48_v4 = vld [vmem:[%s6179_s0] sm:$0xff]  ;;  %v49_v5 = vld [vmem:[%s6179_s0 + $0x8] sm:$0xff]  ;;  %v50_v6 = vld [vmem:[%s6179_s0 + $0x10] sm:$0xff]  ;;  %vm81_vm5 = vsmask.f32 4368  ;;  %vm123_vm6 = vcmask 519168  }
   0x3   :  { %3842 = vmatpush3.bf16.msra.mxu0 %v4040_v0  ;;  %v51_v7 = vld [vmem:[%s6179_s0 + $0x18] sm:$0xff]  ;;  %vm4212_vm3 = vmand %vm52_vm1, %vm53_vm0  ;;  %v58_v9 = vld [vmem:[#allocation2 + $0xc] sm:$0x1]  ;;  %v3768_v10 = vpack.c.bf16 %v48_v4, %v48_v4  ;;  %v3769_v11 = vpack.c.bf16 %v49_v5, %v49_v5  ;;  %v3770_v12 = vpack.c.bf16 %v50_v6, %v50_v6  ;;  %v6248_v42 = vmov 0  ;;  %s4094_s18 = smov 112   ;;  %s4098_s0 = smov 48  }
   0x4   :  { %3843 = vmatprep.subr.bf16.mxu0 %v4041_v1  ;;  %v6241_v8 = vsel %vm4212_vm3, 4294967295, %v6240_v8  ;;  %v4043_v13 = vld [vmem:[%s6178_s2 + $0x18] sm:$0xff]   ;;  %v56_v14 = vsel %vm4212_vm3, 0, %v55_v2  ;;  %v59_v15 = vsel %vm4212_vm3, 0, %v58_v9  ;;  %vm4225_vm4 = vmand %vm52_vm1, %vm61_vm2  ;;  %v63_v17 = vld [vmem:[#allocation2 + $0x8] sm:$0x1]  ;;  %v3771_v18 = vpack.c.bf16 %v51_v7, %v51_v7 }
   0x5   :  { %6242 = vst [vmem:[#allocation5_spill] sm:$0xff] %v6241_v8  ;;  %v6244_v16 = vsel %vm4225_vm4, 4294967295, %v6243_v16  ;;  %57 = vst [vmem:[#allocation2] sm:$0x1] %v56_v14  ;;  %v64_v19 = vsel %vm4225_vm4, 0, %v63_v17  ;;  %v84_v20 = vshrl.u32 %v3768_v10, 16 }
   0x6   :  { %6245 = vst [vmem:[#allocation6_spill] sm:$0xff] %v6244_v16  ;;  %60 = vst [vmem:[#allocation2 + $0xc] sm:$0x1] %v59_v15  ;;  %v87_v21 = vshll.u32 %v3768_v10, 16  ;;  %v92_v22 = vshrl.u32 %v3769_v11, 16  ;;  %v95_v23 = vshll.u32 %v3769_v11, 16 }
   0x7   :  { %3844 = vmatpush3.bf16.msra.mxu0 %v4041_v1  ;;  %65 = vst [vmem:[#allocation2 + $0x8] sm:$0x1] %v64_v19  ;;  %v101_v24 = vshrl.u32 %v3770_v12, 16  ;;  %v104_v25 = vshll.u32 %v3770_v12, 16  ;;  %v109_v26 = vshrl.u32 %v3771_v18, 16  ;;  %v86_v27 = vrot.slane %v84_v20, 7  ;;  %vm4233_vm7 = vmor %vm53_vm0, %vm81_vm5 }
   0x8   :  { %3845 = vmatprep.subr.bf16.mxu0 %v4042_v3  ;;  %v94_v28 = vrot.slane %v92_v22, 7  ;;  %v112_v29 = vshll.u32 %v3771_v18, 16  ;;  %v66_v33 = vld [vmem:[#allocation2 + $0x14] sm:$0x1]  ;;  %v4240_v38 = vld [vmem:[%s6180_s1] sm:$0xff]   ;;  %vm4244_vm8 = vmand %vm123_vm6, %vm61_vm2  ;;  %v6251_v12 = vmov 0 }
   0x9   :  { %v103_v31 = vrot.slane %v101_v24, 7  ;;  %v111_v32 = vrot.slane %v109_v26, 7  ;;  %v89_v34 = vor.u32 %v87_v21, %v86_v27  ;;  %v90_v35 = vrot.slane %v86_v27, 4  ;;  %s4100_s2 = smov 16   ;;  %s4103_s19 = smov 120  }
   0xa   :  { %v97_v36 = vor.u32 %v95_v23, %v94_v28  ;;  %v99_v37 = vrot.slane %v94_v28, 4  ;;  %v6249_v42 = vsel %vm4244_vm8, 4294967295, %v6248_v42  ;;  %v67_v43 = vsel %vm4225_vm4, 0, %v66_v33  ;;  %s4104_s20 = smov 8   ;;  %s4106_s21 = smov 40  }
   0xb   :  { %3846 = vmatpush3.bf16.msra.mxu0 %v4042_v3  ;;  %v106_v39 = vor.u32 %v104_v25, %v103_v31  ;;  %v107_v40 = vrot.slane %v103_v31, 4  ;;  %v114_v41 = vor.u32 %v112_v29, %v111_v32  ;;  %6250 = vst [vmem:[#allocation7_spill] sm:$0xff] %v6249_v42  ;;  %68 = vst [vmem:[#allocation2 + $0x14] sm:$0x1] %v67_v43  ;;  %v116_v52 = vrot.slane %v111_v32, 4  ;;  %v4047_v43 = vld [vmem:[%s6180_s1 + $0x18] sm:$0xff]  }
   0xc   :  { %3847 = vmatprep.subr.bf16.mxu0 %v4043_v13  ;;  %v98_v44 = vsel %vm4233_vm7, %v90_v35, %v97_v36  ;;  %v125_v46 = vld [vmem:[#allocation2] sm:$0xf]  ;;  %vm154_vm9 = vsmask.f32 3328  ;;  %vm155_vm10 = vsmask.f32 7440 }
   0xd   :  { %v115_v45 = vsel %vm4233_vm7, %v107_v40, %v114_v41  ;;  %129 = vst.msk [vmem:[#allocation2 + $0x4] sm:$0xf] %vm123_vm6, %v98_v44  ;;  %v133_v47 = vld [vmem:[#allocation2 + $0xc] sm:$0xf]  ;;  %v126_v48 = vsel %vm4244_vm8, %v89_v34, %v125_v46  ;;  %vm4279_vm11 = vmor %vm154_vm9, %vm155_vm10  ;;  %vm243_vm12 = vcmask 523264   ;;  %vm394_vm13 = vcmask 1042432  }
   0xe   :  { %v130_v49 = vld [vmem:[#allocation2 + $0x8] sm:$0x1]  ;;  %v134_v50 = vsel %vm4244_vm8, %v106_v39, %v133_v47  ;;  %136 = vst.msk [vmem:[#allocation2 + $0x10] sm:$0xf] %vm123_vm6, %v115_v45  ;;  %127 = vst [vmem:[#allocation2] sm:$0xf] %v126_v48 }
   0xf   :  { %3848 = vmatpush3.bf16.msra.mxu0 %v4043_v13  ;;  %v131_v51 = vsel %vm4212_vm3, %v99_v37, %v130_v49  ;;  %135 = vst [vmem:[#allocation2 + $0xc] sm:$0xf] %v134_v50  ;;  %v6252_v12 = vsel %vm4279_vm11, 4294967295, %v6251_v12  ;;  %v4045_v36 = vld [vmem:[%s6180_s1 + $0x8] sm:$0xff]   ;;  %v4046_v37 = vld [vmem:[%s6180_s1 + $0x10] sm:$0xff]   ;;  %vm395_vm14 = vcmask 1046532  }
  0x10   :  { %3853 = vmatprep.subr.bf16.mxu0 %v4240_v38  ;;  %132 = vst [vmem:[#allocation2 + $0x8] sm:$0x1] %v131_v51  ;;  %6253 = vst [vmem:[#allocation8_spill] sm:$0xff] %v6252_v12  ;;  %v6254_v45 = vmov 0  ;;  %v4049_v46 = vld [vmem:[%s6181_s3] sm:$0xff]   ;;  %v4051_v51 = vld [vmem:[%s6181_s3 + $0x8] sm:$0xff]  }
  0x11   :  { %vm4306_vm15 = vmor %vm394_vm13, %vm395_vm14  ;;  %vm527_vm1 = vcmask 1040384   ;;  %vm1475_vm10 = vcmask 1045509   ;;  %vm1477_vm13 = vcmask 1047559   ;;  %s4107_s22 = smov 56   ;;  %vm3272_vm14 = vcmask 64512  }
  0x12   :  { %v137_v53 = vld [vmem:[#allocation2 + $0x14] sm:$0x1]  ;;  %v6255_v45 = vsel %vm4306_vm15, 4294967295, %v6254_v45  ;;  %vm4340_vm5 = vmand %vm527_vm1, %vm53_vm0  ;;  %vm594_vm0 = vcmask 1043456  }
  0x13   :  { %v138_v55 = vsel %vm4212_vm3, %v116_v52, %v137_v53  ;;  %6256 = vst [vmem:[#allocation9_spill] sm:$0xff] %v6255_v45  ;;  %v4052_v53 = vld [vmem:[%s6181_s3 + $0x10] sm:$0xff]   ;;  %vm535_vm6 = vmand %vm527_vm1, %vm61_vm2  ;;  %vm3275_vm1 = vcmask 130048  }
  0x14   :  { %v4263_v54 = vld [vmem:[#allocation2 + $0x4] sm:$0xf]  ;;  %139 = vst [vmem:[#allocation2 + $0x14] sm:$0x1] %v138_v55  ;;  %vm4392_vm9 = vmand %vm594_vm0, %vm61_vm2  ;;  %vm1471_vm2 = vcmask 1041409   ;;  %vm3284_vm0 = vcmask 326656  }
  0x15   :  { %v167_v56 = vshll.u32 %v4263_v54, 16  ;;  %v171_v57 = vshrl.u32 %v4263_v54, 16  ;;  %v4269_v58 = vld [vmem:[#allocation2 + $0x10] sm:$0xf]  ;;  %v140_v59 = vld [vmem:[#allocation2] sm:$0xf] }
  0x16   :  { %v4271_v60 = vld [vmem:[#allocation2 + $0xc] sm:$0xf]  ;;  %v191_v61 = vshll.u32 %v4269_v58, 16  ;;  %v195_v62 = vshrl.u32 %v4269_v58, 16  ;;  %v158_v0 = vshrl.u32 %v140_v59, 16  ;;  %v161_v1 = vshll.u32 %v140_v59, 16 }
  0x17   :  { %v152_v63 = vld [vmem:[#allocation2 + $0x8] sm:$0x1]  ;;  %v169_v2 = vrot.slane %v167_v56, 5  ;;  %v173_v3 = vrot.slane %v171_v57, 4  ;;  %v182_v5 = vshrl.u32 %v4271_v60, 16  ;;  %v185_v6 = vshll.u32 %v4271_v60, 16 }
  0x18   :  { %v177_v4 = vshll.u32 %v152_v63, 16  ;;  %v160_v7 = vrot.slane %v158_v0, 4  ;;  %v163_v9 = vrot.slane %v161_v1, 5  ;;  %v193_v11 = vrot.slane %v191_v61, 5  ;;  %v388_v40 = vld [vmem:[#allocation2] sm:$0xe] }
  0x19   :  { %v174_v10 = vor.u32 %v173_v3, %v169_v2  ;;  %v184_v14 = vrot.slane %v182_v5, 4  ;;  %v187_v15 = vrot.slane %v185_v6, 5  ;;  %v197_v17 = vrot.slane %v195_v62, 4  ;;  %v4054_v62 = vld [vmem:[%s6182_s6] sm:$0xff]  }
  0x1a   :  { %v179_v13 = vrot.slane %v177_v4, 5  ;;  %v164_v18 = vor.u32 %v163_v9, %v160_v7  ;;  %v3657_v34 = vcombine.low %v140_v59, %v4263_v54  ;;  %v399_v39 = vrot.slane %v4263_v54, 5  ;;  %v389_v54 = vld [vmem:[#allocation2 + $0xc] sm:$0xe]  ;;  %v4053_v59 = vld [vmem:[%s6181_s3 + $0x18] sm:$0xff]   ;;  %3877 = vmatprep.subr.bf16.mxu1 %v4054_v62  ;;  %s4097_s3 = smov 64  }
  0x1b   :  { %v175_v19 = vrot.slane %v174_v10, 4  ;;  %v153_v20 = vld [vmem:[#allocation2 + $0x14] sm:$0x1]  ;;  %v188_v21 = vor.u32 %v187_v15, %v184_v14  ;;  %v198_v22 = vor.u32 %v197_v17, %v193_v11  ;;  %v402_v41 = vrot.slane %v152_v63, 5  ;;  %v532_v0 = vld [vmem:[#allocation3 + $0xc] sm:$0x1]  ;;  %3878 = vmatpush3.bf16.msra.mxu1 %v4054_v62 }
  0x1c   :  { %v165_v23 = vrot.slane %v164_v18, 4  ;;  %v201_v25 = vshll.u32 %v153_v20, 16  ;;  %v401_v44 = vrot.slane %v399_v39, 4  ;;  %v3658_v49 = vcombine.low %v4271_v60, %v4269_v58  ;;  %v539_v4 = vld [vmem:[#allocation3 + $0x14] sm:$0x1]  ;;  %v4056_v10 = vld [vmem:[%s6182_s6 + $0x10] sm:$0xff]  }
  0x1d   :  { %v180_v24 = vsel %vm4279_vm11, %v175_v19, %v179_v13  ;;  %v189_v26 = vrot.slane %v188_v21, 4  ;;  %v199_v27 = vrot.slane %v198_v22, 4  ;;  %v406_v52 = vrot.slane %v4269_v58, 5  ;;  %v536_v6 = vld [vmem:[#allocation3 + $0x8] sm:$0x1]  ;;  %v4055_v7 = vld [vmem:[%s6182_s6 + $0x8] sm:$0xff]  }
  0x1e   :  { %v170_v28 = vsel %vm4279_vm11, %v165_v23, %v169_v2  ;;  %v203_v29 = vrot.slane %v201_v25, 5  ;;  %v403_v48 = vsel %vm4306_vm15, %v401_v44, %v402_v41  ;;  %v409_v55 = vrot.slane %v153_v20, 5  ;;  %v529_v2 = vld [vmem:[#allocation3] sm:$0x1]  ;;  %3879 = vmatprep.subr.bf16.mxu1 %v4055_v7  ;;  %v4058_v13 = vld [vmem:[%s6182_s6 + $0x20] sm:$0xff]   ;;  %v4059_v14 = vld [vmem:[%s6182_s6 + $0x28] sm:$0xff]  }
  0x1f   :  { %v3649_v31 = vcombine.low %v170_v28, %v180_v24  ;;  %v194_v32 = vsel %vm4279_vm11, %v189_v26, %v193_v11  ;;  %v3666_v56 = vrot.slane %v389_v54, 9  ;;  %v408_v57 = vrot.slane %v406_v52, 4  ;;  %3880 = vmatpush3.bf16.msra.mxu1 %v4055_v7  ;;  %v4057_v11 = vld [vmem:[%s6182_s6 + $0x18] sm:$0xff]   ;;  %v4060_v15 = vld [vmem:[%s6182_s6 + $0x30] sm:$0xff]   ;;  %v4373_v18 = vld [vmem:[%s6183_s5] sm:$0xff]  }
  0x20   :  { %v204_v33 = vsel %vm4279_vm11, %v199_v27, %v203_v29  ;;  %v533_v1 = vsel %vm4340_vm5, 0, %v532_v0  ;;  %v530_v3 = vsel %vm4340_vm5, 0, %v529_v2  ;;  %v540_v5 = vsel %vm535_vm6, 0, %v539_v4  ;;  %3881 = vmatprep.subr.bf16.mxu1 %v4056_v10  ;;  %v4061_v17 = vld [vmem:[%s6182_s6 + $0x38] sm:$0xff]   ;;  %v3675_v19 = vld [vmem:[%s6185_s4] ss:$0 sm:$0xff] }
  0x21   :  { %3849 = vmatprep.mubr.msk.bf16.mxu0 %vm243_vm12, %v3649_v31  ;;  %v3650_v35 = vcombine.low %v194_v32, %v204_v33  ;;  %v407_v60 = vsel %vm4306_vm15, %v3666_v56, %v406_v52  ;;  %v410_v58 = vsel %vm4306_vm15, %v408_v57, %v409_v55  ;;  %534 = vst [vmem:[#allocation3 + $0xc] sm:$0x1] %v533_v1  ;;  %531 = vst [vmem:[#allocation3] sm:$0x1] %v530_v3  ;;  %s4099_s4 = smov 32  }
  0x22   :  { %v3668_v61 = vcombine.low %v407_v60, %v410_v58  ;;  %541 = vst [vmem:[#allocation3 + $0x14] sm:$0x1] %v540_v5  ;;  %v537_v9 = vsel %vm535_vm6, 0, %v536_v6  ;;  %vm3281_vm6 = vcmask 261120  }
  0x23   :  { %3850 = vmatmul.mubr.msk.bf16.vlgmr.msra.gmra.mrb[0].mxu0 %vm243_vm12, %v3650_v35  ;;  %538 = vst [vmem:[#allocation3 + $0x8] sm:$0x1] %v537_v9  ;;  %3882 = vmatpush3.bf16.msra.mxu1 %v4056_v10 }
  0x24   :  { %3854 = vmatpush3.bf16.msra.mxu0 %v4240_v38  ;;  %3861 = vmatprep.mubr.msk.bf16.mxu0 %vm243_vm12, %v3657_v34  ;;  %v3665_v38 = vrot.slane %v388_v40, 9 }
  0x25   :  { %3855 = vmatprep.subr.bf16.mxu0 %v4045_v36  ;;  %3883 = vmatprep.subr.bf16.mxu1 %v4057_v11 }
  0x26   :  { %v400_v47 = vsel %vm4306_vm15, %v3665_v38, %v399_v39 }
  0x27   :  { %v3667_v50 = vcombine.low %v400_v47, %v403_v48  ;;  %3884 = vmatpush3.bf16.msra.mxu1 %v4057_v11 }
  0x28   :  { %3856 = vmatpush3.bf16.msra.mxu0 %v4045_v36  ;;  %3885 = vmatprep.subr.bf16.mxu1 %v4058_v13  ;;  %v603_v44 = vld [vmem:[#allocation3 + $0xc] sm:$0xf] }
  0x29   :  { %3857 = vmatprep.subr.bf16.mxu0 %v4046_v37  ;;  %v607_v54 = vld [vmem:[#allocation3 + $0x14] sm:$0x1] }
  0x2b   :  { %3886 = vmatpush3.bf16.msra.mxu1 %v4058_v13 }
  0x2c   :  { %3858 = vmatpush3.bf16.msra.mxu0 %v4046_v37  ;;  %3887 = vmatprep.subr.bf16.mxu1 %v4059_v14 }
  0x2d   :  { %3859 = vmatprep.subr.bf16.mxu0 %v4047_v43 }
  0x2f   :  { %3888 = vmatpush3.bf16.msra.mxu1 %v4059_v14 }
  0x30   :  { %3860 = vmatpush3.bf16.msra.mxu0 %v4047_v43  ;;  %3889 = vmatprep.subr.bf16.mxu1 %v4060_v15 }
  0x31   :  { %3865 = vmatprep.subr.bf16.mxu0 %v4049_v46 }
  0x33   :  { %3862 = vmatmul.mubr.msk.bf16.vlgmr.msra.gmra.mrb[0].mxu0 %vm243_vm12, %v3658_v49  ;;  %3890 = vmatpush3.bf16.msra.mxu1 %v4060_v15 }
  0x34   :  { %3866 = vmatpush3.bf16.msra.mxu0 %v4049_v46  ;;  %3873 = vmatprep.mubr.msk.bf16.mxu0 %vm243_vm12, %v3667_v50  ;;  %v596_v50 = vld [vmem:[#allocation3] sm:$0xf] }
  0x35   :  { %3867 = vmatprep.subr.bf16.mxu0 %v4051_v51  ;;  %3891 = vmatprep.subr.bf16.mxu1 %v4061_v17 }
  0x37   :  { %3892 = vmatpush3.bf16.msra.mxu1 %v4061_v17 }
  0x38   :  { %3868 = vmatpush3.bf16.msra.mxu0 %v4051_v51  ;;  %3897 = vmatprep.subr.bf16.mxu1 %v4373_v18 }
  0x39   :  { %3869 = vmatprep.subr.bf16.mxu0 %v4052_v53 }
  0x3c   :  { %3870 = vmatpush3.bf16.msra.mxu0 %v4052_v53 }
  0x3d   :  { %3871 = vmatprep.subr.bf16.mxu0 %v4053_v59 }
  0x40   :  { %3872 = vmatpush3.bf16.msra.mxu0 %v4053_v59 }
  0x43   :  { %3874 = vmatmul.mubr.msk.bf16.vlgmr.msra.gmra.mrb[0].mxu0 %vm243_vm12, %v3668_v61  ;;  %v600_v61 = vld [vmem:[#allocation3 + $0x8] sm:$0x1] }
 0x116   :  { %v3875_v20 = vpop.f32.mrb[0].mxu0 }
 0x117   :  { %v517_v21 = vadd.f32 %v3875_v20, %v3675_v19  ;;  %v489_v22 = vpop.f32.mrb[1].mxu0 }
 0x118   :  { %v515_v23 = vadd.f32 %v3675_v19, %v489_v22  ;;  %v3876_v24 = vpop.f32.mrb[2].mxu0 }
 0x119   :  { %v521_v25 = vmax.f32 %v517_v21, 0.0  ;;  %v518_v26 = vadd.f32 %v3876_v24, %v3675_v19  ;;  %v492_v27 = vpop.f32.mrb[3].mxu0 }
 0x11a   :  { %v519_v28 = vmax.f32 %v515_v23, 0.0  ;;  %v516_v29 = vadd.f32 %v3675_v19, %v492_v27 }
 0x11b   :  { %525 = vst [vmem:[%s6186_s13 + $0x10] sm:$0xff] %v521_v25  ;;  %v3774_v31 = vpack.c.bf16 %v521_v25, %v521_v25  ;;  %v522_v32 = vmax.f32 %v518_v26, 0.0 }
 0x11c   :  { %523 = vst [vmem:[%s6186_s13] sm:$0xff] %v519_v28  ;;  %v3772_v33 = vpack.c.bf16 %v519_v28, %v519_v28  ;;  %v520_v34 = vmax.f32 %v516_v29, 0.0 }
 0x11d   :  { %v572_v35 = vshrl.u32 %v3774_v31, 16  ;;  %526 = vst [vmem:[%s6186_s13 + $0x18] sm:$0xff] %v522_v32  ;;  %v3775_v36 = vpack.c.bf16 %v522_v32, %v522_v32  ;;  %v575_v41 = vshll.u32 %v3774_v31, 16 }
 0x11e   :  { %v555_v37 = vshrl.u32 %v3772_v33, 16  ;;  %524 = vst [vmem:[%s6186_s13 + $0x8] sm:$0xff] %v520_v34  ;;  %v3773_v39 = vpack.c.bf16 %v520_v34, %v520_v34  ;;  %v558_v47 = vshll.u32 %v3772_v33, 16  ;;  %s4105_s13 = smov 24  }
 0x11f   :  { %v574_v40 = vrot.slane %v572_v35, 7  ;;  %v580_v43 = vshrl.u32 %v3775_v36, 16  ;;  %v583_v52 = vshll.u32 %v3775_v36, 16 }
 0x120   :  { %v557_v46 = vrot.slane %v555_v37, 7  ;;  %v563_v48 = vshrl.u32 %v3773_v39, 16  ;;  %v566_v56 = vshll.u32 %v3773_v39, 16 }
 0x121   :  { %v577_v49 = vor.u32 %v575_v41, %v574_v40  ;;  %v582_v51 = vrot.slane %v580_v43, 7  ;;  %v578_v57 = vrot.slane %v574_v40, 4 }
 0x122   :  { %v560_v53 = vor.u32 %v558_v47, %v557_v46  ;;  %v565_v55 = vrot.slane %v563_v48, 7  ;;  %v561_v62 = vrot.slane %v557_v46, 4 }
 0x123   :  { %v604_v59 = vsel %vm4392_vm9, %v577_v49, %v603_v44  ;;  %v585_v60 = vor.u32 %v583_v52, %v582_v51  ;;  %v587_v58 = vrot.slane %v582_v51, 4 }
 0x124   :  { %605 = vst [vmem:[#allocation3 + $0xc] sm:$0xf] %v604_v59  ;;  %v597_v0 = vsel %vm4392_vm9, %v560_v53, %v596_v50  ;;  %v568_v1 = vor.u32 %v566_v56, %v565_v55  ;;  %v570_v2 = vrot.slane %v565_v55, 4  ;;  %vm3287_vm9 = vcmask 392192  }
 0x125   :  { %598 = vst [vmem:[#allocation3] sm:$0xf] %v597_v0  ;;  %v586_v3 = vsel %vm4233_vm7, %v578_v57, %v585_v60  ;;  %v608_v4 = vsel %vm4340_vm5, %v587_v58, %v607_v54  ;;  %v4064_v57 = vld [vmem:[%s6183_s5 + $0x8] sm:$0xff]   ;;  %v4066_v0 = vld [vmem:[%s6183_s5 + $0x18] sm:$0xff]  }
 0x126   :  { %606 = vst [vmem:[#allocation3 + $0x10] sm:$0xf] %v586_v3  ;;  %609 = vst [vmem:[#allocation3 + $0x14] sm:$0x1] %v608_v4  ;;  %v569_v5 = vsel %vm4233_vm7, %v561_v62, %v568_v1  ;;  %v601_v6 = vsel %vm4340_vm5, %v570_v2, %v600_v61  ;;  %v4065_v62 = vld [vmem:[%s6183_s5 + $0x10] sm:$0xff]   ;;  %v4067_v1 = vld [vmem:[%s6183_s5 + $0x20] sm:$0xff]  }
 0x127   :  { %599 = vst [vmem:[#allocation3 + $0x4] sm:$0xf] %v569_v5  ;;  %602 = vst [vmem:[#allocation3 + $0x8] sm:$0x1] %v601_v6  ;;  %v4069_v2 = vld [vmem:[%s6183_s5 + $0x30] sm:$0xff]   ;;  %v4070_v4 = vld [vmem:[%s6183_s5 + $0x38] sm:$0xff]  }
 0x128   :  { %vm1473_vm7 = vcmask 1043459   ;;  %vm3278_vm5 = vcmask 195584  }
 0x12b   :  { %v4408_v7 = vld [vmem:[#allocation3 + $0xc] sm:$0xf] }
 0x12c   :  { %v610_v9 = vld [vmem:[#allocation3] sm:$0xf]  ;;  %v657_v10 = vshrl.u32 %v4408_v7, 16  ;;  %v660_v11 = vshll.u32 %v4408_v7, 16  ;;  %v911_v38 = vld [vmem:[#allocation3 + $0xc] sm:$0xe] }
 0x12d   :  { %v633_v13 = vshrl.u32 %v610_v9, 16  ;;  %v636_v14 = vshll.u32 %v610_v9, 16  ;;  %v4412_v15 = vld [vmem:[#allocation3 + $0x10] sm:$0xf]  ;;  %v631_v25 = vld [vmem:[#allocation3 + $0x14] sm:$0x1] }
 0x12e   :  { %v4414_v17 = vld [vmem:[#allocation3 + $0x4] sm:$0xf]  ;;  %v4416_v30 = vld [vmem:[#allocation3 + $0x8] sm:$0x1]  ;;  %v659_v19 = vrot.slane %v657_v10, 4  ;;  %v662_v63 = vrot.slane %v660_v11, 5 }
 0x12f   :  { %v635_v20 = vrot.slane %v633_v13, 4  ;;  %v638_v21 = vrot.slane %v636_v14, 5  ;;  %v642_v22 = vshll.u32 %v4414_v17, 16  ;;  %v646_v23 = vshrl.u32 %v4414_v17, 16  ;;  %v910_v6 = vld [vmem:[#allocation3] sm:$0xe] }
 0x130   :  { %v652_v24 = vshll.u32 %v4416_v30, 16  ;;  %v663_v26 = vor.u32 %v662_v63, %v659_v19  ;;  %v666_v27 = vshll.u32 %v4412_v15, 16  ;;  %v670_v32 = vshrl.u32 %v4412_v15, 16  ;;  %v4072_v10 = vld [vmem:[%s6184_s7] sm:$0xff]   ;;  %v4074_v63 = vld [vmem:[%s6184_s7 + $0x10] sm:$0xff]  }
 0x131   :  { %v639_v28 = vor.u32 %v638_v21, %v635_v20  ;;  %v644_v29 = vrot.slane %v642_v22, 5  ;;  %v648_v31 = vrot.slane %v646_v23, 4  ;;  %v676_v37 = vshll.u32 %v631_v25, 16  ;;  %v4077_v20 = vld [vmem:[%s6184_s7 + $0x28] sm:$0xff]   ;;  %v4078_v21 = vld [vmem:[%s6184_s7 + $0x30] sm:$0xff]   ;;  %v4079_v22 = vld [vmem:[%s6184_s7 + $0x38] sm:$0xff]  }
 0x132   :  { %v668_v33 = vrot.slane %v666_v27, 5  ;;  %v672_v36 = vrot.slane %v670_v32, 4  ;;  %v654_v40 = vrot.slane %v652_v24, 5  ;;  %v664_v41 = vrot.slane %v663_v26, 4 }
 0x133   :  { %v640_v34 = vrot.slane %v639_v28, 4  ;;  %v649_v35 = vor.u32 %v648_v31, %v644_v29  ;;  %v925_v44 = vrot.slane %v4412_v15, 5  ;;  %v678_v49 = vrot.slane %v676_v37, 5  ;;  %v3712_v28 = vld [vmem:[%s6187_s8] ss:$0 sm:$0xff] }
 0x134   :  { %v673_v43 = vor.u32 %v672_v36, %v668_v33  ;;  %v928_v51 = vrot.slane %v631_v25, 5  ;;  %v3701_v52 = vrot.slane %v911_v38, 9  ;;  %v669_v54 = vsel %vm4279_vm11, %v664_v41, %v668_v33 }
 0x135   :  { %v650_v39 = vrot.slane %v649_v35, 4  ;;  %v645_v46 = vsel %vm4279_vm11, %v640_v34, %v644_v29  ;;  %v927_v53 = vrot.slane %v925_v44, 4  ;;  %v3690_v58 = vcombine.low %v610_v9, %v4414_v17 }
 0x136   :  { %v674_v48 = vrot.slane %v673_v43, 4  ;;  %v926_v59 = vsel %vm4306_vm15, %v3701_v52, %v925_v44  ;;  %v918_v3 = vrot.slane %v4414_v17, 5  ;;  %v921_v9 = vrot.slane %v4416_v30, 5  ;;  %v4073_v30 = vld [vmem:[%s6184_s7 + $0x8] sm:$0xff]  }
 0x137   :  { %v655_v47 = vsel %vm4279_vm11, %v650_v39, %v654_v40  ;;  %v929_v60 = vsel %vm4306_vm15, %v927_v53, %v928_v51  ;;  %v3700_v11 = vrot.slane %v910_v6, 9  ;;  %v3691_v14 = vcombine.low %v4408_v7, %v4412_v15  ;;  %v4075_v7 = vld [vmem:[%s6184_s7 + $0x18] sm:$0xff]   ;;  %v4076_v15 = vld [vmem:[%s6184_s7 + $0x20] sm:$0xff]  }
 0x138   :  { %v3680_v50 = vcombine.low %v645_v46, %v655_v47  ;;  %v679_v55 = vsel %vm4279_vm11, %v674_v48, %v678_v49  ;;  %v3703_v61 = vcombine.low %v926_v59, %v929_v60  ;;  %v920_v5 = vrot.slane %v918_v3, 4 }
 0x139   :  { %v3681_v56 = vcombine.low %v669_v54, %v679_v55  ;;  %v919_v17 = vsel %vm4306_vm15, %v3700_v11, %v918_v3  ;;  %v4093_v23 = vmov 1983009808   ;;  %v1082_v25 = vlaneseq }
 0x13a   :  { %3893 = vmatprep.mubr.bf16.mxu1 %v3680_v50  ;;  %v922_v13 = vsel %vm4306_vm15, %v920_v5, %v921_v9  ;;  %v1080_v24 = vunpack.c.l.s4 %v4093_v23 }
 0x13b   :  { %3894 = vmatmul.mubr.bf16.vlgmr.msra.gmra.mrb[0].mxu1 %v3681_v56  ;;  %v3702_v19 = vcombine.low %v919_v17, %v922_v13  ;;  %v4491_v27 = vshrl.u32 %v1082_v25, 7 }
 0x13c   :  { %3898 = vmatpush3.bf16.msra.mxu1 %v4373_v18  ;;  %3913 = vmatprep.mubr.bf16.mxu1 %v3690_v58  ;;  %v4068_v18 = vld [vmem:[%s6183_s5 + $0x28] sm:$0xff]   ;;  %v1081_v26 = vunpack.c.0.s8 %v1080_v24  ;;  %s4095_s5 = smov 96  }
 0x13d   :  { %3899 = vmatprep.subr.bf16.mxu1 %v4064_v57 }
 0x13e   :  { %v4497_v32 = vsub.s32 %v1081_v26, %v4491_v27 }
 0x140   :  { %3900 = vmatpush3.bf16.msra.mxu1 %v4064_v57  ;;  %6261 = vst [vmem:[#allocation10_spill] sm:$0xff] %v4497_v32 }
 0x141   :  { %3901 = vmatprep.subr.bf16.mxu1 %v4065_v62 }
 0x144   :  { %3902 = vmatpush3.bf16.msra.mxu1 %v4065_v62 }
 0x145   :  { %3903 = vmatprep.subr.bf16.mxu1 %v4066_v0 }
 0x148   :  { %3904 = vmatpush3.bf16.msra.mxu1 %v4066_v0 }
 0x149   :  { %3905 = vmatprep.subr.bf16.mxu1 %v4067_v1 }
 0x14c   :  { %3906 = vmatpush3.bf16.msra.mxu1 %v4067_v1 }
 0x14d   :  { %3907 = vmatprep.subr.bf16.mxu1 %v4068_v18 }
 0x150   :  { %3908 = vmatpush3.bf16.msra.mxu1 %v4068_v18 }
 0x151   :  { %3909 = vmatprep.subr.bf16.mxu1 %v4069_v2 }
 0x154   :  { %3910 = vmatpush3.bf16.msra.mxu1 %v4069_v2 }
 0x155   :  { %3911 = vmatprep.subr.bf16.mxu1 %v4070_v4 }
 0x158   :  { %3912 = vmatpush3.bf16.msra.mxu1 %v4070_v4  ;;  %v6194_v4 = vmov 0.0  }
 0x159   :  { %3917 = vmatprep.subr.bf16.mxu1 %v4072_v10  ;;  %3937 = vmatprep.subr.bf16.mxu0 %v6194_v4 }
 0x15b   :  { %3914 = vmatmul.mubr.bf16.vlgmr.msra.gmra.mrb[0].mxu1 %v3691_v14 }
 0x15c   :  { %3918 = vmatpush3.bf16.msra.mxu1 %v4072_v10  ;;  %3933 = vmatprep.mubr.bf16.mxu1 %v3702_v19 }
 0x15d   :  { %3919 = vmatprep.subr.bf16.mxu1 %v4073_v30 }
 0x160   :  { %3920 = vmatpush3.bf16.msra.mxu1 %v4073_v30 }
 0x161   :  { %3921 = vmatprep.subr.bf16.mxu1 %v4074_v63 }
 0x164   :  { %3922 = vmatpush3.bf16.msra.mxu1 %v4074_v63 }
 0x165   :  { %3923 = vmatprep.subr.bf16.mxu1 %v4075_v7 }
 0x168   :  { %3924 = vmatpush3.bf16.msra.mxu1 %v4075_v7 }
 0x169   :  { %3925 = vmatprep.subr.bf16.mxu1 %v4076_v15 }
 0x16c   :  { %3926 = vmatpush3.bf16.msra.mxu1 %v4076_v15 }
 0x16d   :  { %3927 = vmatprep.subr.bf16.mxu1 %v4077_v20 }
 0x170   :  { %3928 = vmatpush3.bf16.msra.mxu1 %v4077_v20 }
 0x171   :  { %3929 = vmatprep.subr.bf16.mxu1 %v4078_v21 }
 0x174   :  { %3930 = vmatpush3.bf16.msra.mxu1 %v4078_v21 }
 0x175   :  { %3931 = vmatprep.subr.bf16.mxu1 %v4079_v22 }
 0x178   :  { %3932 = vmatpush3.bf16.msra.mxu1 %v4079_v22 }
 0x17b   :  { %3934 = vmatmul.mubr.bf16.vlgmr.msra.gmra.mrb[0].mxu1 %v3703_v61 }
 0x24e   :  { %v3935_v29 = vpop.f32.mrb[0].mxu1 }
 0x24f   :  { %v1064_v31 = vadd.f32 %v3935_v29, %v3712_v28  ;;  %v1036_v33 = vpop.f32.mrb[1].mxu1 }
 0x250   :  { %v1062_v34 = vadd.f32 %v3712_v28, %v1036_v33  ;;  %v3936_v35 = vpop.f32.mrb[2].mxu1 }
 0x251   :  { %v1068_v36 = vmax.f32 %v1064_v31, 0.0  ;;  %v1065_v37 = vadd.f32 %v3936_v35, %v3712_v28  ;;  %v1039_v39 = vpop.f32.mrb[3].mxu1 }
 0x252   :  { %v1066_v40 = vmax.f32 %v1062_v34, 0.0  ;;  %v1063_v41 = vadd.f32 %v3712_v28, %v1039_v39 }
 0x253   :  { %1072 = vst [vmem:[%s6188_s14 + $0x10] sm:$0xff] %v1068_v36  ;;  %v1112_v43 = vcombine.high %v1068_v36, %v1068_v36  ;;  %v1119_v38 = vrot.slane %v1068_v36, %v4497_v32  ;;  %v4503_v44 = vmax.f32 %v1065_v37, 0.0 }
 0x254   :  { %1070 = vst [vmem:[%s6188_s14] sm:$0xff] %v1066_v40  ;;  %v4508_v46 = vmax.f32 %v1063_v41, 0.0  ;;  %v1078_v52 = vcombine.high %v1066_v40, %v1066_v40  ;;  %v4542_v53 = vrot.slane %v1066_v40, %v4497_v32 }
 0x255   :  { %v1126_v47 = vrot.slane %v1112_v43, %v4497_v32  ;;  %v3721_v48 = vrot.slane %v1119_v38, 9  ;;  %1073 = vst [vmem:[%s6188_s14 + $0x18] sm:$0xff] %v4503_v44  ;;  %v1127_v60 = vcombine.high %v1119_v38, %v1119_v38  ;;  %v1129_v18 = vcombine.high %v4503_v44, %v4503_v44 }
 0x256   :  { %1071 = vst [vmem:[%s6188_s14 + $0x8] sm:$0xff] %v4508_v46  ;;  %s4096_s14 = smov 80   ;;  %v4547_v54 = vrot.slane %v1078_v52, %v4497_v32  ;;  %v3713_v55 = vrot.slane %v4542_v53, 9  ;;  %v4603_v2 = vrot.slane %v4503_v44, %v4497_v32  ;;  %v1102_v11 = vrot.slane %v4508_v46, %v4497_v32 }
 0x257   :  { %v3723_v49 = vrot.slane %v1126_v47, 9  ;;  %v4519_v50 = vmax.f32 %v1119_v38, %v3721_v48  ;;  %v1128_v58 = vcombine.high %v1126_v47, %v1126_v47  ;;  %v3722_v61 = vrot.slane %v1127_v60, 9 }
 0x258   :  { %v3715_v56 = vrot.slane %v4547_v54, 9  ;;  %v4558_v57 = vmax.f32 %v4542_v53, %v3713_v55  ;;  %v4608_v3 = vrot.slane %v1129_v18, %v4497_v32  ;;  %v3725_v5 = vrot.slane %v4603_v2, 9 }
 0x259   :  { %v4521_v51 = vmax.f32 %v1126_v47, %v3723_v49  ;;  %1258 = vrot.lane.b32.xlu0 %v4519_v50, %s4094_s18  ;;  %v3724_v62 = vrot.slane %v1128_v58, 9  ;;  %v4591_v0 = vmax.f32 %v1127_v60, %v3722_v61  ;;  %v1093_v13 = vcombine.high %v4542_v53, %v4542_v53 }
 0x25a   :  { %v4563_v59 = vmax.f32 %v4547_v54, %v3715_v56  ;;  %v3727_v6 = vrot.slane %v4608_v3, 9  ;;  %v4620_v9 = vmax.f32 %v4603_v2, %v3725_v5  ;;  %v1110_v14 = vcombine.high %v1102_v11, %v1102_v11 }
 0x25b   :  { %1262 = vrot.lane.b32.xlu1 %v4521_v51, %s4094_s18  ;;  %v4595_v1 = vmax.f32 %v1128_v58, %v3724_v62  ;;  %v3714_v17 = vrot.slane %v1093_v13, 9  ;;  %v1094_v30 = vcombine.high %v4547_v54, %v4547_v54  ;;  %v1095_v15 = vcombine.high %v4508_v46, %v4508_v46 }
 0x25c   :  { %v4625_v10 = vmax.f32 %v4608_v3, %v3727_v6  ;;  %v3718_v19 = vrot.slane %v1110_v14, 9  ;;  %v3717_v25 = vrot.slane %v1102_v11, 9  ;;  %v1144_v56 = vcombine.high %v4603_v2, %v4603_v2 }
 0x25d   :  { %1290 = vrot.lane.b32.xlu0 %v4519_v50, %s4095_s5  ;;  %v4675_v63 = vmax.f32 %v1093_v13, %v3714_v17  ;;  %v3716_v7 = vrot.slane %v1094_v30, 9  ;;  %v4692_v23 = vrot.slane %v1095_v15, %v4497_v32  ;;  %v1145_v58 = vcombine.high %v4608_v3, %v4608_v3 }
 0x25e   :  { %6262 = vst [vmem:[#allocation11_spill] sm:$0xff] %v4625_v10  ;;  %v4681_v20 = vmax.f32 %v1110_v14, %v3718_v19  ;;  %v4707_v31 = vmax.f32 %v1102_v11, %v3717_v25  ;;  %v3726_v62 = vrot.slane %v1144_v56, 9 }
 0x25f   :  { %1294 = vrot.lane.b32.xlu1 %v4521_v51, %s4095_s5  ;;  %v4689_v22 = vmax.f32 %v1094_v30, %v3716_v7  ;;  %v3719_v28 = vrot.slane %v4692_v23, 9  ;;  %v3728_v2 = vrot.slane %v1145_v58, 9 }
 0x260   :  { %v4804_v6 = vmax.f32 %v1144_v56, %v3726_v62 }
 0x261   :  { %1322 = vrot.lane.b32.xlu0 %v4519_v50, %s4096_s14  ;;  %v4714_v34 = vmax.f32 %v4692_v23, %v3719_v28  ;;  %v4810_v11 = vmax.f32 %v1145_v58, %v3728_v2  ;;  %v1111_v58 = vcombine.high %v4692_v23, %v4692_v23 }
 0x263   :  { %1326 = vrot.lane.b32.xlu1 %v4521_v51, %s4096_s14  ;;  %6263 = vst [vmem:[#allocation12_spill] sm:$0xff] %v4714_v34  ;;  %6269 = vst [vmem:[#allocation18_spill] sm:$0xff] %v4810_v11  ;;  %v3720_v4 = vrot.slane %v1111_v58, 9 }
 0x265   :  { %1354 = vrot.lane.b32.xlu0 %v4519_v50, %s4097_s3  ;;  %v4862_v23 = vmax.f32 %v1111_v58, %v3720_v4  ;;  %v1502_v4 = vrot.slane %v4591_v0, 7 }
 0x267   :  { %1358 = vrot.lane.b32.xlu1 %v4521_v51, %s4097_s3 }
 0x269   :  { %1386 = vrot.lane.b32.xlu0 %v4519_v50, %s4098_s0 }
 0x26b   :  { %1390 = vrot.lane.b32.xlu1 %v4521_v51, %s4098_s0 }
 0x26d   :  { %1418 = vrot.lane.b32.xlu0 %v4519_v50, %s4099_s4 }
 0x26f   :  { %1422 = vrot.lane.b32.xlu1 %v4521_v51, %s4099_s4 }
 0x271   :  { %1450 = vrot.lane.b32.xlu0 %v4519_v50, %s4100_s2 }
 0x273   :  { %1454 = vrot.lane.b32.xlu1 %v4521_v51, %s4100_s2 }
 0x275   :  { %1242 = vrot.lane.b32.xlu0 %v4558_v57, %s4094_s18 }
 0x277   :  { %1246 = vrot.lane.b32.xlu1 %v4563_v59, %s4094_s18 }
 0x279   :  { %1274 = vrot.lane.b32.xlu0 %v4558_v57, %s4095_s5 }
 0x27b   :  { %1278 = vrot.lane.b32.xlu1 %v4563_v59, %s4095_s5 }
 0x27d   :  { %1306 = vrot.lane.b32.xlu0 %v4558_v57, %s4096_s14 }
 0x27f   :  { %1310 = vrot.lane.b32.xlu1 %v4563_v59, %s4096_s14 }
 0x281   :  { %1338 = vrot.lane.b32.xlu0 %v4558_v57, %s4097_s3 }
 0x283   :  { %1342 = vrot.lane.b32.xlu1 %v4563_v59, %s4097_s3 }
 0x285   :  { %1370 = vrot.lane.b32.xlu0 %v4558_v57, %s4098_s0 }
 0x287   :  { %1374 = vrot.lane.b32.xlu1 %v4563_v59, %s4098_s0 }
 0x289   :  { %1402 = vrot.lane.b32.xlu0 %v4558_v57, %s4099_s4 }
 0x28b   :  { %1406 = vrot.lane.b32.xlu1 %v4563_v59, %s4099_s4 }
 0x28d   :  { %1434 = vrot.lane.b32.xlu0 %v4558_v57, %s4100_s2 }
 0x28f   :  { %1438 = vrot.lane.b32.xlu1 %v4563_v59, %s4100_s2 }
 0x291   :  { %1260 = vrot.lane.b32.xlu0 %v4591_v0, %s4094_s18 }
 0x293   :  { %1264 = vrot.lane.b32.xlu1 %v4595_v1, %s4094_s18 }
 0x295   :  { %1292 = vrot.lane.b32.xlu0 %v4591_v0, %s4095_s5 }
 0x297   :  { %1296 = vrot.lane.b32.xlu1 %v4595_v1, %s4095_s5 }
 0x299   :  { %1324 = vrot.lane.b32.xlu0 %v4591_v0, %s4096_s14 }
 0x29b   :  { %1328 = vrot.lane.b32.xlu1 %v4595_v1, %s4096_s14 }
 0x29d   :  { %1266 = vrot.lane.b32.xlu0 %v4620_v9, %s4094_s18 }
 0x29f   :  { %1270 = vrot.lane.b32.xlu1 %v4625_v10, %s4094_s18 }
 0x2a1   :  { %1298 = vrot.lane.b32.xlu0 %v4620_v9, %s4095_s5 }
 0x2a3   :  { %1302 = vrot.lane.b32.xlu1 %v4625_v10, %s4095_s5 }
 0x2a5   :  { %1330 = vrot.lane.b32.xlu0 %v4620_v9, %s4096_s14 }
 0x2a7   :  { %1334 = vrot.lane.b32.xlu1 %v4625_v10, %s4096_s14 }
 0x2a9   :  { %1356 = vrot.lane.b32.xlu0 %v4591_v0, %s4097_s3 }
 0x2ab   :  { %1360 = vrot.lane.b32.xlu1 %v4595_v1, %s4097_s3 }
 0x2ad   :  { %1388 = vrot.lane.b32.xlu0 %v4591_v0, %s4098_s0 }
 0x2af   :  { %1392 = vrot.lane.b32.xlu1 %v4595_v1, %s4098_s0 }
 0x2b1   :  { %1362 = vrot.lane.b32.xlu0 %v4620_v9, %s4097_s3 }
 0x2b3   :  { %1366 = vrot.lane.b32.xlu1 %v4625_v10, %s4097_s3 }
 0x2b5   :  { %1394 = vrot.lane.b32.xlu0 %v4620_v9, %s4098_s0 }
 0x2b7   :  { %1398 = vrot.lane.b32.xlu1 %v4625_v10, %s4098_s0 }
 0x2b9   :  { %1420 = vrot.lane.b32.xlu0 %v4591_v0, %s4099_s4 }
 0x2bb   :  { %1424 = vrot.lane.b32.xlu1 %v4595_v1, %s4099_s4 }
 0x2bd   :  { %1452 = vrot.lane.b32.xlu0 %v4591_v0, %s4100_s2  ;;  %v1503_v0 = vsel %vm1471_vm2, %v1502_v4, %v4519_v50 }
 0x2bf   :  { %1456 = vrot.lane.b32.xlu1 %v4595_v1, %s4100_s2 }
 0x2c1   :  { %1426 = vrot.lane.b32.xlu0 %v4620_v9, %s4099_s4 }
 0x2c3   :  { %1430 = vrot.lane.b32.xlu1 %v4625_v10, %s4099_s4 }
 0x2c5   :  { %1458 = vrot.lane.b32.xlu0 %v4620_v9, %s4100_s2 }
 0x2c7   :  { %1462 = vrot.lane.b32.xlu1 %v4625_v10, %s4100_s2 }
 0x2c9   :  { %1244 = vrot.lane.b32.xlu0 %v4675_v63, %s4094_s18 }
 0x2cb   :  { %v4685_v21 = vpop.permute.xlu0 %1258  ;;  %1252 = vrot.lane.b32.xlu1 %v4681_v20, %s4094_s18 }
 0x2cd   :  { %v4694_v24 = vpop.permute.xlu1 %1262  ;;  %1276 = vrot.lane.b32.xlu0 %v4675_v63, %s4095_s5 }
 0x2cf   :  { %v4698_v26 = vpop.permute.xlu0 %1290  ;;  %1280 = vrot.lane.b32.xlu1 %v4689_v22, %s4095_s5 }
 0x2d1   :  { %v4703_v29 = vpop.permute.xlu1 %1294  ;;  %1308 = vrot.lane.b32.xlu0 %v4675_v63, %s4096_s14 }
 0x2d3   :  { %v4709_v33 = vpop.permute.xlu0 %1322  ;;  %1312 = vrot.lane.b32.xlu1 %v4689_v22, %s4096_s14 }
 0x2d5   :  { %v4716_v35 = vpop.permute.xlu1 %1326  ;;  %1250 = vrot.lane.b32.xlu0 %v4707_v31, %s4094_s18 }
 0x2d7   :  { %v4720_v36 = vpop.permute.xlu0 %1354  ;;  %1254 = vrot.lane.b32.xlu1 %v4714_v34, %s4094_s18 }
 0x2d9   :  { %v4724_v37 = vpop.permute.xlu1 %1358  ;;  %1282 = vrot.lane.b32.xlu0 %v4707_v31, %s4095_s5 }
 0x2db   :  { %v4728_v39 = vpop.permute.xlu0 %1386  ;;  %1286 = vrot.lane.b32.xlu1 %v4714_v34, %s4095_s5 }
 0x2dd   :  { %v4732_v40 = vpop.permute.xlu1 %1390  ;;  %1314 = vrot.lane.b32.xlu0 %v4707_v31, %s4096_s14 }
 0x2df   :  { %v4736_v41 = vpop.permute.xlu0 %1418  ;;  %1318 = vrot.lane.b32.xlu1 %v4714_v34, %s4096_s14 }
 0x2e1   :  { %v4740_v43 = vpop.permute.xlu1 %1422  ;;  %1340 = vrot.lane.b32.xlu0 %v4675_v63, %s4097_s3 }
 0x2e3   :  { %v4744_v38 = vpop.permute.xlu0 %1450  ;;  %1344 = vrot.lane.b32.xlu1 %v4689_v22, %s4097_s3 }
 0x2e5   :  { %v4748_v44 = vpop.permute.xlu1 %1454  ;;  %1372 = vrot.lane.b32.xlu0 %v4675_v63, %s4098_s0 }
 0x2e7   :  { %v4752_v46 = vpop.permute.xlu0 %1242  ;;  %1376 = vrot.lane.b32.xlu1 %v4689_v22, %s4098_s0 }
 0x2e9   :  { %v4756_v47 = vpop.permute.xlu1 %1246  ;;  %1346 = vrot.lane.b32.xlu0 %v4707_v31, %s4097_s3 }
 0x2ea   :  { %6264 = vst [vmem:[#allocation13_spill] sm:$0xff] %v4756_v47 }
 0x2eb   :  { %v4760_v48 = vpop.permute.xlu0 %1274  ;;  %1350 = vrot.lane.b32.xlu1 %v4714_v34, %s4097_s3 }
 0x2ed   :  { %v4764_v49 = vpop.permute.xlu1 %1278  ;;  %1378 = vrot.lane.b32.xlu0 %v4707_v31, %s4098_s0 }
 0x2ee   :  { %6265 = vst [vmem:[#allocation14_spill] sm:$0xff] %v4764_v49 }
 0x2ef   :  { %v4768_v52 = vpop.permute.xlu0 %1306  ;;  %1382 = vrot.lane.b32.xlu1 %v4714_v34, %s4098_s0 }
 0x2f1   :  { %v4772_v53 = vpop.permute.xlu1 %1310  ;;  %1404 = vrot.lane.b32.xlu0 %v4675_v63, %s4099_s4 }
 0x2f3   :  { %v4776_v54 = vpop.permute.xlu0 %1338  ;;  %1408 = vrot.lane.b32.xlu1 %v4689_v22, %s4099_s4 }
 0x2f5   :  { %v4780_v55 = vpop.permute.xlu1 %1342  ;;  %1436 = vrot.lane.b32.xlu0 %v4675_v63, %s4100_s2 }
 0x2f6   :  { %6266 = vst [vmem:[#allocation15_spill] sm:$0xff] %v4780_v55 }
 0x2f7   :  { %v4786_v60 = vpop.permute.xlu0 %1370  ;;  %1440 = vrot.lane.b32.xlu1 %v4689_v22, %s4100_s2 }
 0x2f9   :  { %v4792_v61 = vpop.permute.xlu1 %1374  ;;  %1410 = vrot.lane.b32.xlu0 %v4707_v31, %s4099_s4 }
 0x2fa   :  { %6267 = vst [vmem:[#allocation16_spill] sm:$0xff] %v4792_v61 }
 0x2fb   :  { %v4796_v18 = vpop.permute.xlu0 %1402  ;;  %1414 = vrot.lane.b32.xlu1 %v4714_v34, %s4099_s4 }
 0x2fd   :  { %v4800_v5 = vpop.permute.xlu1 %1406  ;;  %1442 = vrot.lane.b32.xlu0 %v4707_v31, %s4100_s2 }
 0x2fe   :  { %6268 = vst [vmem:[#allocation17_spill] sm:$0xff] %v4800_v5 }
 0x2ff   :  { %v4806_v3 = vpop.permute.xlu0 %1434  ;;  %1446 = vrot.lane.b32.xlu1 %v4714_v34, %s4100_s2 }
 0x301   :  { %v4812_v13 = vpop.permute.xlu1 %1438  ;;  %1268 = vrot.lane.b32.xlu0 %v4804_v6, %s4094_s18 }
 0x302   :  { %6270 = vst [vmem:[#allocation19_spill] sm:$0xff] %v4812_v13 }
 0x303   :  { %v1261_v14 = vpop.permute.xlu0 %1260  ;;  %1272 = vrot.lane.b32.xlu1 %v4810_v11, %s4094_s18 }
 0x304   :  { %v1558_v8 = vrot.slane %v1261_v14, 7 }
 0x305   :  { %v4818_v17 = vpop.permute.xlu1 %1264  ;;  %1300 = vrot.lane.b32.xlu0 %v4804_v6, %s4095_s5 }
 0x306   :  { %v1559_v58 = vsel %vm1471_vm2, %v1558_v8, %v4685_v21 }
 0x307   :  { %v1293_v30 = vpop.permute.xlu0 %1292  ;;  %1304 = vrot.lane.b32.xlu1 %v4810_v11, %s4095_s5 }
 0x308   :  { %v1614_v14 = vrot.slane %v1293_v30, 7  ;;  %v1504_v30 = vsel %vm1473_vm7, %v1502_v4, %v1503_v0 }
 0x309   :  { %v4824_v19 = vpop.permute.xlu1 %1296  ;;  %1332 = vrot.lane.b32.xlu0 %v4804_v6, %s4096_s14 }
 0x30a   :  { %v1615_v50 = vsel %vm1471_vm2, %v1614_v14, %v4698_v26 }
 0x30b   :  { %v1325_v7 = vpop.permute.xlu0 %1324  ;;  %1336 = vrot.lane.b32.xlu1 %v4810_v11, %s4096_s14  ;;  %v1616_v26 = vsel %vm1473_vm7, %v1614_v14, %v1615_v50 }
 0x30d   :  { %v4830_v15 = vpop.permute.xlu1 %1328  ;;  %1364 = vrot.lane.b32.xlu0 %v4804_v6, %s4097_s3 }
 0x30f   :  { %v4834_v25 = vpop.permute.xlu0 %1266  ;;  %1368 = vrot.lane.b32.xlu1 %v4810_v11, %s4097_s3 }
 0x311   :  { %v4838_v28 = vpop.permute.xlu1 %1270  ;;  %1396 = vrot.lane.b32.xlu0 %v4804_v6, %s4098_s0 }
 0x312   :  { %6271 = vst [vmem:[#allocation20_spill] sm:$0xff] %v4838_v28  ;;  %v1560_v28 = vsel %vm1473_vm7, %v1558_v8, %v1559_v58 }
 0x313   :  { %v4842_v56 = vpop.permute.xlu0 %1298  ;;  %1400 = vrot.lane.b32.xlu1 %v4810_v11, %s4098_s0  ;;  %v1561_v13 = vsel %vm1475_vm10, %v1558_v8, %v1560_v28  ;;  %v1505_v28 = vsel %vm1475_vm10, %v1502_v4, %v1504_v30 }
 0x314   :  { %v1506_v49 = vsel %vm1477_vm13, %v1502_v4, %v1505_v28 }
 0x315   :  { %v4848_v62 = vpop.permute.xlu1 %1302  ;;  %1428 = vrot.lane.b32.xlu0 %v4804_v6, %s4099_s4 }
 0x316   :  { %6272 = vst [vmem:[#allocation21_spill] sm:$0xff] %v4848_v62 }
 0x317   :  { %v4852_v2 = vpop.permute.xlu0 %1330  ;;  %1432 = vrot.lane.b32.xlu1 %v4810_v11, %s4099_s4 }
 0x319   :  { %v4856_v45 = vpop.permute.xlu1 %1334  ;;  %1460 = vrot.lane.b32.xlu0 %v4804_v6, %s4100_s2 }
 0x31a   :  { %6273 = vst [vmem:[#allocation22_spill] sm:$0xff] %v4856_v45  ;;  %v1670_v45 = vrot.slane %v1325_v7, 7 }
 0x31b   :  { %v1357_v12 = vpop.permute.xlu0 %1356  ;;  %1464 = vrot.lane.b32.xlu1 %v4810_v11, %s4100_s2  ;;  %v4102_v11 = vmov 1934713408  }
 0x31c   :  { %v1986_v21 = vunpack.c.l.s4 %v4102_v11  ;;  %v1671_v7 = vsel %vm1471_vm2, %v1670_v45, %v4709_v33  ;;  %v1726_v58 = vrot.slane %v1357_v12, 7  ;;  %v1562_v12 = vsel %vm1477_vm13, %v1558_v8, %v1561_v13 }
 0x31d   :  { %v4864_v42 = vpop.permute.xlu1 %1360  ;;  %1248 = vrot.lane.b32.xlu0 %v4689_v22, %s4094_s18  ;;  %v1617_v8 = vsel %vm1475_vm10, %v1614_v14, %v1616_v26 }
 0x31e   :  { %v1987_v33 = vunpack.c.0.s8 %v1986_v21  ;;  %v1727_v21 = vsel %vm1471_vm2, %v1726_v58, %v4720_v36  ;;  %v2128_v36 = vcombine.low %v1506_v49, %v1562_v12 }
 0x31f   :  { %v1389_v16 = vpop.permute.xlu0 %1388  ;;  %1256 = vrot.lane.b32.xlu1 %v4862_v23, %s4094_s18  ;;  %v1728_v50 = vsel %vm1473_vm7, %v1726_v58, %v1727_v21 }
 0x320   :  { %v4922_v30 = vsub.s32 %v1987_v33, %v4491_v27  ;;  %v1618_v33 = vsel %vm1477_vm13, %v1614_v14, %v1617_v8 }
 0x321   :  { %v4870_v32 = vpop.permute.xlu1 %1392  ;;  %1284 = vrot.lane.b32.xlu0 %v4681_v20, %s4095_s5 }
 0x323   :  { %v4874_v34 = vpop.permute.xlu0 %1362  ;;  %1288 = vrot.lane.b32.xlu1 %v4862_v23, %s4095_s5 }
 0x325   :  { %v4881_v62 = vpop.permute.xlu1 %1366  ;;  %1316 = vrot.lane.b32.xlu0 %v4681_v20, %s4096_s14 }
 0x326   :  { %6274 = vst [vmem:[#allocation23_spill] sm:$0xff] %v4881_v62  ;;  %v1782_v62 = vrot.slane %v1389_v16, 7  ;;  %v1672_v16 = vsel %vm1473_vm7, %v1670_v45, %v1671_v7 }
 0x327   :  { %v4885_v10 = vpop.permute.xlu0 %1394  ;;  %1320 = vrot.lane.b32.xlu1 %v4862_v23, %s4096_s14  ;;  %v1673_v0 = vsel %vm1475_vm10, %v1670_v45, %v1672_v16 }
 0x328   :  { %v1783_v11 = vsel %vm1471_vm2, %v1782_v62, %v4728_v39 }
 0x329   :  { %v4894_v5 = vpop.permute.xlu1 %1398  ;;  %1348 = vrot.lane.b32.xlu0 %v4681_v20, %s4097_s3  ;;  %v1784_v39 = vsel %vm1473_vm7, %v1782_v62, %v1783_v11  ;;  %v1729_v11 = vsel %vm1475_vm10, %v1726_v58, %v1728_v50 }
 0x32a   :  { %6275 = vst [vmem:[#allocation24_spill] sm:$0xff] %v4894_v5  ;;  %v1785_v4 = vsel %vm1475_vm10, %v1782_v62, %v1784_v39 }
 0x32b   :  { %v1421_v55 = vpop.permute.xlu0 %1420  ;;  %1352 = vrot.lane.b32.xlu1 %v4862_v23, %s4097_s3  ;;  %v1786_v12 = vsel %vm1477_vm13, %v1782_v62, %v1785_v4  ;;  %v6278_v62 = vmov 0.0  }
 0x32c   :  { %v1838_v7 = vrot.slane %v1421_v55, 7  ;;  %v1674_v55 = vsel %vm1477_vm13, %v1670_v45, %v1673_v0  ;;  %v1470_v45 = vrot.slane %v4675_v63, 7  ;;  %v1730_v63 = vsel %vm1477_vm13, %v1726_v58, %v1729_v11 }
 0x32d   :  { %v4907_v5 = vpop.permute.xlu1 %1424  ;;  %1380 = vrot.lane.b32.xlu0 %v4681_v20, %s4098_s0  ;;  %v2146_v50 = vcombine.low %v1730_v63, %v1786_v12 }
 0x32e   :  { %v1839_v27 = vsel %vm1471_vm2, %v1838_v7, %v4736_v41  ;;  %v4949_v41 = vrot.slane %v2128_v36, %v4922_v30  ;;  %v1472_v21 = vsel %vm1471_vm2, %v1470_v45, %v4558_v57 }
 0x32f   :  { %v1453_v61 = vpop.permute.xlu0 %1452  ;;  %1384 = vrot.lane.b32.xlu1 %v4862_v23, %s4098_s0  ;;  %v1840_v26 = vsel %vm1473_vm7, %v1838_v7, %v1839_v27  ;;  %v1474_v57 = vsel %vm1473_vm7, %v1470_v45, %v1472_v21 }
 0x330   :  { %v1894_v47 = vrot.slane %v1453_v61, 7  ;;  %v1841_v39 = vsel %vm1475_vm10, %v1838_v7, %v1840_v26  ;;  %v4968_v36 = vcombine.high %v4949_v41, %v6278_v62  ;;  %v1476_v12 = vsel %vm1475_vm10, %v1470_v45, %v1474_v57 }
 0x331   :  { %v4925_v13 = vpop.permute.xlu1 %1456  ;;  %1412 = vrot.lane.b32.xlu0 %v4681_v20, %s4099_s4  ;;  %v1842_v4 = vsel %vm1477_vm13, %v1838_v7, %v1841_v39 }
 0x332   :  { %v1895_v61 = vsel %vm1471_vm2, %v1894_v47, %v4744_v38  ;;  %v2137_v38 = vcombine.low %v1618_v33, %v1674_v55 }
 0x333   :  { %v4936_v16 = vpop.permute.xlu0 %1426  ;;  %1416 = vrot.lane.b32.xlu1 %v4862_v23, %s4099_s4  ;;  %v1896_v49 = vsel %vm1473_vm7, %v1894_v47, %v1895_v61 }
 0x334   :  { %v1897_v14 = vsel %vm1475_vm10, %v1894_v47, %v1896_v49  ;;  %v4971_v55 = vrot.slane %v2137_v38, %v4922_v30 }
 0x335   :  { %v4944_v28 = vpop.permute.xlu1 %1430  ;;  %1444 = vrot.lane.b32.xlu0 %v4681_v20, %s4100_s2  ;;  %v1898_v58 = vsel %vm1477_vm13, %v1894_v47, %v1897_v14  ;;  %v4987_v47 = vrot.slane %v2146_v50, %v4922_v30 }
 0x336   :  { %6276 = vst [vmem:[#allocation25_spill] sm:$0xff] %v4944_v28  ;;  %v4984_v49 = vcombine.high %v4971_v55, %v6278_v62  ;;  %v2155_v11 = vcombine.low %v1842_v4, %v1898_v58  ;;  %v1478_v58 = vsel %vm1477_vm13, %v1470_v45, %v1476_v12 }
 0x337   :  { %v4954_v0 = vpop.permute.xlu0 %1458  ;;  %1448 = vrot.lane.b32.xlu1 %v4862_v23, %s4100_s2  ;;  %6280 = vst [vmem:[#allocation28_spill] sm:$0xff] %v4987_v47 }
 0x338   :  { %6279 = vst [vmem:[#allocation27_spill] sm:$0xff] %v4984_v49  ;;  %v5006_v50 = vrot.slane %v2155_v11, %v4922_v30 }
 0x339   :  { %v4962_v8 = vpop.permute.xlu1 %1462  ;;  %2400 = vrot.lane.b32.xlu0 %v4949_v41, %s4103_s19 }
 0x33a   :  { %6277 = vst [vmem:[#allocation26_spill] sm:$0xff] %v4962_v8  ;;  %6282 = vst [vmem:[#allocation30_spill] sm:$0xff] %v5006_v50  ;;  %v5020_v11 = vcombine.high %v5006_v50, %v6278_v62 }
 0x33b   :  { %v1245_v61 = vpop.permute.xlu0 %1244  ;;  %2408 = vrot.lane.b32.xlu1 %v4968_v36, %s4103_s19 }
 0x33c   :  { %v1530_v27 = vrot.slane %v1245_v61, 7  ;;  %6283 = vst [vmem:[#allocation31_spill] sm:$0xff] %v5020_v11 }
 0x33d   :  { %2402 = vrot.lane.b32.xlu0 %v4971_v55, %s4103_s19  ;;  %v4980_v33 = vpop.permute.xlu1 %1252 }
 0x33e   :  { %v1531_v38 = vsel %vm1471_vm2, %v1530_v27, %v4752_v46  ;;  %v5003_v46 = vcombine.high %v4987_v47, %v6278_v62 }
 0x33f   :  { %v1532_v7 = vsel %vm1473_vm7, %v1530_v27, %v1531_v38  ;;  %v1277_v26 = vpop.permute.xlu0 %1276  ;;  %2410 = vrot.lane.b32.xlu1 %v4984_v49, %s4103_s19 }
 0x340   :  { %v1533_v14 = vsel %vm1475_vm10, %v1530_v27, %v1532_v7  ;;  %v1586_v63 = vrot.slane %v1277_v26, 7  ;;  %6281 = vst [vmem:[#allocation29_spill] sm:$0xff] %v5003_v46 }
 0x341   :  { %v1534_v21 = vsel %vm1477_vm13, %v1530_v27, %v1533_v14  ;;  %2404 = vrot.lane.b32.xlu0 %v4987_v47, %s4103_s19  ;;  %v4999_v39 = vpop.permute.xlu1 %1280 }
 0x342   :  { %v1587_v61 = vsel %vm1471_vm2, %v1586_v63, %v4760_v48  ;;  %v1984_v57 = vcombine.low %v1478_v58, %v1534_v21 }
 0x343   :  { %v1588_v4 = vsel %vm1473_vm7, %v1586_v63, %v1587_v61  ;;  %v1309_v27 = vpop.permute.xlu0 %1308  ;;  %2412 = vrot.lane.b32.xlu1 %v5003_v46, %s4103_s19 }
 0x344   :  { %v1642_v38 = vrot.slane %v1309_v27, 7  ;;  %v5023_v45 = vrot.slane %v1984_v57, %v4922_v30  ;;  %v1589_v48 = vsel %vm1475_vm10, %v1586_v63, %v1588_v4 }
 0x345   :  { %2406 = vrot.lane.b32.xlu0 %v5006_v50, %s4103_s19  ;;  %v5016_v7 = vpop.permute.xlu1 %1312  ;;  %v1590_v58 = vsel %vm1477_vm13, %v1586_v63, %v1589_v48 }
 0x346   :  { %6284 = vst [vmem:[#allocation32_spill] sm:$0xff] %v5023_v45  ;;  %v1643_v12 = vsel %vm1471_vm2, %v1642_v38, %v4768_v52  ;;  %v5042_v52 = vcombine.high %v5023_v45, %v6278_v62 }
 0x347   :  { %v1644_v26 = vsel %vm1473_vm7, %v1642_v38, %v1643_v12  ;;  %v5029_v14 = vpop.permute.xlu0 %1250  ;;  %2414 = vrot.lane.b32.xlu1 %v5020_v11, %s4103_s19 }
 0x348   :  { %v1645_v21 = vsel %vm1475_vm10, %v1642_v38, %v1644_v26  ;;  %6285 = vst [vmem:[#allocation33_spill] sm:$0xff] %v5042_v52 }
 0x349   :  { %v1646_v61 = vsel %vm1477_vm13, %v1642_v38, %v1645_v21  ;;  %2336 = vrot.lane.b32.xlu0 %v5023_v45, %s4103_s19  ;;  %v5038_v57 = vpop.permute.xlu1 %1254 }
 0x34a   :  { %v1993_v4 = vcombine.low %v1590_v58, %v1646_v61 }
 0x34b   :  { %v5044_v27 = vpop.permute.xlu0 %1282  ;;  %2344 = vrot.lane.b32.xlu1 %v5042_v52, %s4103_s19 }
 0x34c   :  { %v5049_v12 = vrot.slane %v1993_v4, %v4922_v30 }
 0x34d   :  { %v5051_v63 = vpop.permute.xlu1 %1286 }
 0x34e   :  { %6286 = vst [vmem:[#allocation34_spill] sm:$0xff] %v5049_v12  ;;  %6287 = vst [vmem:[#allocation35_spill] sm:$0xff] %v5051_v63  ;;  %2338 = vrot.lane.b32.xlu0 %v5049_v12, %s4103_s19  ;;  %v5057_v38 = vcombine.high %v5049_v12, %v6278_v62 }
 0x34f   :  { %v5059_v48 = vpop.permute.xlu0 %1314 }
 0x350   :  { %6288 = vst [vmem:[#allocation36_spill] sm:$0xff] %v5057_v38  ;;  %2346 = vrot.lane.b32.xlu1 %v5057_v38, %s4103_s19 }
 0x351   :  { %v5063_v26 = vpop.permute.xlu1 %1318 }
 0x352   :  { %6289 = vst [vmem:[#allocation37_spill] sm:$0xff] %v5063_v26 }
 0x353   :  { %v1341_v21 = vpop.permute.xlu0 %1340 }
 0x354   :  { %v1698_v58 = vrot.slane %v1341_v21, 7 }
 0x355   :  { %v5065_v61 = vpop.permute.xlu1 %1344 }
 0x356   :  { %v1699_v4 = vsel %vm1471_vm2, %v1698_v58, %v4776_v54 }
 0x357   :  { %v1700_v28 = vsel %vm1473_vm7, %v1698_v58, %v1699_v4  ;;  %v1373_v8 = vpop.permute.xlu0 %1372 }
 0x358   :  { %v1754_v52 = vrot.slane %v1373_v8, 7  ;;  %v1701_v45 = vsel %vm1475_vm10, %v1698_v58, %v1700_v28  ;;  %v1565_v8 = vrot.slane %v4818_v17, 7 }
 0x359   :  { %v5070_v12 = vpop.permute.xlu1 %1376  ;;  %v1702_v63 = vsel %vm1477_vm13, %v1698_v58, %v1701_v45  ;;  %v1677_v58 = vrot.slane %v4830_v15, 7 }
 0x35a   :  { %v1755_v38 = vsel %vm1471_vm2, %v1754_v52, %v4786_v60  ;;  %v1509_v60 = vrot.slane %v4595_v1, 7 }
 0x35b   :  { %v1756_v11 = vsel %vm1473_vm7, %v1754_v52, %v1755_v38  ;;  %v5076_v50 = vpop.permute.xlu0 %1346 }
 0x35c   :  { %v1757_v21 = vsel %vm1475_vm10, %v1754_v52, %v1756_v11  ;;  %v1566_v11 = vsel %vm1471_vm2, %v1565_v8, %v4694_v24  ;;  %v1510_v1 = vsel %vm1471_vm2, %v1509_v60, %v4521_v51 }
 0x35d   :  { %v1758_v54 = vsel %vm1477_vm13, %v1754_v52, %v1757_v21  ;;  %v5081_v4 = vpop.permute.xlu1 %1350 }
 0x35e   :  { %6290 = vst [vmem:[#allocation38_spill] sm:$0xff] %v5081_v4  ;;  %v2002_v26 = vcombine.low %v1702_v63, %v1758_v54  ;;  %v1567_v63 = vsel %vm1473_vm7, %v1565_v8, %v1566_v11  ;;  %v1621_v4 = vrot.slane %v4824_v19, 7  ;;  %v1516_v19 = vrot.slane %v4804_v6, 7 }
 0x35f   :  { %v5084_v46 = vpop.permute.xlu0 %1378 }
 0x360   :  { %v5087_v28 = vrot.slane %v2002_v26, %v4922_v30  ;;  %v1517_v6 = vsel %vm1471_vm2, %v1516_v19, %v4620_v9 }
 0x361   :  { %v5090_v38 = vpop.permute.xlu1 %1382 }
 0x362   :  { %6291 = vst [vmem:[#allocation39_spill] sm:$0xff] %v5087_v28  ;;  %6292 = vst [vmem:[#allocation40_spill] sm:$0xff] %v5090_v38  ;;  %2340 = vrot.lane.b32.xlu0 %v5087_v28, %s4103_s19  ;;  %v5098_v45 = vcombine.high %v5087_v28, %v6278_v62  ;;  %v1568_v28 = vsel %vm1475_vm10, %v1565_v8, %v1567_v63 }
 0x363   :  { %v1405_v17 = vpop.permute.xlu0 %1404  ;;  %v1569_v15 = vsel %vm1477_vm13, %v1565_v8, %v1568_v28 }
 0x364   :  { %6293 = vst [vmem:[#allocation41_spill] sm:$0xff] %v5098_v45  ;;  %v1810_v52 = vrot.slane %v1405_v17, 7  ;;  %2348 = vrot.lane.b32.xlu1 %v5098_v45, %s4103_s19  ;;  %v1511_v17 = vsel %vm1473_vm7, %v1509_v60, %v1510_v1 }
 0x365   :  { %v5105_v26 = vpop.permute.xlu1 %1408 }
 0x366   :  { %v1811_v24 = vsel %vm1471_vm2, %v1810_v52, %v4796_v18  ;;  %v1512_v18 = vsel %vm1475_vm10, %v1509_v60, %v1511_v17 }
 0x367   :  { %v1812_v21 = vsel %vm1473_vm7, %v1810_v52, %v1811_v24  ;;  %v1437_v54 = vpop.permute.xlu0 %1436  ;;  %v1678_v24 = vsel %vm1471_vm2, %v1677_v58, %v4716_v35  ;;  %v1513_v8 = vsel %vm1477_vm13, %v1509_v60, %v1512_v18  ;;  %v1789_v60 = vrot.slane %v4870_v32, 7 }
 0x368   :  { %v1866_v45 = vrot.slane %v1437_v54, 7  ;;  %v1813_v11 = vsel %vm1475_vm10, %v1810_v52, %v1812_v21  ;;  %v1622_v21 = vsel %vm1471_vm2, %v1621_v4, %v4703_v29  ;;  %v1679_v35 = vsel %vm1473_vm7, %v1677_v58, %v1678_v24 }
 0x369   :  { %v5114_v51 = vpop.permute.xlu1 %1440  ;;  %v1518_v18 = vsel %vm1473_vm7, %v1516_v19, %v1517_v6  ;;  %v1733_v24 = vrot.slane %v4864_v42, 7 }
 0x36a   :  { %v1867_v38 = vsel %vm1471_vm2, %v1866_v45, %v4806_v3  ;;  %v1814_v3 = vsel %vm1477_vm13, %v1810_v52, %v1813_v11 }
 0x36b   :  { %v1868_v1 = vsel %vm1473_vm7, %v1866_v45, %v1867_v38  ;;  %v5124_v63 = vpop.permute.xlu0 %1410  ;;  %v2164_v38 = vcombine.low %v1513_v8, %v1569_v15 }
 0x36c   :  { %v1869_v54 = vsel %vm1475_vm10, %v1866_v45, %v1868_v1  ;;  %v1623_v1 = vsel %vm1473_vm7, %v1621_v4, %v1622_v21 }
 0x36d   :  { %v1870_v17 = vsel %vm1477_vm13, %v1866_v45, %v1869_v54  ;;  %v5132_v47 = vpop.permute.xlu1 %1414  ;;  %v1680_v45 = vsel %vm1475_vm10, %v1677_v58, %v1679_v35  ;;  %v5155_v9 = vrot.slane %v2164_v38, %v4922_v30  ;;  %v1624_v15 = vsel %vm1475_vm10, %v1621_v4, %v1623_v1 }
 0x36e   :  { %v2011_v28 = vcombine.low %v1814_v3, %v1870_v17  ;;  %v1681_v21 = vsel %vm1477_vm13, %v1677_v58, %v1680_v45  ;;  %v1519_v17 = vsel %vm1475_vm10, %v1516_v19, %v1518_v18  ;;  %v1625_v8 = vsel %vm1477_vm13, %v1621_v4, %v1624_v15 }
 0x36f   :  { %v5136_v49 = vpop.permute.xlu0 %1442  ;;  %v1790_v35 = vsel %vm1471_vm2, %v1789_v60, %v4732_v40  ;;  %v5175_v42 = vcombine.high %v5155_v9, %v6278_v62  ;;  %v1734_v58 = vsel %vm1471_vm2, %v1733_v24, %v4724_v37  ;;  %v2173_v4 = vcombine.low %v1625_v8, %v1681_v21 }
 0x370   :  { %v5142_v29 = vrot.slane %v2011_v28, %v4922_v30  ;;  %v1901_v1 = vrot.slane %v4925_v13, 7  ;;  %v1520_v37 = vsel %vm1477_vm13, %v1516_v19, %v1519_v17  ;;  %v1845_v21 = vrot.slane %v4907_v5, 7 }
 0x371   :  { %v5145_v52 = vpop.permute.xlu1 %1446 }
 0x372   :  { %2342 = vrot.lane.b32.xlu0 %v5142_v29, %s4103_s19  ;;  %v5152_v11 = vcombine.high %v5142_v29, %v6278_v62 }
 0x373   :  { %v1269_v54 = vpop.permute.xlu0 %1268 }
 0x374   :  { %v1572_v32 = vrot.slane %v1269_v54, 7  ;;  %2350 = vrot.lane.b32.xlu1 %v5152_v11, %s4103_s19  ;;  %v1735_v54 = vsel %vm1473_vm7, %v1733_v24, %v1734_v58 }
 0x375   :  { %v5163_v3 = vpop.permute.xlu1 %1272  ;;  %v1736_v5 = vsel %vm1475_vm10, %v1733_v24, %v1735_v54 }
 0x376   :  { %v1573_v28 = vsel %vm1471_vm2, %v1572_v32, %v4834_v25  ;;  %2416 = vrot.lane.b32.xlu0 %v5155_v9, %s4103_s19  ;;  %v1791_v25 = vsel %vm1473_vm7, %v1789_v60, %v1790_v35  ;;  %v1902_v35 = vsel %vm1471_vm2, %v1901_v1, %v4748_v44 }
 0x377   :  { %v1574_v38 = vsel %vm1473_vm7, %v1572_v32, %v1573_v28  ;;  %v1301_v6 = vpop.permute.xlu0 %1300 }
 0x378   :  { %v1575_v40 = vsel %vm1475_vm10, %v1572_v32, %v1574_v38  ;;  %v1628_v45 = vrot.slane %v1301_v6, 7  ;;  %2424 = vrot.lane.b32.xlu1 %v5175_v42, %s4103_s19  ;;  %v5195_v6 = vrot.slane %v2173_v4, %v4922_v30 }
 0x379   :  { %v1576_v18 = vsel %vm1477_vm13, %v1572_v32, %v1575_v40  ;;  %v5186_v15 = vpop.permute.xlu1 %1304  ;;  %v1792_v32 = vsel %vm1475_vm10, %v1789_v60, %v1791_v25 }
 0x37a   :  { %v1629_v13 = vsel %vm1471_vm2, %v1628_v45, %v4842_v56  ;;  %v2200_v8 = vcombine.low %v1520_v37, %v1576_v18  ;;  %v1846_v56 = vsel %vm1471_vm2, %v1845_v21, %v4740_v43  ;;  %v1793_v25 = vsel %vm1477_vm13, %v1789_v60, %v1792_v32 }
 0x37b   :  { %v1630_v28 = vsel %vm1473_vm7, %v1628_v45, %v1629_v13  ;;  %v1333_v38 = vpop.permute.xlu0 %1332  ;;  %v1903_v18 = vsel %vm1473_vm7, %v1901_v1, %v1902_v35 }
 0x37c   :  { %v1684_v19 = vrot.slane %v1333_v38, 7  ;;  %v5201_v17 = vrot.slane %v2200_v8, %v4922_v30  ;;  %v1631_v40 = vsel %vm1475_vm10, %v1628_v45, %v1630_v28  ;;  %v1737_v8 = vsel %vm1477_vm13, %v1733_v24, %v1736_v5 }
 0x37d   :  { %v5204_v58 = vpop.permute.xlu1 %1336  ;;  %v1847_v28 = vsel %vm1473_vm7, %v1845_v21, %v1846_v56  ;;  %v1632_v60 = vsel %vm1477_vm13, %v1628_v45, %v1631_v40  ;;  %v1904_v35 = vsel %vm1475_vm10, %v1901_v1, %v1903_v18  ;;  %v5246_v40 = vrot.slane %v4681_v20, 7 }
 0x37e   :  { %v1685_v4 = vsel %vm1471_vm2, %v1684_v19, %v4852_v2  ;;  %2432 = vrot.lane.b32.xlu0 %v5201_v17, %s4103_s19  ;;  %v5215_v44 = vcombine.high %v5201_v17, %v6278_v62  ;;  %v5225_v2 = vcombine.high %v5195_v6, %v6278_v62  ;;  %v1848_v56 = vsel %vm1475_vm10, %v1845_v21, %v1847_v28 }
 0x37f   :  { %v1686_v37 = vsel %vm1473_vm7, %v1684_v19, %v1685_v4  ;;  %v1365_v54 = vpop.permute.xlu0 %1364  ;;  %v1849_v20 = vsel %vm1477_vm13, %v1845_v21, %v1848_v56  ;;  %v1649_v21 = vrot.slane %v5016_v7, 7 }
 0x380   :  { %v1687_v43 = vsel %vm1475_vm10, %v1684_v19, %v1686_v37  ;;  %v1740_v13 = vrot.slane %v1365_v54, 7  ;;  %2440 = vrot.lane.b32.xlu1 %v5215_v44, %s4103_s19  ;;  %v2182_v54 = vcombine.low %v1737_v8, %v1793_v25 }
 0x381   :  { %v1688_v38 = vsel %vm1477_vm13, %v1684_v19, %v1687_v43  ;;  %v5231_v32 = vpop.permute.xlu1 %1368 }
 0x382   :  { %v1741_v4 = vsel %vm1471_vm2, %v1740_v13, %v4874_v34  ;;  %2418 = vrot.lane.b32.xlu0 %v5195_v6, %s4103_s19  ;;  %v2209_v37 = vcombine.low %v1632_v60, %v1688_v38  ;;  %v1905_v34 = vsel %vm1477_vm13, %v1901_v1, %v1904_v35  ;;  %v5261_v28 = vrot.slane %v2182_v54, %v4922_v30 }
 0x383   :  { %v1742_v24 = vsel %vm1473_vm7, %v1740_v13, %v1741_v4  ;;  %v1397_v5 = vpop.permute.xlu0 %1396  ;;  %v1544_v1 = vrot.slane %v4980_v33, 7  ;;  %v5267_v35 = vrot.slane %v4689_v22, 7  ;;  %v1489_v54 = vsel %vm1471_vm2, %v5246_v40, %v4707_v31 }
 0x384   :  { %v1796_v45 = vrot.slane %v1397_v5, 7  ;;  %2426 = vrot.lane.b32.xlu1 %v5225_v2, %s4103_s19  ;;  %v5243_v19 = vrot.slane %v2209_v37, %v4922_v30  ;;  %v1743_v25 = vsel %vm1475_vm10, %v1740_v13, %v1742_v24  ;;  %v2191_v37 = vcombine.low %v1849_v20, %v1905_v34 }
 0x385   :  { %v5249_v18 = vpop.permute.xlu1 %1400  ;;  %v1545_v33 = vsel %vm1471_vm2, %v1544_v1, %v5029_v14  ;;  %v1744_v24 = vsel %vm1477_vm13, %v1740_v13, %v1743_v25  ;;  %v5288_v31 = vcombine.high %v5261_v28, %v6278_v62  ;;  %v1593_v34 = vrot.slane %v4999_v39, 7 }
 0x386   :  { %v1797_v43 = vsel %vm1471_vm2, %v1796_v45, %v4885_v10  ;;  %2434 = vrot.lane.b32.xlu0 %v5243_v19, %s4103_s19  ;;  %v5258_v8 = vcombine.high %v5243_v19, %v6278_v62  ;;  %v1546_v25 = vsel %vm1473_vm7, %v1544_v1, %v1545_v33  ;;  %v1490_v20 = vsel %vm1473_vm7, %v5246_v40, %v1489_v54  ;;  %v6296_v54 = vld [vmem:[#allocation14_spill] sm:$0xff] }
 0x387   :  { %v1798_v60 = vsel %vm1473_vm7, %v1796_v45, %v1797_v43  ;;  %v1429_v38 = vpop.permute.xlu0 %1428  ;;  %v1650_v39 = vsel %vm1471_vm2, %v1649_v21, %v4772_v53 }
 0x388   :  { %v1799_v10 = vsel %vm1475_vm10, %v1796_v45, %v1798_v60  ;;  %v1852_v4 = vrot.slane %v1429_v38, 7  ;;  %2442 = vrot.lane.b32.xlu1 %v5258_v8, %s4103_s19  ;;  %v5308_v38 = vrot.slane %v2191_v37, %v4922_v30  ;;  %v1547_v37 = vsel %vm1475_vm10, %v1544_v1, %v1546_v25 }
 0x389   :  { %v1800_v22 = vsel %vm1477_vm13, %v1796_v45, %v1799_v10  ;;  %v5280_v5 = vpop.permute.xlu1 %1432  ;;  %v1482_v45 = vsel %vm1471_vm2, %v5267_v35, %v4563_v59 }
 0x38a   :  { %v1853_v56 = vsel %vm1471_vm2, %v1852_v4, %v4936_v16  ;;  %2420 = vrot.lane.b32.xlu0 %v5261_v28, %s4103_s19  ;;  %v2218_v7 = vcombine.low %v1744_v24, %v1800_v22  ;;  %v1483_v53 = vsel %vm1473_vm7, %v5267_v35, %v1482_v45  ;;  %v1594_v24 = vsel %vm1471_vm2, %v1593_v34, %v6296_v54 }
 0x38b   :  { %v1854_v14 = vsel %vm1473_vm7, %v1852_v4, %v1853_v56  ;;  %v1461_v13 = vpop.permute.xlu0 %1460 }
 0x38c   :  { %v1908_v16 = vrot.slane %v1461_v13, 7  ;;  %2428 = vrot.lane.b32.xlu1 %v5288_v31, %s4103_s19  ;;  %v5299_v43 = vrot.slane %v2218_v7, %v4922_v30  ;;  %v1855_v59 = vsel %vm1475_vm10, %v1852_v4, %v1854_v14  ;;  %v1651_v7 = vsel %vm1473_vm7, %v1649_v21, %v1650_v39 }
 0x38d   :  { %v5305_v60 = vpop.permute.xlu1 %1464  ;;  %v1761_v14 = vrot.slane %v5070_v12, 7  ;;  %v1856_v45 = vsel %vm1477_vm13, %v1852_v4, %v1855_v59  ;;  %v1595_v12 = vsel %vm1473_vm7, %v1593_v34, %v1594_v24  ;;  %v1548_v39 = vsel %vm1477_vm13, %v1544_v1, %v1547_v37  ;;  %v6298_v24 = vld [vmem:[#allocation16_spill] sm:$0xff] }
 0x38e   :  { %6294 = vst [vmem:[#allocation42_spill] sm:$0xff] %v5299_v43  ;;  %v1909_v10 = vsel %vm1471_vm2, %v1908_v16, %v4954_v0  ;;  %2436 = vrot.lane.b32.xlu0 %v5299_v43, %s4103_s19  ;;  %v5317_v33 = vcombine.high %v5299_v43, %v6278_v62  ;;  %v1491_v0 = vsel %vm1475_vm10, %v5246_v40, %v1490_v20  ;;  %v1705_v59 = vrot.slane %v5065_v61, 7 }
 0x38f   :  { %v1910_v22 = vsel %vm1473_vm7, %v1908_v16, %v1909_v10  ;;  %v1249_v56 = vpop.permute.xlu0 %1248  ;;  %v5338_v10 = vcombine.high %v5308_v38, %v6278_v62  ;;  %v1484_v20 = vsel %vm1475_vm10, %v5267_v35, %v1483_v53  ;;  %v1492_v53 = vsel %vm1477_vm13, %v5246_v40, %v1491_v0 }
 0x390   :  { %6295 = vst [vmem:[#allocation43_spill] sm:$0xff] %v5317_v33  ;;  %v1911_v13 = vsel %vm1475_vm10, %v1908_v16, %v1910_v22  ;;  %v1537_v43 = vrot.slane %v1249_v56, 7  ;;  %2444 = vrot.lane.b32.xlu1 %v5317_v33, %s4103_s19  ;;  %v6297_v22 = vld [vmem:[#allocation13_spill] sm:$0xff]  ;;  %v1762_v1 = vsel %vm1471_vm2, %v1761_v14, %v6298_v24  ;;  %v1596_v61 = vsel %vm1475_vm10, %v1593_v34, %v1595_v12 }
 0x391   :  { %v1912_v25 = vsel %vm1477_vm13, %v1908_v16, %v1911_v13  ;;  %v5334_v54 = vpop.permute.xlu1 %1256  ;;  %v1652_v16 = vsel %vm1475_vm10, %v1649_v21, %v1651_v7  ;;  %v1485_v12 = vsel %vm1477_vm13, %v5267_v35, %v1484_v20 }
 0x392   :  { %v1538_v56 = vsel %vm1471_vm2, %v1537_v43, %v6297_v22  ;;  %2422 = vrot.lane.b32.xlu0 %v5308_v38, %s4103_s19  ;;  %v2227_v4 = vcombine.low %v1856_v45, %v1912_v25  ;;  %v1653_v40 = vsel %vm1477_vm13, %v1649_v21, %v1652_v16  ;;  %v1597_v16 = vsel %vm1477_vm13, %v1593_v34, %v1596_v61 }
 0x393   :  { %v1539_v13 = vsel %vm1473_vm7, %v1537_v43, %v1538_v56  ;;  %v1285_v33 = vpop.permute.xlu0 %1284  ;;  %v2056_v56 = vcombine.low %v1492_v53, %v1548_v39  ;;  %v1763_v39 = vsel %vm1473_vm7, %v1761_v14, %v1762_v1  ;;  %v2029_v20 = vcombine.low %v1597_v16, %v1653_v40 }
 0x394   :  { %v1540_v37 = vsel %vm1475_vm10, %v1537_v43, %v1539_v13  ;;  %v1600_v22 = vrot.slane %v1285_v33, 7  ;;  %2430 = vrot.lane.b32.xlu1 %v5338_v10, %s4103_s19  ;;  %v5359_v45 = vrot.slane %v2227_v4, %v4922_v30  ;;  %v6299_v4 = vld [vmem:[#allocation15_spill] sm:$0xff]  ;;  %v1873_v34 = vrot.slane %v5114_v51, 7 }
 0x395   :  { %v1541_v7 = vsel %vm1477_vm13, %v1537_v43, %v1540_v37  ;;  %v5363_v25 = vpop.permute.xlu1 %1288  ;;  %v1706_v43 = vsel %vm1471_vm2, %v1705_v59, %v6299_v4  ;;  %v5389_v35 = vrot.slane %v2056_v56, %v4922_v30 }
 0x396   :  { %v1601_v0 = vsel %vm1471_vm2, %v1600_v22, %v5044_v27  ;;  %2438 = vrot.lane.b32.xlu0 %v5359_v45, %s4103_s19  ;;  %v5372_v33 = vcombine.high %v5359_v45, %v6278_v62  ;;  %v2020_v21 = vcombine.low %v1485_v12, %v1541_v7  ;;  %v1707_v1 = vsel %vm1473_vm7, %v1705_v59, %v1706_v43 }
 0x397   :  { %v1317_v13 = vpop.permute.xlu0 %1316  ;;  %v1602_v27 = vsel %vm1473_vm7, %v1600_v22, %v1601_v0  ;;  %6300 = vst [vmem:[#allocation14_spill] sm:$0xff] %v5389_v35  ;;  %v1764_v7 = vsel %vm1475_vm10, %v1761_v14, %v1763_v39  ;;  %v5397_v0 = vrot.slane %v5105_v26, 7 }
 0x398   :  { %v1656_v53 = vrot.slane %v1317_v13, 7  ;;  %2446 = vrot.lane.b32.xlu1 %v5372_v33, %s4103_s19  ;;  %v5386_v37 = vrot.slane %v2020_v21, %v4922_v30  ;;  %v1603_v12 = vsel %vm1475_vm10, %v1600_v22, %v1602_v27  ;;  %v1765_v26 = vsel %vm1477_vm13, %v1761_v14, %v1764_v7  ;;  %v6302_v21 = vld [vmem:[#allocation19_spill] sm:$0xff] }
 0x399   :  { %v5383_v24 = vpop.permute.xlu1 %1320  ;;  %v1874_v16 = vsel %vm1471_vm2, %v1873_v34, %v6302_v21  ;;  %v5418_v27 = vrot.slane %v5163_v3, 7  ;;  %v5430_v7 = vcombine.high %v5389_v35, %v6278_v62  ;;  %v5433_v3 = vrot.slane %v2029_v20, %v4922_v30 }
 0x39a   :  { %v1657_v61 = vsel %vm1471_vm2, %v1656_v53, %v5059_v48  ;;  %2352 = vrot.lane.b32.xlu0 %v5386_v37, %s4103_s19  ;;  %v5405_v40 = vcombine.high %v5386_v37, %v6278_v62  ;;  %v1708_v48 = vsel %vm1475_vm10, %v1705_v59, %v1707_v1 }
 0x39b   :  { %v1658_v4 = vsel %vm1473_vm7, %v1656_v53, %v1657_v61  ;;  %v1349_v56 = vpop.permute.xlu0 %1348  ;;  %v1604_v61 = vsel %vm1477_vm13, %v1600_v22, %v1603_v12  ;;  %6304 = vst [vmem:[#allocation16_spill] sm:$0xff] %v5433_v3  ;;  %v1709_v22 = vsel %vm1477_vm13, %v1705_v59, %v1708_v48 }
 0x39c   :  { %6301 = vst [vmem:[#allocation13_spill] sm:$0xff] %v5405_v40  ;;  %v1659_v51 = vsel %vm1475_vm10, %v1656_v53, %v1658_v4  ;;  %v1712_v43 = vrot.slane %v1349_v56, 7  ;;  %2360 = vrot.lane.b32.xlu1 %v5405_v40, %s4103_s19  ;;  %v6303_v4 = vld [vmem:[#allocation17_spill] sm:$0xff] }
 0x39d   :  { %v1660_v39 = vsel %vm1477_vm13, %v1656_v53, %v1659_v51  ;;  %v5413_v13 = vpop.permute.xlu1 %1352  ;;  %v1818_v14 = vsel %vm1471_vm2, %v5397_v0, %v6303_v4  ;;  %v6305_v51 = vld [vmem:[#allocation18_spill] sm:$0xff]  ;;  %v1875_v4 = vsel %vm1473_vm7, %v1873_v34, %v1874_v16 }
 0x39e   :  { %v1713_v1 = vsel %vm1471_vm2, %v1712_v43, %v5076_v50  ;;  %2368 = vrot.lane.b32.xlu0 %v5389_v35, %s4103_s19  ;;  %v2065_v56 = vcombine.low %v1604_v61, %v1660_v39  ;;  %v5438_v21 = vrot.slane %v6305_v51, 7  ;;  %v2038_v35 = vcombine.low %v1709_v22, %v1765_v26  ;;  %v6306_v39 = vld [vmem:[#allocation20_spill] sm:$0xff]  ;;  %v6308_v51 = vld [vmem:[#allocation11_spill] sm:$0xff] }
 0x39f   :  { %v1381_v53 = vpop.permute.xlu0 %1380  ;;  %v1714_v50 = vsel %vm1473_vm7, %v1712_v43, %v1713_v1  ;;  %v1819_v20 = vsel %vm1473_vm7, %v5397_v0, %v1818_v14  ;;  %v1580_v59 = vsel %vm1471_vm2, %v5418_v27, %v6306_v39  ;;  %v5458_v26 = vcombine.high %v5433_v3, %v6278_v62 }
 0x3a0   :  { %v1768_v12 = vrot.slane %v1381_v53, 7  ;;  %2376 = vrot.lane.b32.xlu1 %v5430_v7, %s4103_s19  ;;  %v1715_v61 = vsel %vm1475_vm10, %v1712_v43, %v1714_v50  ;;  %v5461_v14 = vrot.slane %v2065_v56, %v4922_v30  ;;  %v1876_v53 = vsel %vm1475_vm10, %v1873_v34, %v1875_v4 }
 0x3a1   :  { %v5443_v40 = vpop.permute.xlu1 %1384  ;;  %v1524_v50 = vsel %vm1471_vm2, %v5438_v21, %v6308_v51  ;;  %v1820_v39 = vsel %vm1475_vm10, %v5397_v0, %v1819_v20  ;;  %v5478_v4 = vrot.slane %v2038_v35, %v4922_v30  ;;  %v1716_v20 = vsel %vm1477_vm13, %v1712_v43, %v1715_v61 }
 0x3a2   :  { %v1769_v48 = vsel %vm1471_vm2, %v1768_v12, %v5084_v46  ;;  %2354 = vrot.lane.b32.xlu0 %v5433_v3, %s4103_s19  ;;  %6307 = vst [vmem:[#allocation15_spill] sm:$0xff] %v5461_v14  ;;  %v5494_v35 = vcombine.high %v5461_v14, %v6278_v62  ;;  %v1525_v43 = vsel %vm1473_vm7, %v5438_v21, %v1524_v50  ;;  %v5504_v61 = vrot.slane %v5249_v18, 7 }
 0x3a3   :  { %v1770_v16 = vsel %vm1473_vm7, %v1768_v12, %v1769_v48  ;;  %v1413_v1 = vpop.permute.xlu0 %1412  ;;  %v1581_v48 = vsel %vm1473_vm7, %v5418_v27, %v1580_v59  ;;  %6309 = vst [vmem:[#allocation19_spill] sm:$0xff] %v5478_v4 }
 0x3a4   :  { %v1771_v22 = vsel %vm1475_vm10, %v1768_v12, %v1770_v16  ;;  %v1824_v46 = vrot.slane %v1413_v1, 7  ;;  %2362 = vrot.lane.b32.xlu1 %v5458_v26, %s4103_s19  ;;  %v5481_v16 = vrot.slane %v5186_v15, 7  ;;  %v5484_v1 = vrot.slane %v5204_v58, 7  ;;  %6310 = vst [vmem:[#allocation17_spill] sm:$0xff] %v5494_v35 }
 0x3a5   :  { %v1772_v3 = vsel %vm1477_vm13, %v1768_v12, %v1771_v22  ;;  %v5475_v56 = vpop.permute.xlu1 %1416  ;;  %v1877_v12 = vsel %vm1477_vm13, %v1873_v34, %v1876_v53  ;;  %v1582_v34 = vsel %vm1475_vm10, %v5418_v27, %v1581_v48 }
 0x3a6   :  { %v1825_v59 = vsel %vm1471_vm2, %v1824_v46, %v5124_v63  ;;  %2370 = vrot.lane.b32.xlu0 %v5461_v14, %s4103_s19  ;;  %v2074_v15 = vcombine.low %v1716_v20, %v1772_v3  ;;  %v1821_v63 = vsel %vm1477_vm13, %v5397_v0, %v1820_v39  ;;  %v5512_v3 = vcombine.high %v5478_v4, %v6278_v62  ;;  %v6311_v20 = vld [vmem:[#allocation21_spill] sm:$0xff]  ;;  %v6312_v0 = vld [vmem:[#allocation22_spill] sm:$0xff] }
 0x3a7   :  { %v1445_v22 = vpop.permute.xlu0 %1444  ;;  %v1826_v51 = vsel %vm1473_vm7, %v1824_v46, %v1825_v59  ;;  %v1636_v50 = vsel %vm1471_vm2, %v5481_v16, %v6311_v20  ;;  %v1692_v39 = vsel %vm1471_vm2, %v5484_v1, %v6312_v0  ;;  %v2047_v48 = vcombine.low %v1821_v63, %v1877_v12 }
 0x3a8   :  { %v1880_v58 = vrot.slane %v1445_v22, 7  ;;  %2378 = vrot.lane.b32.xlu1 %v5494_v35, %s4103_s19  ;;  %v5523_v59 = vrot.slane %v5231_v32, 7  ;;  %v1827_v22 = vsel %vm1475_vm10, %v1824_v46, %v1826_v51  ;;  %v5530_v20 = vrot.slane %v2074_v15, %v4922_v30 }
 0x3a9   :  { %v5508_v53 = vpop.permute.xlu1 %1448  ;;  %v1583_v0 = vsel %vm1477_vm13, %v5418_v27, %v1582_v34  ;;  %v1526_v32 = vsel %vm1475_vm10, %v5438_v21, %v1525_v43  ;;  %v5538_v12 = vrot.slane %v4862_v23, 7  ;;  %v1637_v51 = vsel %vm1473_vm7, %v5481_v16, %v1636_v50 }
 0x3aa   :  { %v1881_v18 = vsel %vm1471_vm2, %v1880_v58, %v5136_v49  ;;  %2356 = vrot.lane.b32.xlu0 %v5478_v4, %s4103_s19  ;;  %v1693_v63 = vsel %vm1473_vm7, %v5484_v1, %v1692_v39  ;;  %v1551_v43 = vrot.slane %v5334_v54, 7  ;;  %v1828_v23 = vsel %vm1477_vm13, %v1824_v46, %v1827_v22  ;;  %v6314_v4 = vld [vmem:[#allocation23_spill] sm:$0xff] }
 0x3ab   :  { %v1882_v14 = vsel %vm1473_vm7, %v1880_v58, %v1881_v18  ;;  %v2401_v35 = vpop.permute.xlu0 %2400  ;;  %v6313_v18 = vld [vmem:[#allocation24_spill] sm:$0xff]  ;;  %v1748_v39 = vsel %vm1471_vm2, %v5523_v59, %v6314_v4  ;;  %v5564_v54 = vrot.slane %v2047_v48, %v4922_v30  ;;  %v1527_v4 = vsel %vm1477_vm13, %v5438_v21, %v1526_v32 }
 0x3ac   :  { %v1883_v49 = vsel %vm1475_vm10, %v1880_v58, %v1882_v14  ;;  %v1804_v15 = vsel %vm1471_vm2, %v5504_v61, %v6313_v18  ;;  %2364 = vrot.lane.b32.xlu1 %v5512_v3, %s4103_s19  ;;  %v2560_v34 = vmax.f32 %v4949_v41, %v2401_v35  ;;  %v1638_v35 = vsel %vm1475_vm10, %v5481_v16, %v1637_v51  ;;  %v6317_v51 = vld [vmem:[#allocation27_spill] sm:$0xff] }
 0x3ad   :  { %v1884_v27 = vsel %vm1477_vm13, %v1880_v58, %v1883_v49  ;;  %v2409_v14 = vpop.permute.xlu1 %2408  ;;  %v5561_v49 = vcombine.high %v5530_v20, %v6278_v62  ;;  %6315 = vst [vmem:[#allocation18_spill] sm:$0xff] %v5564_v54  ;;  %v1805_v41 = vsel %vm1473_vm7, %v5504_v61, %v1804_v15  ;;  %v1694_v22 = vsel %vm1475_vm10, %v5484_v1, %v1693_v63 }
 0x3ae   :  { %v2564_v50 = vmax.f32 %v4968_v36, %v2409_v14  ;;  %2372 = vrot.lane.b32.xlu0 %v5530_v20, %s4103_s19  ;;  %v2083_v46 = vcombine.low %v1828_v23, %v1884_v27  ;;  %v2236_v18 = vcombine.low %v1527_v4, %v1583_v0  ;;  %v6316_v27 = vld [vmem:[#allocation12_spill] sm:$0xff]  ;;  %v1749_v14 = vsel %vm1473_vm7, %v5523_v59, %v1748_v39 }
 0x3af   :  { %v2403_v58 = vpop.permute.xlu0 %2402  ;;  %v1496_v15 = vsel %vm1471_vm2, %v5538_v12, %v6316_v27  ;;  %v1552_v21 = vsel %vm1471_vm2, %v1551_v43, %v5038_v57  ;;  %v1806_v63 = vsel %vm1475_vm10, %v5504_v61, %v1805_v41  ;;  %v1750_v41 = vsel %vm1475_vm10, %v5523_v59, %v1749_v14 }
 0x3b0   :  { %v5568_v36 = vcombine.low %v2560_v34, %v2564_v50  ;;  %2380 = vrot.lane.b32.xlu1 %v5561_v49, %s4103_s19  ;;  %v2561_v32 = vmax.f32 %v4971_v55, %v2403_v58  ;;  %v1663_v34 = vrot.slane %v5383_v24, 7  ;;  %v5594_v50 = vcombine.high %v5564_v54, %v6278_v62 }
 0x3b1   :  { %v2411_v48 = vpop.permute.xlu1 %2410  ;;  %v5597_v39 = vrot.slane %v2083_v46, %v4922_v30  ;;  %v1695_v55 = vsel %vm1477_vm13, %v5484_v1, %v1694_v22  ;;  %v1497_v58 = vsel %vm1473_vm7, %v5538_v12, %v1496_v15  ;;  %v1639_v24 = vsel %vm1477_vm13, %v5481_v16, %v1638_v35  ;;  %v6319_v22 = vld [vmem:[#allocation28_spill] sm:$0xff]  ;;  %v6320_v15 = vld [vmem:[#allocation29_spill] sm:$0xff] }
 0x3b2   :  { %v2565_v23 = vmax.f32 %v6317_v51, %v2411_v48  ;;  %2358 = vrot.lane.b32.xlu0 %v5564_v54, %s4103_s19  ;;  %v1553_v4 = vsel %vm1473_vm7, %v1551_v43, %v1552_v21  ;;  %v1607_v48 = vrot.slane %v5363_v25, 7  ;;  %v1807_v1 = vsel %vm1477_vm13, %v5504_v61, %v1806_v63  ;;  %v6321_v35 = vld [vmem:[#allocation37_spill] sm:$0xff] }
 0x3b3   :  { %v2405_v0 = vpop.permute.xlu0 %2404  ;;  %6318 = vst [vmem:[#allocation20_spill] sm:$0xff] %v5597_v39  ;;  %v5618_v16 = vrot.slane %v2236_v18, %v4922_v30  ;;  %v1664_v14 = vsel %vm1471_vm2, %v1663_v34, %v6321_v35  ;;  %v1775_v21 = vrot.slane %v5443_v40, 7  ;;  %v5627_v51 = vcombine.high %v5597_v39, %v6278_v62  ;;  %v6326_v35 = vld [vmem:[#allocation40_spill] sm:$0xff] }
 0x3b4   :  { %v5601_v57 = vcombine.low %v2561_v32, %v2565_v23  ;;  %2366 = vrot.lane.b32.xlu1 %v5594_v50, %s4103_s19  ;;  %v2562_v27 = vmax.f32 %v6319_v22, %v2405_v0  ;;  %v2245_v61 = vcombine.low %v1639_v24, %v1695_v55  ;;  %v1751_v23 = vsel %vm1477_vm13, %v5523_v59, %v1750_v41  ;;  %v6323_v0 = vld [vmem:[#allocation35_spill] sm:$0xff]  ;;  %v6324_v59 = vld [vmem:[#allocation30_spill] sm:$0xff] }
 0x3b5   :  { %v2413_v46 = vpop.permute.xlu1 %2412  ;;  %6322 = vst [vmem:[#allocation11_spill] sm:$0xff] %v5627_v51  ;;  %v1554_v18 = vsel %vm1475_vm10, %v1551_v43, %v1553_v4  ;;  %v1719_v40 = vrot.slane %v5413_v13, 7  ;;  %v1498_v55 = vsel %vm1475_vm10, %v5538_v12, %v1497_v58  ;;  %v1665_v24 = vsel %vm1473_vm7, %v1663_v34, %v1664_v14  ;;  %v6325_v4 = vld [vmem:[#allocation31_spill] sm:$0xff] }
 0x3b6   :  { %v2566_v32 = vmax.f32 %v6320_v15, %v2413_v46  ;;  %2374 = vrot.lane.b32.xlu0 %v5597_v39, %s4103_s19  ;;  %v1608_v46 = vsel %vm1471_vm2, %v1607_v48, %v6323_v0  ;;  %v2254_v15 = vcombine.low %v1751_v23, %v1807_v1  ;;  %v1555_v13 = vsel %vm1477_vm13, %v1551_v43, %v1554_v18  ;;  %v6333_v39 = vld [vmem:[#allocation25_spill] sm:$0xff] }
 0x3b7   :  { %v2407_v25 = vpop.permute.xlu0 %2406  ;;  %v1776_v0 = vsel %vm1471_vm2, %v1775_v21, %v6326_v35  ;;  %v1887_v1 = vrot.slane %v5508_v53, 7  ;;  %v5655_v14 = vrot.slane %v2245_v61, %v4922_v30  ;;  %v1609_v23 = vsel %vm1473_vm7, %v1607_v48, %v1608_v46  ;;  %v6329_v35 = vld [vmem:[#allocation33_spill] sm:$0xff] }
 0x3b8   :  { %v5632_v63 = vcombine.low %v2562_v27, %v2566_v32  ;;  %2382 = vrot.lane.b32.xlu1 %v5627_v51, %s4103_s19  ;;  %v2563_v41 = vmax.f32 %v6324_v59, %v2407_v25  ;;  %v5646_v32 = vcombine.high %v5618_v16, %v6278_v62  ;;  %v1915_v25 = vrot.slane %v5305_v60, 7  ;;  %v6327_v59 = vld [vmem:[#allocation38_spill] sm:$0xff] }
 0x3b9   :  { %v2415_v22 = vpop.permute.xlu1 %2414  ;;  %v1499_v43 = vsel %vm1477_vm13, %v5538_v12, %v1498_v55  ;;  %v1666_v18 = vsel %vm1475_vm10, %v1663_v34, %v1665_v24  ;;  %v1720_v53 = vsel %vm1471_vm2, %v1719_v40, %v6327_v59  ;;  %v5670_v60 = vrot.slane %v2254_v15, %v4922_v30 }
 0x3ba   :  { %v2567_v27 = vmax.f32 %v6325_v4, %v2415_v22  ;;  %2448 = vrot.lane.b32.xlu0 %v5618_v16, %s4103_s19  ;;  %v1831_v4 = vrot.slane %v5475_v56, 7  ;;  %v1777_v46 = vsel %vm1473_vm7, %v1775_v21, %v1776_v0  ;;  %v2092_v55 = vcombine.low %v1499_v43, %v1555_v13 }
 0x3bb   :  { %v2337_v58 = vpop.permute.xlu0 %2336  ;;  %v1610_v24 = vsel %vm1475_vm10, %v1607_v48, %v1609_v23  ;;  %v1888_v59 = vsel %vm1471_vm2, %v1887_v1, %v5145_v52  ;;  %v5682_v56 = vcombine.high %v5655_v14, %v6278_v62  ;;  %v1667_v15 = vsel %vm1477_vm13, %v1663_v34, %v1666_v18  ;;  %v6330_v23 = vld [vmem:[#allocation26_spill] sm:$0xff] }
 0x3bc   :  { %v5659_v22 = vcombine.low %v2563_v41, %v2567_v27  ;;  %2456 = vrot.lane.b32.xlu1 %v5646_v32, %s4103_s19  ;;  %v6328_v41 = vld [vmem:[#allocation32_spill] sm:$0xff]  ;;  %v1721_v0 = vsel %vm1473_vm7, %v1719_v40, %v1720_v53  ;;  %v1859_v13 = vrot.slane %v5280_v5, 7  ;;  %v1916_v43 = vsel %vm1471_vm2, %v1915_v25, %v6330_v23 }
 0x3bd   :  { %v2345_v61 = vpop.permute.xlu1 %2344  ;;  %v2528_v27 = vmax.f32 %v6328_v41, %v2337_v58  ;;  %v1778_v52 = vsel %vm1475_vm10, %v1775_v21, %v1777_v46  ;;  %v1832_v41 = vsel %vm1471_vm2, %v1831_v4, %v5132_v47  ;;  %v1611_v34 = vsel %vm1477_vm13, %v1607_v48, %v1610_v24  ;;  %v6332_v47 = vld [vmem:[#allocation36_spill] sm:$0xff] }
 0x3be   :  { %v2532_v12 = vmax.f32 %v6329_v35, %v2345_v61  ;;  %2450 = vrot.lane.b32.xlu0 %v5655_v14, %s4103_s19  ;;  %v1889_v18 = vsel %vm1473_vm7, %v1887_v1, %v1888_v59  ;;  %v5703_v5 = vrot.slane %v2092_v55, %v4922_v30  ;;  %v1722_v46 = vsel %vm1475_vm10, %v1719_v40, %v1721_v0  ;;  %v6331_v35 = vld [vmem:[#allocation34_spill] sm:$0xff] }
 0x3bf   :  { %v2101_v48 = vcombine.low %v1611_v34, %v1667_v15  ;;  %v1779_v24 = vsel %vm1477_vm13, %v1775_v21, %v1778_v52  ;;  %v1833_v59 = vsel %vm1473_vm7, %v1831_v4, %v1832_v41  ;;  %v1860_v51 = vsel %vm1471_vm2, %v1859_v13, %v6333_v39 }
 0x3c0   :  { %v5686_v58 = vcombine.low %v2528_v27, %v2532_v12  ;;  %v2339_v61 = vpop.permute.xlu0 %2338  ;;  %2458 = vrot.lane.b32.xlu1 %v5682_v56, %s4103_s19  ;;  %v5700_v27 = vcombine.high %v5670_v60, %v6278_v62  ;;  %v1890_v55 = vsel %vm1475_vm10, %v1887_v1, %v1889_v18  ;;  %v1917_v0 = vsel %vm1473_vm7, %v1915_v25, %v1916_v43 }
 0x3c1   :  { %v2529_v12 = vmax.f32 %v6331_v35, %v2339_v61  ;;  %v1723_v61 = vsel %vm1477_vm13, %v1719_v40, %v1722_v46  ;;  %v1834_v15 = vsel %vm1475_vm10, %v1831_v4, %v1833_v59  ;;  %v5726_v21 = vcombine.high %v5703_v5, %v6278_v62 }
 0x3c2   :  { %v2347_v53 = vpop.permute.xlu1 %2346  ;;  %2452 = vrot.lane.b32.xlu0 %v5670_v60, %s4103_s19  ;;  %v5729_v39 = vrot.slane %v2101_v48, %v4922_v30  ;;  %v2110_v52 = vcombine.low %v1723_v61, %v1779_v24  ;;  %v1861_v41 = vsel %vm1473_vm7, %v1859_v13, %v1860_v51  ;;  %v1891_v34 = vsel %vm1477_vm13, %v1887_v1, %v1890_v55  ;;  %v6334_v24 = vld [vmem:[#allocation39_spill] sm:$0xff]  ;;  %v6335_v55 = vld [vmem:[#allocation41_spill] sm:$0xff] }
 0x3c3   :  { %v2533_v23 = vmax.f32 %v6332_v47, %v2347_v53  ;;  %v1918_v43 = vsel %vm1475_vm10, %v1915_v25, %v1917_v0  ;;  %v1835_v40 = vsel %vm1477_vm13, %v1831_v4, %v1834_v15  ;;  %v1862_v18 = vsel %vm1475_vm10, %v1859_v13, %v1861_v41 }
 0x3c4   :  { %2460 = vrot.lane.b32.xlu1 %v5700_v27, %s4103_s19  ;;  %v5742_v53 = vcombine.high %v5729_v39, %v6278_v62  ;;  %v5745_v51 = vrot.slane %v2110_v52, %v4922_v30  ;;  %v2119_v1 = vcombine.low %v1835_v40, %v1891_v34  ;;  %v1919_v46 = vsel %vm1477_vm13, %v1915_v25, %v1918_v43 }
 0x3c5   :  { %v5715_v54 = vcombine.low %v2529_v12, %v2533_v23  ;;  %v1863_v4 = vsel %vm1477_vm13, %v1859_v13, %v1862_v18  ;;  %vm3290_vm2 = vcmask 457728  }
 0x3c6   :  { %2384 = vrot.lane.b32.xlu0 %v5703_v5, %s4103_s19  ;;  %v5755_v35 = vcombine.high %v5745_v51, %v6278_v62  ;;  %v5758_v12 = vrot.slane %v2119_v1, %v4922_v30  ;;  %v2263_v47 = vcombine.low %v1863_v4, %v1919_v46 }
 0x3c8   :  { %2392 = vrot.lane.b32.xlu1 %v5726_v21, %s4103_s19  ;;  %v5766_v25 = vcombine.high %v5758_v12, %v6278_v62  ;;  %v5769_v13 = vrot.slane %v2263_v47, %v4922_v30 }
 0x3ca   :  { %2386 = vrot.lane.b32.xlu0 %v5729_v39, %s4103_s19  ;;  %v5779_v61 = vcombine.high %v5769_v13, %v6278_v62 }
 0x3cc   :  { %2394 = vrot.lane.b32.xlu1 %v5742_v53, %s4103_s19  ;;  %6336 = vst [vmem:[#allocation21_spill] sm:$0xff] %v5779_v61 }
 0x3ce   :  { %2388 = vrot.lane.b32.xlu0 %v5745_v51, %s4103_s19 }
 0x3d0   :  { %2396 = vrot.lane.b32.xlu1 %v5755_v35, %s4103_s19 }
 0x3d2   :  { %2390 = vrot.lane.b32.xlu0 %v5758_v12, %s4103_s19 }
 0x3d4   :  { %v2341_v23 = vpop.permute.xlu0 %2340  ;;  %2398 = vrot.lane.b32.xlu1 %v5766_v25, %s4103_s19 }
 0x3d5   :  { %v2530_v59 = vmax.f32 %v6334_v24, %v2341_v23  ;;  %v5793_v23 = vrot.slane %v5568_v36, %v4922_v30 }
 0x3d6   :  { %v2349_v48 = vpop.permute.xlu1 %2348  ;;  %2454 = vrot.lane.b32.xlu0 %v5769_v13, %s4103_s19 }
 0x3d7   :  { %v2534_v0 = vmax.f32 %v6335_v55, %v2349_v48 }
 0x3d8   :  { %2462 = vrot.lane.b32.xlu1 %v5779_v61, %s4103_s19 }
 0x3d9   :  { %v5781_v15 = vcombine.low %v2530_v59, %v2534_v0 }
 0x3e4   :  { %v2343_v52 = vpop.permute.xlu0 %2342 }
 0x3e5   :  { %v2531_v34 = vmax.f32 %v5142_v29, %v2343_v52 }
 0x3e6   :  { %v2351_v41 = vpop.permute.xlu1 %2350 }
 0x3e7   :  { %v2535_v43 = vmax.f32 %v5152_v11, %v2351_v41  ;;  %v5890_v11 = vrot.slane %v5781_v15, %v4922_v30 }
 0x3e8   :  { %v2417_v40 = vpop.permute.xlu0 %2416 }
 0x3e9   :  { %v5787_v18 = vcombine.low %v2531_v34, %v2535_v43  ;;  %v2568_v46 = vmax.f32 %v5155_v9, %v2417_v40 }
 0x3ea   :  { %v2425_v1 = vpop.permute.xlu1 %2424 }
 0x3eb   :  { %v2572_v4 = vmax.f32 %v5175_v42, %v2425_v1  ;;  %v5810_v1 = vrot.slane %v5601_v57, %v4922_v30  ;;  %v5894_v29 = vrot.slane %v5787_v18, %v4922_v30 }
 0x3ed   :  { %v2757_v47 = vcombine.low %v2568_v46, %v2572_v4  ;;  %6343 = vst [vmem:[#allocation12_spill] sm:$0xff] %v5894_v29 }
 0x3ef   :  { %v5796_v48 = vrot.slane %v2757_v47, %v4922_v30 }
 0x3f0   :  { %v2433_v24 = vpop.permute.xlu0 %2432 }
 0x3f1   :  { %v2576_v9 = vmax.f32 %v5201_v17, %v2433_v24 }
 0x3f2   :  { %v2441_v59 = vpop.permute.xlu1 %2440 }
 0x3f3   :  { %v2580_v42 = vmax.f32 %v5215_v44, %v2441_v59 }
 0x3f4   :  { %v2419_v55 = vpop.permute.xlu0 %2418 }
 0x3f5   :  { %v5804_v0 = vcombine.low %v2576_v9, %v2580_v42  ;;  %v2569_v52 = vmax.f32 %v5195_v6, %v2419_v55 }
 0x3f6   :  { %v2427_v36 = vpop.permute.xlu1 %2426 }
 0x3f7   :  { %v2573_v41 = vmax.f32 %v5225_v2, %v2427_v36  ;;  %v6337_v36 = vld [vmem:[#allocation42_spill] sm:$0xff]  ;;  %v2773_v18 = vrot.slane %v5804_v0, %v4922_v30 }
 0x3f8   :  { %v2435_v34 = vpop.permute.xlu0 %2434 }
 0x3f9   :  { %v2793_v43 = vcombine.low %v2569_v52, %v2573_v41  ;;  %v2577_v17 = vmax.f32 %v5243_v19, %v2435_v34  ;;  %v5827_v19 = vrot.slane %v5632_v63, %v4922_v30  ;;  %v6338_v41 = vld [vmem:[#allocation43_spill] sm:$0xff] }
 0x3fa   :  { %v2443_v40 = vpop.permute.xlu1 %2442 }
 0x3fb   :  { %v5813_v46 = vrot.slane %v2793_v43, %v4922_v30  ;;  %v2581_v44 = vmax.f32 %v5258_v8, %v2443_v40 }
 0x3fc   :  { %v2421_v4 = vpop.permute.xlu0 %2420 }
 0x3fd   :  { %v5821_v47 = vcombine.low %v2577_v17, %v2581_v44  ;;  %v2570_v57 = vmax.f32 %v5261_v28, %v2421_v4 }
 0x3fe   :  { %v2429_v24 = vpop.permute.xlu1 %2428 }
 0x3ff   :  { %v2574_v59 = vmax.f32 %v5288_v31, %v2429_v24  ;;  %v5884_v31 = vrot.slane %v5715_v54, %v4922_v30  ;;  %v6345_v54 = vcombine.low %v5793_v23, %v5796_v48 }
 0x400   :  { %v2437_v9 = vpop.permute.xlu0 %2436 }
 0x401   :  { %v2829_v42 = vcombine.low %v2570_v57, %v2574_v59  ;;  %v2578_v52 = vmax.f32 %v6337_v36, %v2437_v9  ;;  %v5844_v59 = vrot.slane %v5659_v22, %v4922_v30 }
 0x402   :  { %v2445_v55 = vpop.permute.xlu1 %2444 }
 0x403   :  { %v5830_v8 = vrot.slane %v2829_v42, %v4922_v30  ;;  %v2582_v34 = vmax.f32 %v6338_v41, %v2445_v55  ;;  %6339 = vst [vmem:[#allocation22_spill] sm:$0xff] %v5844_v59 }
 0x404   :  { %v2423_v43 = vpop.permute.xlu0 %2422 }
 0x405   :  { %v3105_v28 = vcombine.low %v5827_v19, %v5830_v8  ;;  %v5838_v40 = vcombine.low %v2578_v52, %v2582_v34  ;;  %v2571_v63 = vmax.f32 %v5308_v38, %v2423_v43  ;;  %v6342_v34 = vld [vmem:[#allocation13_spill] sm:$0xff] }
 0x406   :  { %v2431_v17 = vpop.permute.xlu1 %2430 }
 0x407   :  { %v2575_v44 = vmax.f32 %v5338_v10, %v2431_v17 }
 0x408   :  { %v2439_v4 = vpop.permute.xlu0 %2438 }
 0x409   :  { %v2865_v24 = vcombine.low %v2571_v63, %v2575_v44  ;;  %v2579_v42 = vmax.f32 %v5359_v45, %v2439_v4  ;;  %v2611_v45 = vrot.slane %v5686_v58, %v4922_v30 }
 0x40a   :  { %v2447_v57 = vpop.permute.xlu1 %2446 }
 0x40b   :  { %v5847_v9 = vrot.slane %v2865_v24, %v4922_v30  ;;  %v2583_v55 = vmax.f32 %v5372_v33, %v2447_v57 }
 0x40c   :  { %v2353_v52 = vpop.permute.xlu0 %2352 }
 0x40d   :  { %6340 = vst [vmem:[#allocation24_spill] sm:$0xff] %v5847_v9  ;;  %v5855_v10 = vcombine.low %v2579_v42, %v2583_v55  ;;  %v2536_v22 = vmax.f32 %v5386_v37, %v2353_v52 }
 0x40e   :  { %v2361_v41 = vpop.permute.xlu1 %2360 }
 0x40f   :  { %6341 = vst [vmem:[#allocation23_spill] sm:$0xff] %v5855_v10  ;;  %v2540_v43 = vmax.f32 %v6342_v34, %v2361_v41  ;;  %v6344_v10 = vld [vmem:[#allocation10_spill] sm:$0xff] }
 0x410   :  { %v2369_v17 = vpop.permute.xlu0 %2368 }
 0x411   :  { %v2613_v63 = vcombine.low %v2536_v22, %v2540_v43 }
 0x412   :  { %v2377_v44 = vpop.permute.xlu1 %2376 }
 0x413   :  { %v2620_v33 = vrot.slane %v2613_v63, %v4922_v30  ;;  %v2548_v62 = vmax.f32 %v5430_v7, %v2377_v44  ;;  %v6347_v7 = vcombine.low %v5810_v1, %v5813_v46 }
 0x414   :  { %v2355_v4 = vpop.permute.xlu0 %2354 }
 0x415   :  { %v2900_v24 = vcombine.low %v2611_v45, %v2620_v33  ;;  %v3729_v44 = vcombine.high %v2611_v45, %v2620_v33  ;;  %v2809_v45 = vrot.slane %v5821_v47, %v4922_v30 }
 0x416   :  { %v2363_v57 = vpop.permute.xlu1 %2362 }
 0x417   :  { %v2541_v9 = vmax.f32 %v5458_v26, %v2363_v57  ;;  %v5916_v26 = vrot.slane %v6347_v7, %v6344_v10  ;;  %v6348_v57 = vld [vmem:[#allocation14_spill] sm:$0xff]  ;;  %v5946_v47 = vrot.slane %v3729_v44, %v6344_v10 }
 0x418   :  { %v5862_v38 = vpop.permute.xlu0 %2370 }
 0x41a   :  { %v5864_v42 = vpop.permute.xlu1 %2378 }
 0x41c   :  { %v5866_v55 = vpop.permute.xlu0 %2356 }
 0x41e   :  { %v5868_v37 = vpop.permute.xlu1 %2364 }
 0x420   :  { %v5870_v52 = vpop.permute.xlu0 %2372 }
 0x422   :  { %v5872_v41 = vpop.permute.xlu1 %2380 }
 0x424   :  { %v5874_v22 = vpop.permute.xlu0 %2358 }
 0x426   :  { %v5876_v58 = vpop.permute.xlu1 %2366 }
 0x428   :  { %v5878_v34 = vpop.permute.xlu0 %2374 }
 0x42a   :  { %v5880_v43 = vpop.permute.xlu1 %2382 }
 0x42c   :  { %v2449_v63 = vpop.permute.xlu0 %2448 }
 0x42d   :  { %v2584_v2 = vmax.f32 %v5618_v16, %v2449_v63  ;;  %v5902_v16 = vrot.slane %v6345_v54, %v6344_v10  ;;  %v2544_v63 = vmax.f32 %v6348_v57, %v2369_v17  ;;  %v6349_v54 = vld [vmem:[#allocation16_spill] sm:$0xff]  ;;  %v5932_v17 = vrot.slane %v3105_v28, %v6344_v10 }
 0x42e   :  { %v2457_v36 = vpop.permute.xlu1 %2456  ;;  %v2537_v29 = vmax.f32 %v6349_v54, %v2355_v4 }
 0x42f   :  { %v2588_v6 = vmax.f32 %v5646_v32, %v2457_v36  ;;  %v6346_v32 = vcombine.high %v5793_v23, %v5796_v48  ;;  %v6350_v23 = vcombine.high %v5810_v1, %v5813_v46  ;;  %v2622_v33 = vcombine.low %v2544_v63, %v2548_v62 }
 0x430   :  { %v2451_v59 = vpop.permute.xlu0 %2450  ;;  %v2649_v4 = vcombine.low %v2537_v29, %v2541_v9  ;;  %v6351_v1 = vcombine.high %v5827_v19, %v5830_v8 }
 0x431   :  { %v5908_v15 = vrot.slane %v6346_v32, %v6344_v10  ;;  %v2775_v36 = vcombine.low %v2584_v2, %v2588_v6  ;;  %v5924_v48 = vrot.slane %v6350_v23, %v6344_v10  ;;  %v2585_v6 = vmax.f32 %v5655_v14, %v2451_v59 }
 0x432   :  { %v2459_v61 = vpop.permute.xlu1 %2458  ;;  %v5938_v46 = vrot.slane %v6351_v1, %v6344_v10  ;;  %v5959_v9 = vrot.slane %v2649_v4, %v4922_v30 }
 0x433   :  { %v2782_v0 = vrot.slane %v2775_v36, %v4922_v30  ;;  %v2589_v2 = vmax.f32 %v5682_v56, %v2459_v61  ;;  %v2845_v56 = vrot.slane %v5838_v40, %v4922_v30  ;;  %v5943_v61 = vrot.slane %v2900_v24, %v6344_v10  ;;  %v6352_v24 = vld [vmem:[#allocation17_spill] sm:$0xff] }
 0x434   :  { %v2453_v32 = vpop.permute.xlu0 %2452  ;;  %v2629_v40 = vrot.slane %v2622_v33, %v4922_v30 }
 0x435   :  { %v2918_v36 = vcombine.low %v2773_v18, %v2782_v0  ;;  %v3732_v7 = vcombine.high %v2773_v18, %v2782_v0  ;;  %v2811_v14 = vcombine.low %v2585_v6, %v2589_v2  ;;  %v2586_v62 = vmax.f32 %v5670_v60, %v2453_v32  ;;  %v6354_v6 = vld [vmem:[#allocation19_spill] sm:$0xff] }
 0x436   :  { %v2461_v29 = vpop.permute.xlu1 %2460  ;;  %v2549_v18 = vmax.f32 %v6352_v24, %v5864_v42  ;;  %v2542_v60 = vmax.f32 %v5512_v3, %v5868_v37  ;;  %v2538_v2 = vmax.f32 %v6354_v6, %v5866_v55 }
 0x437   :  { %v5950_v28 = vrot.slane %v2918_v36, %v6344_v10  ;;  %v5953_v19 = vrot.slane %v3732_v7, %v6344_v10  ;;  %v2818_v8 = vrot.slane %v2811_v14, %v4922_v30  ;;  %v2590_v59 = vmax.f32 %v5700_v27, %v2461_v29  ;;  %v6353_v27 = vld [vmem:[#allocation15_spill] sm:$0xff] }
 0x438   :  { %v2385_v44 = vpop.permute.xlu0 %2384  ;;  %v2545_v0 = vmax.f32 %v6353_v27, %v5862_v38  ;;  %v2992_v38 = vcombine.low %v5884_v31, %v5959_v9  ;;  %v2685_v1 = vcombine.low %v2538_v2, %v2542_v60  ;;  %v3733_v7 = vcombine.high %v5884_v31, %v5959_v9 }
 0x439   :  { %v2933_v57 = vcombine.low %v5902_v16, %v5950_v28  ;;  %v3010_v63 = vcombine.low %v2809_v45, %v2818_v8  ;;  %v3736_v54 = vcombine.high %v2809_v45, %v2818_v8  ;;  %v2847_v23 = vcombine.low %v2586_v62, %v2590_v59 }
 0x43a   :  { %v2552_v33 = vmax.f32 %v5703_v5, %v2385_v44  ;;  %v2393_v4 = vpop.permute.xlu1 %2392  ;;  %v2977_v42 = vcombine.low %v5908_v15, %v5953_v19  ;;  %v2658_v55 = vcombine.low %v2545_v0, %v2549_v18  ;;  %v2550_v5 = vmax.f32 %v5561_v49, %v5872_v41  ;;  %v6355_v44 = vld [vmem:[#allocation18_spill] sm:$0xff]  ;;  %v6356_v0 = vld [vmem:[#allocation11_spill] sm:$0xff]  ;;  %v6358_v19 = vld [vmem:[#allocation21_spill] sm:$0xff] }
 0x43b   :  { %v5975_v3 = vrot.slane %v3010_v63, %v6344_v10  ;;  %v5978_v37 = vrot.slane %v3736_v54, %v6344_v10  ;;  %v2854_v45 = vrot.slane %v2847_v23, %v4922_v30  ;;  %v2556_v32 = vmax.f32 %v5726_v21, %v2393_v4 }
 0x43c   :  { %v2387_v36 = vpop.permute.xlu0 %2386  ;;  %v2546_v8 = vmax.f32 %v5530_v20, %v5870_v52  ;;  %v2665_v20 = vrot.slane %v2658_v55, %v4922_v30  ;;  %v2543_v9 = vmax.f32 %v5594_v50, %v5876_v58  ;;  %v2539_v63 = vmax.f32 %v6355_v44, %v5874_v22 }
 0x43d   :  { %v3106_v14 = vcombine.low %v2845_v56, %v2854_v45  ;;  %v3740_v62 = vcombine.high %v2845_v56, %v2854_v45  ;;  %v2631_v29 = vcombine.low %v2552_v33, %v2556_v32  ;;  %v2553_v21 = vmax.f32 %v5729_v39, %v2387_v36  ;;  %v6357_v32 = vld [vmem:[#allocation20_spill] sm:$0xff] }
 0x43e   :  { %v2395_v59 = vpop.permute.xlu1 %2394  ;;  %v3073_v24 = vcombine.low %v5924_v48, %v5978_v37  ;;  %v3025_v18 = vcombine.low %v5916_v26, %v5975_v3  ;;  %v2692_v39 = vrot.slane %v2685_v1, %v4922_v30  ;;  %v2694_v52 = vcombine.low %v2546_v8, %v2550_v5 }
 0x43f   :  { %v5996_v49 = vrot.slane %v3106_v14, %v6344_v10  ;;  %v5999_v31 = vrot.slane %v3740_v62, %v6344_v10  ;;  %v2638_v41 = vrot.slane %v2631_v29, %v4922_v30  ;;  %v2557_v56 = vmax.f32 %v5742_v53, %v2395_v59 }
 0x440   :  { %v2389_v60 = vpop.permute.xlu0 %2388  ;;  %v2551_v6 = vmax.f32 %v6356_v0, %v5880_v43  ;;  %v3000_v43 = vrot.slane %v2992_v38, %v6344_v10  ;;  %v2721_v45 = vcombine.low %v2539_v63, %v2543_v9  ;;  %v2547_v55 = vmax.f32 %v6357_v32, %v5878_v34 }
 0x441   :  { %v2901_v54 = vcombine.low %v2629_v40, %v2638_v41  ;;  %v3730_v23 = vcombine.high %v2629_v40, %v2638_v41  ;;  %v2667_v27 = vcombine.low %v2553_v21, %v2557_v56  ;;  %v2554_v53 = vmax.f32 %v5745_v51, %v2389_v60 }
 0x442   :  { %v2397_v2 = vpop.permute.xlu1 %2396  ;;  %v3169_v33 = vcombine.low %v5938_v46, %v5999_v31  ;;  %v3121_v4 = vcombine.low %v5932_v17, %v5996_v49  ;;  %v3737_v51 = vcombine.high %v5890_v11, %v2692_v39  ;;  %v2701_v29 = vrot.slane %v2694_v52, %v4922_v30  ;;  %v6363_v46 = vld [vmem:[#allocation22_spill] sm:$0xff]  ;;  %v6364_v31 = vld [vmem:[#allocation24_spill] sm:$0xff] }
 0x443   :  { %v6017_v50 = vrot.slane %v2901_v54, %v6344_v10  ;;  %v2959_v22 = vrot.slane %v3730_v23, %v6344_v10  ;;  %v2674_v58 = vrot.slane %v2667_v27, %v4922_v30  ;;  %v2558_v40 = vmax.f32 %v5755_v35, %v2397_v2 }
 0x444   :  { %v2391_v1 = vpop.permute.xlu0 %2390  ;;  %v2730_v8 = vcombine.low %v2547_v55, %v2551_v6  ;;  %v3048_v9 = vrot.slane %v3733_v7, %v6344_v10  ;;  %v3144_v52 = vrot.slane %v3737_v51, %v6344_v10  ;;  %v6359_v6 = vld [vmem:[#allocation23_spill] sm:$0xff]  ;;  %v6366_v17 = vcombine.high %v6363_v46, %v6364_v31 }
 0x445   :  { %v2916_v5 = vcombine.low %v5943_v61, %v6017_v50  ;;  %v2993_v36 = vcombine.low %v2665_v20, %v2674_v58  ;;  %v3734_v14 = vcombine.high %v2665_v20, %v2674_v58  ;;  %v2703_v62 = vcombine.low %v2554_v53, %v2558_v40  ;;  %v2592_v58 = vld [vmem:[#allocation4] sm:$0x1]  ;;  %v2595_v40 = vld [vmem:[#allocation4 + $0x8] sm:$0x1] }
 0x446   :  { %v2555_v35 = vmax.f32 %v5758_v12, %v2391_v1  ;;  %v2399_v21 = vpop.permute.xlu1 %2398  ;;  %v2960_v38 = vcombine.low %v5946_v47, %v2959_v22  ;;  %v3088_v20 = vcombine.low %v5890_v11, %v2692_v39  ;;  %v2728_v47 = vrot.slane %v2721_v45, %v4922_v30  ;;  %v2601_v1 = vld [vmem:[#allocation4 + $0xc] sm:$0x1] }
 0x447   :  { %v3007_v59 = vrot.slane %v2993_v36, %v6344_v10  ;;  %v3055_v41 = vrot.slane %v3734_v14, %v6344_v10  ;;  %v2710_v34 = vrot.slane %v2703_v62, %v4922_v30  ;;  %v2559_v56 = vmax.f32 %v5766_v25, %v2399_v21 }
 0x448   :  { %v2455_v60 = vpop.permute.xlu0 %2454  ;;  %v4005_v12 = vpack.i.bf16 %v2977_v42, %v2960_v38  ;;  %v2737_v23 = vrot.slane %v2730_v8, %v4922_v30  ;;  %v2881_v53 = vrot.slane %v6359_v6, %v4922_v30  ;;  %v3096_v2 = vrot.slane %v3088_v20, %v6344_v10 }
 0x449   :  { %v3089_v44 = vcombine.low %v2701_v29, %v2710_v34  ;;  %v3738_v63 = vcombine.high %v2701_v29, %v2710_v34  ;;  %v2739_v54 = vcombine.low %v2555_v35, %v2559_v56  ;;  %v2587_v25 = vmax.f32 %v5769_v13, %v2455_v60 }
 0x44a   :  { %4006 = vrot.lane.b32.xlu0 %v4005_v12, %s4104_s20  ;;  %v2463_v7 = vpop.permute.xlu1 %2462  ;;  %v3056_v11 = vcombine.low %v3048_v9, %v3055_v41  ;;  %v3008_v39 = vcombine.low %v3000_v43, %v3007_v59  ;;  %v2598_v43 = vld [vmem:[#allocation4 + $0x4] sm:$0x1]  ;;  %v2593_v48 = vsel %vm4212_vm3, 0, %v2592_v58  ;;  %v2596_v26 = vsel %vm4212_vm3, 0, %v2595_v40 }
 0x44b   :  { %v3103_v27 = vrot.slane %v3089_v44, %v6344_v10  ;;  %v3151_v0 = vrot.slane %v3738_v63, %v6344_v10  ;;  %v2746_v15 = vrot.slane %v2739_v54, %v4922_v30  ;;  %v2591_v42 = vmax.f32 %v6358_v19, %v2463_v7  ;;  %2594 = vst [vmem:[#allocation4] sm:$0x1] %v2593_v48  ;;  %v4080_v54 = vld [vmem:[%s6189_s10] sm:$0xff]   ;;  %v4083_v7 = vld [vmem:[%s6189_s10 + $0x18] sm:$0xff]  }
 0x44c   :  { %v4015_v13 = vpack.i.bf16 %v3073_v24, %v3056_v11  ;;  %v4010_v22 = vpack.i.bf16 %v3025_v18, %v3008_v39  ;;  %v2599_v37 = vsel %vm4225_vm4, 0, %v2598_v43  ;;  %v6362_v24 = vld [vmem:[#allocation12_spill] sm:$0xff]  ;;  %2597 = vst [vmem:[#allocation4 + $0x8] sm:$0x1] %v2596_v26  ;;  %v2602_v21 = vsel %vm4225_vm4, 0, %v2601_v1  ;;  %3938 = vmatpush3.bf16.msra.mxu0 %v4080_v54 }
 0x44d   :  { %v3185_v51 = vcombine.low %v2737_v23, %v2746_v15  ;;  %v3742_v45 = vcombine.high %v2737_v23, %v2746_v15  ;;  %v2883_v32 = vcombine.low %v2587_v25, %v2591_v42  ;;  %v3152_v55 = vcombine.low %v3144_v52, %v3151_v0  ;;  %2600 = vst [vmem:[#allocation4 + $0x4] sm:$0x1] %v2599_v37  ;;  %v4082_v25 = vld [vmem:[%s6189_s10 + $0x10] sm:$0xff]  }
 0x44e   :  { %4016 = vrot.lane.b32.xlu0 %v4015_v13, %s4105_s13  ;;  %4011 = vrot.lane.b32.xlu1 %v4010_v22, %s4100_s2  ;;  %v3104_v36 = vcombine.low %v3096_v2, %v3103_v27  ;;  %v3184_v18 = vcombine.low %v6362_v24, %v2728_v47  ;;  %v3741_v62 = vcombine.high %v6362_v24, %v2728_v47  ;;  %vm4108_vm4 = vmmov 0  }
 0x44f   :  { %v2890_v29 = vrot.slane %v2883_v32, %v4922_v30  ;;  %v4025_v8 = vpack.i.bf16 %v3169_v33, %v3152_v55  ;;  %v3199_v38 = vrot.slane %v3185_v51, %v6344_v10  ;;  %v3247_v59 = vrot.slane %v3742_v45, %v6344_v10  ;;  %2603 = vst [vmem:[#allocation4 + $0xc] sm:$0x1] %v2602_v21 }
 0x450   :  { %v4020_v35 = vpack.i.bf16 %v3121_v4, %v3104_v36  ;;  %v6365_v33 = vcombine.low %v6363_v46, %v6364_v31  ;;  %v3257_v49 = vrot.slane %v6366_v17, %v6344_v10  ;;  %v3192_v4 = vrot.slane %v3184_v18, %v6344_v10 }
 0x451   :  { %v3202_v41 = vcombine.low %v2881_v53, %v2890_v29  ;;  %v3744_v30 = vcombine.high %v2881_v53, %v2890_v29  ;;  %v3240_v56 = vrot.slane %v3741_v62, %v6344_v10  ;;  %v6367_v23 = vmov 0.0  }
 0x452   :  { %v3209_v34 = vrot.slane %v6365_v33, %v6344_v10  ;;  %4026 = vrot.lane.b32.xlu0 %v4025_v8, %s4106_s21  ;;  %4021 = vrot.lane.b32.xlu1 %v4020_v35, %s4099_s4  ;;  %v3200_v12 = vcombine.low %v3192_v4, %v3199_v38 }
 0x453   :  { %v3216_v9 = vrot.slane %v3202_v41, %v6344_v10  ;;  %v3264_v20 = vrot.slane %v3744_v30, %v6344_v10  ;;  %v3248_v52 = vcombine.low %v3240_v56, %v3247_v59  ;;  %3945 = vmatprep.mubr.msk.bf16.mxu0 %vm4108_vm4, %v6367_v23  ;;  %v4081_v10 = vld [vmem:[%s6189_s10 + $0x8] sm:$0xff]   ;;  %3939 = vmatprep.subr.bf16.mxu0 %v6367_v23  ;;  %v3321_v59 = vld [vmem:[#allocation4] sm:$0xf] }
 0x454   :  { %3940 = vmatpush3.bf16.msra.mxu0 %v4081_v10  ;;  %v3324_v33 = vld [vmem:[#allocation4 + $0x4] sm:$0x1] }
 0x455   :  { %v3265_v60 = vcombine.low %v3257_v49, %v3264_v20  ;;  %v3217_v47 = vcombine.low %v3209_v34, %v3216_v9  ;;  %3941 = vmatprep.subr.bf16.mxu0 %v6367_v23  ;;  %v3327_v34 = vld [vmem:[#allocation4 + $0x8] sm:$0xf] }
 0x456   :  { %v3330_v17 = vld [vmem:[#allocation4 + $0xc] sm:$0x1] }
 0x457   :  { %v4035_v44 = vpack.i.bf16 %v3265_v60, %v3248_v52  ;;  %v4030_v63 = vpack.i.bf16 %v3217_v47, %v3200_v12 }
 0x458   :  { %3942 = vmatpush3.bf16.msra.mxu0 %v4082_v25 }
 0x459   :  { %4036 = vrot.lane.b32.xlu0 %v4035_v44, %s4107_s22  ;;  %4031 = vrot.lane.b32.xlu1 %v4030_v63, %s4098_s0 }
 0x45a   :  { %3943 = vmatprep.subr.bf16.mxu0 %v6367_v23 }
 0x45c   :  { %3944 = vmatpush3.bf16.msra.mxu0 %v4083_v7 }
 0x45d   :  { %3949 = vmatprep.subr.bf16.mxu0 %v6367_v23 }
 0x4bc   :  { %v4007_v11 = vpop.permute.xlu0 %4006 }
 0x4bd   :  { %v4009_v0 = vunpack.i.h.bf16 %v4007_v11  ;;  %v4008_v15 = vunpack.i.l.bf16 %v4007_v11 }
 0x4bf   :  { %v3274_v53 = vsel %vm3272_vm14, %v2933_v57, %v4009_v0  ;;  %v3273_v2 = vsel %vm3272_vm14, %v2916_v5, %v4008_v15 }
 0x4c0   :  { %v4017_v39 = vpop.permute.xlu0 %4016  ;;  %v4012_v27 = vpop.permute.xlu1 %4011 }
 0x4c1   :  { %v4014_v19 = vunpack.i.h.bf16 %v4012_v27  ;;  %v4013_v42 = vunpack.i.l.bf16 %v4012_v27  ;;  %v4019_v13 = vunpack.i.h.bf16 %v4017_v39  ;;  %v4018_v22 = vunpack.i.l.bf16 %v4017_v39 }
 0x4c3   :  { %v3277_v58 = vsel %vm3275_vm1, %v3274_v53, %v4014_v19  ;;  %v3276_v40 = vsel %vm3275_vm1, %v3273_v2, %v4013_v42 }
 0x4c4   :  { %v4022_v6 = vpop.permute.xlu1 %4021  ;;  %v4027_v43 = vpop.permute.xlu0 %4026  ;;  %v3279_v1 = vsel %vm3278_vm5, %v3276_v40, %v4018_v22  ;;  %v3280_v36 = vsel %vm3278_vm5, %v3277_v58, %v4019_v13 }
 0x4c5   :  { %v4024_v51 = vunpack.i.h.bf16 %v4022_v6  ;;  %v4023_v45 = vunpack.i.l.bf16 %v4022_v6  ;;  %v4029_v32 = vunpack.i.h.bf16 %v4027_v43  ;;  %v4028_v55 = vunpack.i.l.bf16 %v4027_v43 }
 0x4c7   :  { %v3282_v48 = vsel %vm3281_vm6, %v3279_v1, %v4023_v45  ;;  %v3283_v26 = vsel %vm3281_vm6, %v3280_v36, %v4024_v51  ;;  %v4084_v45 = vld [vmem:[%s6190_s9] sm:$0xff]   ;;  %v4086_v1 = vld [vmem:[%s6190_s9 + $0x10] sm:$0xff]   ;;  %v4087_v36 = vld [vmem:[%s6190_s9 + $0x18] sm:$0xff]  }
 0x4c8   :  { %v3285_v3 = vsel %vm3284_vm0, %v3282_v48, %v4028_v55  ;;  %v3286_v37 = vsel %vm3284_vm0, %v3283_v26, %v4029_v32  ;;  %v4085_v55 = vld [vmem:[%s6190_s9 + $0x8] sm:$0xff]   ;;  %v4089_v48 = vld [vmem:[%s6191_s11] sm:$0xff]  }
 0x4cb   :  { %v4037_v16 = vpop.permute.xlu0 %4036  ;;  %v4032_v61 = vpop.permute.xlu1 %4031 }
 0x4cc   :  { %v4039_v28 = vunpack.i.h.bf16 %v4037_v16  ;;  %v4038_v57 = vunpack.i.l.bf16 %v4037_v16  ;;  %v4034_v50 = vunpack.i.h.bf16 %v4032_v61  ;;  %v4033_v5 = vunpack.i.l.bf16 %v4032_v61  ;;  %v4090_v16 = vld [vmem:[%s6191_s11 + $0x8] sm:$0xff]  }
 0x4ce   :  { %v3288_v24 = vsel %vm3287_vm9, %v3285_v3, %v4033_v5  ;;  %v3289_v18 = vsel %vm3287_vm9, %v3286_v37, %v4034_v50 }
 0x4cf   :  { %v3291_v62 = vsel %vm3290_vm2, %v3288_v24, %v4038_v57  ;;  %v3292_v29 = vsel %vm3290_vm2, %v3289_v18, %v4039_v28  ;;  %v4091_v57 = vld [vmem:[%s6191_s11 + $0x10] sm:$0xff]   ;;  %v4092_v24 = vld [vmem:[%s6191_s11 + $0x18] sm:$0xff]  }
 0x4d0   :  { %v3776_v8 = vpack.c.bf16 %v3291_v62, %v3291_v62  ;;  %v3777_v35 = vpack.c.bf16 %v3292_v29, %v3292_v29 }
 0x4d2   :  { %v3302_v21 = vshrl.u32 %v3776_v8, 16  ;;  %v3310_v38 = vshrl.u32 %v3777_v35, 16  ;;  %v3305_v30 = vshll.u32 %v3776_v8, 16  ;;  %v3313_v31 = vshll.u32 %v3777_v35, 16 }
 0x4d4   :  { %v3304_v41 = vrot.slane %v3302_v21, 7  ;;  %v3312_v46 = vrot.slane %v3310_v38, 7 }
 0x4d6   :  { %v3307_v49 = vor.u32 %v3305_v30, %v3304_v41  ;;  %v3308_v4 = vrot.slane %v3304_v41, 4  ;;  %v3315_v56 = vor.u32 %v3313_v31, %v3312_v46  ;;  %v3316_v9 = vrot.slane %v3312_v46, 4 }
 0x4d8   :  { %v3322_v52 = vsel %vm4244_vm8, %v3307_v49, %v3321_v59  ;;  %v3325_v60 = vsel %vm4212_vm3, %v3308_v4, %v3324_v33  ;;  %v3328_v12 = vsel %vm4244_vm8, %v3315_v56, %v3327_v34  ;;  %v3331_v47 = vsel %vm4212_vm3, %v3316_v9, %v3330_v17  ;;  %v3767_v17 = vld [vmem:[%s6192_s12] ss:$0 sm:$0xff] }
 0x4d9   :  { %3323 = vst [vmem:[#allocation4] sm:$0xf] %v3322_v52  ;;  %3326 = vst [vmem:[#allocation4 + $0x4] sm:$0x1] %v3325_v60 }
 0x4da   :  { %3329 = vst [vmem:[#allocation4 + $0x8] sm:$0xf] %v3328_v12  ;;  %3332 = vst [vmem:[#allocation4 + $0xc] sm:$0x1] %v3331_v47 }
 0x4e0   :  { %v3333_v44 = vld [vmem:[#allocation4] sm:$0xf]  ;;  %v3343_v54 = vld [vmem:[#allocation4 + $0x4] sm:$0x1] }
 0x4e1   :  { %v3334_v63 = vld [vmem:[#allocation4 + $0x8] sm:$0xf]  ;;  %v3344_v10 = vld [vmem:[#allocation4 + $0xc] sm:$0x1]  ;;  %v3346_v25 = vshrl.u32 %v3333_v44, 16  ;;  %v3349_v7 = vshll.u32 %v3333_v44, 16 }
 0x4e2   :  { %v3360_v11 = vshrl.u32 %v3334_v63, 16  ;;  %v3363_v39 = vshll.u32 %v3334_v63, 16  ;;  %v3355_v15 = vshll.u32 %v3343_v54, 16  ;;  %v3369_v6 = vshll.u32 %v3344_v10, 16  ;;  %v3525_v61 = vld [vmem:[#allocation4] sm:$0xe] }
 0x4e3   :  { %v3348_v27 = vrot.slane %v3346_v25, 4  ;;  %v3351_v0 = vrot.slane %v3349_v7, 5  ;;  %v3753_v26 = vcombine.low %v3333_v44, %v3334_v63  ;;  %v3526_v28 = vld [vmem:[#allocation4 + $0x8] sm:$0xe]  ;;  %v3759_v50 = vrot.slane %v3525_v61, 9 }
 0x4e4   :  { %v3362_v19 = vrot.slane %v3360_v11, 4  ;;  %v3365_v42 = vrot.slane %v3363_v39, 5  ;;  %v3357_v13 = vrot.slane %v3355_v15, 5  ;;  %v3371_v58 = vrot.slane %v3369_v6, 5 }
 0x4e5   :  { %v3352_v14 = vor.u32 %v3351_v0, %v3348_v27  ;;  %v3533_v5 = vrot.slane %v3343_v54, 5  ;;  %v3760_v3 = vrot.slane %v3526_v28, 9  ;;  %v3537_v37 = vrot.slane %v3344_v10, 5 }
 0x4e6   :  { %v3366_v53 = vor.u32 %v3365_v42, %v3362_v19 }
 0x4e7   :  { %v3353_v2 = vrot.slane %v3352_v14, 4  ;;  %v3534_v62 = vsel %vm4306_vm15, %v3759_v50, %v3533_v5  ;;  %v3538_v29 = vsel %vm4306_vm15, %v3760_v3, %v3537_v37 }
 0x4e8   :  { %v3367_v22 = vrot.slane %v3366_v53, 4  ;;  %v3761_v8 = vcombine.low %v3534_v62, %v3538_v29 }
 0x4e9   :  { %v3358_v43 = vsel %vm4279_vm11, %v3353_v2, %v3357_v13 }
 0x4ea   :  { %v3372_v51 = vsel %vm4279_vm11, %v3367_v22, %v3371_v58 }
 0x4eb   :  { %v3747_v32 = vcombine.low %v3358_v43, %v3372_v51 }
 0x4ed   :  { %3946 = vmatmul.mubr.msk.bf16.vlgmr.msra.gmra.mrb[4].mxu0 %vm243_vm12, %v3747_v32 }
 0x4ee   :  { %3950 = vmatpush3.bf16.msra.mxu0 %v4084_v45  ;;  %3957 = vmatprep.mubr.msk.bf16.mxu0 %vm4108_vm4, %v6367_v23 }
 0x4ef   :  { %3951 = vmatprep.subr.bf16.mxu0 %v6367_v23 }
 0x4f2   :  { %3952 = vmatpush3.bf16.msra.mxu0 %v4085_v55 }
 0x4f3   :  { %3953 = vmatprep.subr.bf16.mxu0 %v6367_v23 }
 0x4f6   :  { %3954 = vmatpush3.bf16.msra.mxu0 %v4086_v1 }
 0x4f7   :  { %3955 = vmatprep.subr.bf16.mxu0 %v6367_v23 }
 0x4fa   :  { %3956 = vmatpush3.bf16.msra.mxu0 %v4087_v36 }
 0x4fb   :  { %3961 = vmatprep.subr.bf16.mxu0 %v6367_v23 }
 0x4fd   :  { %3958 = vmatmul.mubr.msk.bf16.vlgmr.msra.gmra.mrb[8].mxu0 %vm243_vm12, %v3753_v26 }
 0x4fe   :  { %3962 = vmatpush3.bf16.msra.mxu0 %v4089_v48  ;;  %3969 = vmatprep.mubr.msk.bf16.mxu0 %vm4108_vm4, %v6367_v23 }
 0x4ff   :  { %3963 = vmatprep.subr.bf16.mxu0 %v6367_v23 }
 0x502   :  { %3964 = vmatpush3.bf16.msra.mxu0 %v4090_v16 }
 0x503   :  { %3965 = vmatprep.subr.bf16.mxu0 %v6367_v23 }
 0x506   :  { %3966 = vmatpush3.bf16.msra.mxu0 %v4091_v57 }
 0x507   :  { %3967 = vmatprep.subr.bf16.mxu0 %v6367_v23 }
 0x50a   :  { %3968 = vmatpush3.bf16.msra.mxu0 %v4092_v24 }
 0x50d   :  { %3970 = vmatmul.mubr.msk.bf16.vlgmr.msra.gmra.mrb[12].mxu0 %vm243_vm12, %v3761_v8 }
 0x5c0   :  { %v3445_v35 = vpop.f32.mrb[4].mxu0 }
 0x5c1   :  { %v3947_v21 = vpop.f32.mrb[5].mxu0 }
 0x5c2   :  { %v3448_v38 = vpop.f32.mrb[6].mxu0 }
 0x5c3   :  { %v3948_v59 = vpop.f32.mrb[7].mxu0 }
 0x5d0   :  { %v3518_v41 = vpop.f32.mrb[8].mxu0 }
 0x5d1   :  { %v3519_v30 = vadd.f32 %v3518_v41, %v3445_v35  ;;  %v3959_v46 = vpop.f32.mrb[9].mxu0 }
 0x5d2   :  { %v3521_v31 = vpop.f32.mrb[10].mxu0 }
 0x5d3   :  { %v3522_v33 = vadd.f32 %v3521_v31, %v3448_v38  ;;  %v3960_v23 = vpop.f32.mrb[11].mxu0 }
 0x5e0   :  { %v3611_v34 = vpop.f32.mrb[12].mxu0 }
 0x5e1   :  { %v3618_v49 = vadd.f32 %v3611_v34, %v3519_v30  ;;  %v3971_v4 = vpop.f32.mrb[13].mxu0 }
 0x5e2   :  { %v3614_v56 = vpop.f32.mrb[14].mxu0 }
 0x5e3   :  { %v3627_v9 = vadd.f32 %v3767_v17, %v3618_v49  ;;  %v3619_v20 = vadd.f32 %v3614_v56, %v3522_v33  ;;  %v3972_v52 = vpop.f32.mrb[15].mxu0 }
 0x5e5   :  { %v3629_v60 = vmax.f32 %v3627_v9, 0.0  ;;  %v3628_v12 = vadd.f32 %v3767_v17, %v3619_v20 }
 0x5e7   :  { %3631 = vst [vmem:[%s6193_s15] sm:$0xff] %v3629_v60  ;;  %v3630_v47 = vmax.f32 %v3628_v12, 0.0 }
 0x5e9   :  { %3632 = vst [vmem:[%s6193_s15 + $0x8] sm:$0xff] %v3630_v47 }

</bundles_post_ra>
